<compile_context>
chip_gen: v5e
topology: v5e:2x2
jax: 0.10.0
libtpu: 0.0.40
codegen_flags: <defaults>
</compile_context>

<pallas_src>
import functools

import jax
import jax.numpy as jnp
from jax.experimental import pallas as pl
from jax.experimental.pallas import tpu as pltpu


def _softplus(x):
    # Matches torch.nn.Softplus(beta=1, threshold=20) semantics, numerically stable.
    return jnp.where(x > 20.0, x, jnp.log1p(jnp.exp(jnp.minimum(x, 20.0))))


def osg_decoder_kernel(feat_ref, w1_ref, b1_ref, w2_ref, b2_ref, out_ref):
    # feat_ref: (1, P, tile_m, C) -- original layout, one batch element, row tile
    # w1_ref:   (C, H)  pre-scaled by 1/P (plane mean folded into the matmul)
    # b1_ref:   (1, H)
    # w2_ref:   (H, O)  b2_ref: (1, O)   with O = 1 + decoder_output_dim
    # out_ref:  (1, tile_m, O)           merged [sigma | rgb] output
    n_planes = feat_ref.shape[1]

    # mean(feat, planes) @ W1 == sum_p feat[p] @ (W1 / P): accumulate per-plane
    # matmuls in f32 on the MXU (no VPU mean reduction, no layout change).
    h = jnp.dot(feat_ref[0, 0], w1_ref[...], preferred_element_type=jnp.float32)
    for p in range(1, n_planes):
        h = h + jnp.dot(feat_ref[0, p], w1_ref[...],
                        preferred_element_type=jnp.float32)
    h = _softplus(h + b1_ref[...])

    y = jnp.dot(h, w2_ref[...], preferred_element_type=jnp.float32) + b2_ref[...]

    # Column 0 is sigma (raw); columns 1.. are rgb = sigmoid(y)*1.002 - 0.001.
    col = jax.lax.broadcasted_iota(jnp.int32, y.shape, 1)
    rgb_act = jax.nn.sigmoid(y) * (1.0 + 2.0 * 0.001) - 0.001
    out_ref[0] = jnp.where(col == 0, y, rgb_act)


def _pick_tile_m(m, cap=1024):
    """Largest multiple of 128 that divides m (<= cap), preferring >=2 tiles.

    Falls back to the full dim (always a legal block) if m has no suitable
    divisor, so arbitrary M never trips a shape assert."""
    cands = [t for t in range(128, min(cap, m) + 1, 128) if m % t == 0]
    if not cands:
        return m
    proper = [t for t in cands if t < m]
    return max(proper) if proper else max(cands)


@jax.jit
def osg_decoder_forward(sampled_features, ray_directions, w1, b1, w2, b2):
    # sampled_features: (N, P, M, C)  (planes on axis 1, exactly like PyTorch)
    # ray_directions:   (N, M, 3)     -- unused by the reference forward
    del ray_directions
    N, P, M, C = sampled_features.shape
    H = w1.shape[1]
    O = w2.shape[1]

    tile_m = _pick_tile_m(M)
    grid = (N, M // tile_m)

    # Fold the plane mean into the first matmul.
    w1_scaled = w1 * (1.0 / P)

    out = pl.pallas_call(
        osg_decoder_kernel,
        out_shape=jax.ShapeDtypeStruct((N, M, O), jnp.float32),
        grid_spec=pltpu.PrefetchScalarGridSpec(
            num_scalar_prefetch=0,
            grid=grid,
            in_specs=[
                # Index the original layout directly; no wrapper transpose.
                pl.BlockSpec((1, P, tile_m, C), lambda n, i: (n, 0, i, 0)),
                pl.BlockSpec((C, H), lambda n, i: (0, 0)),
                pl.BlockSpec((1, H), lambda n, i: (0, 0)),
                pl.BlockSpec((H, O), lambda n, i: (0, 0)),
                pl.BlockSpec((1, O), lambda n, i: (0, 0)),
            ],
            out_specs=pl.BlockSpec((1, tile_m, O), lambda n, i: (n, i, 0)),
        ),
        compiler_params=pltpu.CompilerParams(
            dimension_semantics=("parallel", "parallel")),
    )(sampled_features, w1_scaled, b1, w2, b2)

    # Free slices under jit: column 0 is sigma, the rest is rgb.
    return {
        "rgb": out[..., 1:],
        "sigma": out[..., 0:1],
    }


def make_params(key, n_features, hidden_dim, out_dim, lr_mul):
    """Deterministic init mirroring FullyConnectedLayer.__init__ + forward gains."""
    k1, k2 = jax.random.split(key)
    # raw params (as stored by the PyTorch module)
    w1_raw = jax.random.normal(k1, (hidden_dim, n_features), jnp.float32) / lr_mul
    b1_raw = jnp.zeros((hidden_dim,), jnp.float32)
    w2_raw = jax.random.normal(k2, (out_dim, hidden_dim), jnp.float32) / lr_mul
    b2_raw = jnp.zeros((out_dim,), jnp.float32)
    # effective params applied at forward time (weight_gain / bias_gain folded in)
    w1 = (w1_raw * (lr_mul / jnp.sqrt(float(n_features)))).T          # (C, H)
    b1 = (b1_raw * lr_mul).reshape(1, hidden_dim)                     # (1, H)
    w2 = (w2_raw * (lr_mul / jnp.sqrt(float(hidden_dim)))).T          # (H, O)
    b2 = (b2_raw * lr_mul).reshape(1, out_dim)                        # (1, O)
    return w1, b1, w2, b2


def reference_forward(sampled_features, w1, b1, w2, b2):
    x = jnp.mean(sampled_features.astype(jnp.float32), axis=1)        # (N, M, C)
    N, M, C = x.shape
    x = x.reshape(N * M, C)
    h = _softplus(x @ w1 + b1)
    y = h @ w2 + b2
    y = y.reshape(N, M, -1)
    rgb = jax.nn.sigmoid(y[..., 1:]) * (1.0 + 2.0 * 0.001) - 0.001
    sigma = y[..., 0:1]
    return {"rgb": rgb, "sigma": sigma}


if __name__ == "__main__":
    key = jax.random.PRNGKey(0)
    k_feat, k_ray, k_par = jax.random.split(key, 3)

    # Small shapes consistent with the module: N batches, 3 triplanes,
    # M sampled points, C=n_features channels; decoder_output_dim=3.
    N, P, M, C = 2, 3, 1024, 32
    hidden_dim = 64
    decoder_output_dim = 3
    decoder_lr_mul = 0.5

    sampled_features = jax.random.normal(k_feat, (N, P, M, C), jnp.float32)
    ray_directions = jax.random.normal(k_ray, (N, M, 3), jnp.float32)

    w1, b1, w2, b2 = make_params(k_par, C, hidden_dim,
                                 1 + decoder_output_dim, decoder_lr_mul)

    out = osg_decoder_forward(sampled_features, ray_directions, w1, b1, w2, b2)
    out = jax.tree_util.tree_map(jax.block_until_ready, out)

    ref = reference_forward(sampled_features, w1, b1, w2, b2)
    assert out["rgb"].shape == (N, M, decoder_output_dim)
    assert out["sigma"].shape == (N, M, 1)
    assert jnp.allclose(out["rgb"], ref["rgb"], atol=2e-5, rtol=2e-5)
    assert jnp.allclose(out["sigma"], ref["sigma"], atol=2e-5, rtol=2e-5)

    print("KERNEL_OK")
</pallas_src>

<mosaic_0001>
module attributes {stable_mosaic.version = 11 : i64} {
  func.func @osg_decoder_kernel(%arg0: i32, %arg1: i32, %arg2: memref<1x3x512x32xf32, #tpu.memory_space<vmem>>, %arg3: memref<32x64xf32, #tpu.memory_space<vmem>>, %arg4: memref<1x64xf32, #tpu.memory_space<vmem>>, %arg5: memref<64x4xf32, #tpu.memory_space<vmem>>, %arg6: memref<1x4xf32, #tpu.memory_space<vmem>>, %arg7: memref<1x512x4xf32, #tpu.memory_space<vmem>>) attributes {dimension_semantics = [#tpu.dimension_semantics<parallel>, #tpu.dimension_semantics<parallel>], iteration_bounds = array<i64: 2, 2>, scalar_prefetch = 0 : i64, scratch_operands = 0 : i64, tpu.core_type = #tpu.core_type<tc>, window_params = [{transform_indices = @transform_0, window_bounds = array<i64: 1, 3, 512, 32>}, {pipeline_mode = #tpu.pipeline_mode<synchronous>, transform_indices = @transform_1, window_bounds = array<i64: 32, 64>}, {pipeline_mode = #tpu.pipeline_mode<synchronous>, transform_indices = @transform_2, window_bounds = array<i64: 1, 64>}, {pipeline_mode = #tpu.pipeline_mode<synchronous>, transform_indices = @transform_3, window_bounds = array<i64: 64, 4>}, {pipeline_mode = #tpu.pipeline_mode<synchronous>, transform_indices = @transform_4, window_bounds = array<i64: 1, 4>}, {transform_indices = @transform_5, window_bounds = array<i64: 1, 512, 4>}]} {
    %c0 = arith.constant 0 : index
    %c0_0 = arith.constant 0 : index
    %c0_1 = arith.constant 0 : index
    %c0_2 = arith.constant 0 : index
    %0 = vector.load %arg2[%c0, %c0_0, %c0_1, %c0_2] : memref<1x3x512x32xf32, #tpu.memory_space<vmem>>, vector<1x1x512x32xf32>
    %1 = vector.shape_cast %0 : vector<1x1x512x32xf32> to vector<512x32xf32>
    %c0_3 = arith.constant 0 : index
    %c0_4 = arith.constant 0 : index
    %2 = vector.load %arg3[%c0_3, %c0_4] : memref<32x64xf32, #tpu.memory_space<vmem>>, vector<32x64xf32>
    %cst = arith.constant dense<0.000000e+00> : vector<512x64xf32>
    %3 = tpu.matmul %1, %2, %cst {dimension_numbers = #tpu.dot_dimension_numbers<[1], [0], [0], [1], [0, 0, 1, 1], [], []>} : vector<512x32xf32>, vector<32x64xf32>, vector<512x64xf32> -> vector<512x64xf32>
    %c0_5 = arith.constant 0 : index
    %c1 = arith.constant 1 : index
    %c0_6 = arith.constant 0 : index
    %c0_7 = arith.constant 0 : index
    %4 = vector.load %arg2[%c0_5, %c1, %c0_6, %c0_7] : memref<1x3x512x32xf32, #tpu.memory_space<vmem>>, vector<1x1x512x32xf32>
    %5 = vector.shape_cast %4 : vector<1x1x512x32xf32> to vector<512x32xf32>
    %c0_8 = arith.constant 0 : index
    %c0_9 = arith.constant 0 : index
    %6 = vector.load %arg3[%c0_8, %c0_9] : memref<32x64xf32, #tpu.memory_space<vmem>>, vector<32x64xf32>
    %cst_10 = arith.constant dense<0.000000e+00> : vector<512x64xf32>
    %7 = tpu.matmul %5, %6, %cst_10 {dimension_numbers = #tpu.dot_dimension_numbers<[1], [0], [0], [1], [0, 0, 1, 1], [], []>} : vector<512x32xf32>, vector<32x64xf32>, vector<512x64xf32> -> vector<512x64xf32>
    %8 = arith.addf %3, %7 : vector<512x64xf32>
    %c0_11 = arith.constant 0 : index
    %c2 = arith.constant 2 : index
    %c0_12 = arith.constant 0 : index
    %c0_13 = arith.constant 0 : index
    %9 = vector.load %arg2[%c0_11, %c2, %c0_12, %c0_13] : memref<1x3x512x32xf32, #tpu.memory_space<vmem>>, vector<1x1x512x32xf32>
    %10 = vector.shape_cast %9 : vector<1x1x512x32xf32> to vector<512x32xf32>
    %c0_14 = arith.constant 0 : index
    %c0_15 = arith.constant 0 : index
    %11 = vector.load %arg3[%c0_14, %c0_15] : memref<32x64xf32, #tpu.memory_space<vmem>>, vector<32x64xf32>
    %cst_16 = arith.constant dense<0.000000e+00> : vector<512x64xf32>
    %12 = tpu.matmul %10, %11, %cst_16 {dimension_numbers = #tpu.dot_dimension_numbers<[1], [0], [0], [1], [0, 0, 1, 1], [], []>} : vector<512x32xf32>, vector<32x64xf32>, vector<512x64xf32> -> vector<512x64xf32>
    %13 = arith.addf %8, %12 : vector<512x64xf32>
    %c0_17 = arith.constant 0 : index
    %c0_18 = arith.constant 0 : index
    %14 = vector.load %arg4[%c0_17, %c0_18] : memref<1x64xf32, #tpu.memory_space<vmem>>, vector<1x64xf32>
    %15 = vector.broadcast %14 : vector<1x64xf32> to vector<512x64xf32>
    %16 = arith.addf %13, %15 : vector<512x64xf32>
    %cst_19 = arith.constant 2.000000e+01 : f32
    %17 = vector.broadcast %cst_19 : f32 to vector<512x64xf32>
    %18 = arith.cmpf ogt, %16, %17 : vector<512x64xf32>
    %cst_20 = arith.constant 2.000000e+01 : f32
    %19 = vector.broadcast %cst_20 : f32 to vector<512x64xf32>
    %20 = arith.minimumf %16, %19 : vector<512x64xf32>
    %21 = math.exp %20 : vector<512x64xf32>
    %22 = math.log1p %21 : vector<512x64xf32>
    %23 = arith.select %18, %16, %22 : vector<512x64xi1>, vector<512x64xf32>
    %c0_21 = arith.constant 0 : index
    %c0_22 = arith.constant 0 : index
    %24 = vector.load %arg5[%c0_21, %c0_22] : memref<64x4xf32, #tpu.memory_space<vmem>>, vector<64x4xf32>
    %cst_23 = arith.constant dense<0.000000e+00> : vector<512x4xf32>
    %25 = tpu.matmul %23, %24, %cst_23 {dimension_numbers = #tpu.dot_dimension_numbers<[1], [0], [0], [1], [0, 0, 1, 1], [], []>} : vector<512x64xf32>, vector<64x4xf32>, vector<512x4xf32> -> vector<512x4xf32>
    %c0_24 = arith.constant 0 : index
    %c0_25 = arith.constant 0 : index
    %26 = vector.load %arg6[%c0_24, %c0_25] : memref<1x4xf32, #tpu.memory_space<vmem>>, vector<1x4xf32>
    %27 = vector.broadcast %26 : vector<1x4xf32> to vector<512x4xf32>
    %28 = arith.addf %25, %27 : vector<512x4xf32>
    %29 = tpu.iota {dimensions = array<i32: 1>} : vector<512x4xi32>
    %30 = arith.negf %28 : vector<512x4xf32>
    %31 = math.exp %30 : vector<512x4xf32>
    %cst_26 = arith.constant 1.000000e+00 : f32
    %32 = vector.broadcast %cst_26 : f32 to vector<512x4xf32>
    %33 = arith.addf %32, %31 : vector<512x4xf32>
    %34 = arith.divf %32, %33 : vector<512x4xf32>
    %cst_27 = arith.constant 1.002000e+00 : f32
    %35 = vector.broadcast %cst_27 : f32 to vector<512x4xf32>
    %36 = arith.mulf %34, %35 : vector<512x4xf32>
    %cst_28 = arith.constant 1.000000e-03 : f32
    %37 = vector.broadcast %cst_28 : f32 to vector<512x4xf32>
    %38 = arith.subf %36, %37 : vector<512x4xf32>
    %c0_i32 = arith.constant 0 : i32
    %39 = vector.broadcast %c0_i32 : i32 to vector<512x4xi32>
    %40 = arith.cmpi eq, %29, %39 : vector<512x4xi32>
    %41 = arith.select %40, %28, %38 : vector<512x4xi1>, vector<512x4xf32>
    %c0_29 = arith.constant 0 : index
    %c0_30 = arith.constant 0 : index
    %c0_31 = arith.constant 0 : index
    %42 = vector.load %arg7[%c0_29, %c0_30, %c0_31] : memref<1x512x4xf32, #tpu.memory_space<vmem>>, vector<1x512x4xf32>
    %43 = vector.shape_cast %42 : vector<1x512x4xf32> to vector<512x4xf32>
    %44 = vector.shape_cast %41 : vector<512x4xf32> to vector<1x512x4xf32>
    tpu.vector_store %arg7[%c0_29, %c0_30, %c0_31], %44 {strides = array<i32>} : memref<1x512x4xf32, #tpu.memory_space<vmem>>, vector<1x512x4xf32>,
    return
  }
  func.func @transform_0(%arg0: i32, %arg1: i32) -> (i32, i32, i32, i32) {
    %c0_i32 = arith.constant 0 : i32
    %c0_i32_0 = arith.constant 0 : i32
    %c0_i32_1 = arith.constant 0 : i32
    return %arg0, %c0_i32, %arg1, %c0_i32_0 : i32, i32, i32, i32
  }
  func.func @transform_1(%arg0: i32, %arg1: i32) -> (i32, i32) {
    %c0_i32 = arith.constant 0 : i32
    %c0_i32_0 = arith.constant 0 : i32
    %c0_i32_1 = arith.constant 0 : i32
    return %c0_i32, %c0_i32_0 : i32, i32
  }
  func.func @transform_2(%arg0: i32, %arg1: i32) -> (i32, i32) {
    %c0_i32 = arith.constant 0 : i32
    %c0_i32_0 = arith.constant 0 : i32
    %c0_i32_1 = arith.constant 0 : i32
    return %c0_i32, %c0_i32_0 : i32, i32
  }
  func.func @transform_3(%arg0: i32, %arg1: i32) -> (i32, i32) {
    %c0_i32 = arith.constant 0 : i32
    %c0_i32_0 = arith.constant 0 : i32
    %c0_i32_1 = arith.constant 0 : i32
    return %c0_i32, %c0_i32_0 : i32, i32
  }
  func.func @transform_4(%arg0: i32, %arg1: i32) -> (i32, i32) {
    %c0_i32 = arith.constant 0 : i32
    %c0_i32_0 = arith.constant 0 : i32
    %c0_i32_1 = arith.constant 0 : i32
    return %c0_i32, %c0_i32_0 : i32, i32
  }
  func.func @transform_5(%arg0: i32, %arg1: i32) -> (i32, i32, i32) {
    %c0_i32 = arith.constant 0 : i32
    %c0_i32_0 = arith.constant 0 : i32
    return %arg0, %arg1, %c0_i32 : i32, i32, i32
  }
}

</mosaic_0001>

<bundles_post_ra>
// kernel: osg_decoder_forward.1
= control target key start
LH: loop header
LB: loop body
LE: loop exit
PB: predicated region body
PF: predicated region fallthrough
CT: control target
= control target key end

     0   :  { %s6659_s18 = smov 0   ;;  %s6661_s19 = smov 0   ;;  %s10021_s0 = inlined_call_operand.vmem [shape: f32[2,3,1024,32], index: 0, kind: input, shape index: {}]   ;;  %s10022_s1 = inlined_call_operand.vmem [shape: f32[32,64], index: 1, kind: input, shape index: {}]   ;;  %s10023_s2 = inlined_call_operand.vmem [shape: f32[1,64], index: 2, kind: input, shape index: {}]   ;;  %s10024_s3 = inlined_call_operand.vmem [shape: f32[64,4], index: 3, kind: input, shape index: {}]   ;;  %s10025_s4 = inlined_call_operand.vmem [shape: f32[1,4], index: 4, kind: input, shape index: {}]   ;;  %s10026_s5 = inlined_call_operand.vmem [shape: f32[2,1024,4], index: 5, kind: output, shape index: {}]  }
   0x1   :  { %s6663_s20 = smov 0   ;;  %s6665_s21 = smov 0  }
   0x2   :  { %s6667_s22 = smov 0   ;;  %s6669_s23 = smov 0  }
   0x3   :  { %s6671_s24 = smov 0  }
   0x4 LB: > { %s24_s25 = sadd.s32 1, %s6619_s22  ;;  %s27_s26 = sadd.s32 1, %s6623_s23  ;;  %s6627_s24 = sphi %s6671_s24, %s15_s24   ;;  %s6623_s23 = sphi %s6669_s23, %s10141_s23   ;;  %s6619_s22 = sphi %s6667_s22, %s10140_s22   ;;  %s6615_s21 = sphi %s6665_s21, %s10139_s21   ;;  %s6611_s20 = sphi %s6663_s20, %s10138_s20   ;;  %s6607_s19 = sphi %s6661_s19, %s10137_s19   ;;  %s6603_s18 = sphi %s6659_s18, %s10136_s18  }
   0x5   : > { %p25_p0 = scmp.ge.s32.totalorder %s24_s25, 2  ;;  %p43_p1 = scmp.ne.s32.totalorder %s6607_s19, %s6603_s18 }
   0x6   : > { %p44_p2 = scmp.eq.s32.totalorder %s6627_s24, 0  ;;  %s36_s30 = sadd.s32 1, %s6607_s19 }
   0x7   : > { %s10143_s25 = smov (%p25_p0, %s24_s25), 0  ;;  %s10145_s26 = smov (!%p25_p0, %s27_s26), %s6623_s23 }
   0x8   : > { %p45_p3 = por %p44_p2, %p43_p1  ;;  %p29_p4 = scmp.ge.s32.totalorder %s10145_s26, 2 }
   0x9   : > { %s32_s27 = ssub.s32 %s6619_s22, %s10143_s25  ;;  %p5469_p6 = scmp.ge.s32.totalorder %s6627_s24, 4 }
   0xa   : > { %s10147_s26 = smov (%p29_p4, %s10145_s26), 0 }
   0xb   : > { %s31_s28 = ssub.s32 %s6623_s23, %s10147_s26  ;;  %193 = sbr.rel (%p5469_p6) target bundleno = 216 (0xd8), region = 32 }
   0xc   : > { %s33_s29 = sor.u32 %s32_s27, %s31_s28 }
   0xd   : > { %p34_p5 = scmp.eq.s32.totalorder %s33_s29, 0 }
   0xf   : > { %s6710_s6 = scalar_select %p34_p5, %s6607_s19, %s36_s30  }
  0x10   : > { %196 = sbr.rel (!%p45_p3) target bundleno = 216 (0xd8), region = 36  ;;  %s198_s7 = sand.u32 (%p45_p3), 1, %s6607_s19  }
  0x11   : > { %s5990_s8 = smul.u32 (%p45_p3), 1536, %s198_s7  ;;  %s5470_s9 = sshll.u32 (%p45_p3), %s6619_s22, 6 }
  0x12   : > { %s5991_s10 = smul.u32 (%p45_p3), 384, %s6623_s23 }
  0x13   : > { %s6724_s16 = scalar_lea.vmem (%p45_p3), [#allocation2], %s5990_s8 }
  0x14   : > { %s203_s11 = sadd.s32 (%p45_p3), %s5991_s10, %s5470_s9 }
  0x15   : > { %s5471_s12 = sshll.u32 %s203_s11, 3 }
  0x16   : > { %s6719_s15 = scalar_lea.vmem %s10021_s0, %s5471_s12 }
  0x17   : > { %v616_v0 = vld [vmem:[%s6719_s15] sm:$0xff]  ;;  %v618_v1 = vld [vmem:[%s6719_s15 + $0x8] sm:$0xff]  ;;  %v620_v2 = vld [vmem:[%s6719_s15 + $0x10] sm:$0xff] }
  0x18   : > { %617 = vst [vmem:[%s6724_s16] sm:$0xff] %v616_v0  ;;  %v622_v3 = vld [vmem:[%s6719_s15 + $0x18] sm:$0xff]  ;;  %v624_v4 = vld [vmem:[%s6719_s15 + $0x20] sm:$0xff]  ;;  %v626_v5 = vld [vmem:[%s6719_s15 + $0x28] sm:$0xff] }
  0x19   : > { %619 = vst [vmem:[%s6724_s16 + $0x8] sm:$0xff] %v618_v1  ;;  %v628_v6 = vld [vmem:[%s6719_s15 + $0x30] sm:$0xff]  ;;  %v630_v7 = vld [vmem:[%s6719_s15 + $0x38] sm:$0xff]  ;;  %v632_v8 = vld [vmem:[%s6719_s15 + $0x40] sm:$0xff] }
  0x1a   : > { %621 = vst [vmem:[%s6724_s16 + $0x10] sm:$0xff] %v620_v2  ;;  %v634_v9 = vld [vmem:[%s6719_s15 + $0x48] sm:$0xff]  ;;  %v636_v10 = vld [vmem:[%s6719_s15 + $0x50] sm:$0xff]  ;;  %v638_v11 = vld [vmem:[%s6719_s15 + $0x58] sm:$0xff] }
  0x1b   : > { %623 = vst [vmem:[%s6724_s16 + $0x18] sm:$0xff] %v622_v3  ;;  %v640_v12 = vld [vmem:[%s6719_s15 + $0x60] sm:$0xff]  ;;  %v642_v13 = vld [vmem:[%s6719_s15 + $0x68] sm:$0xff]  ;;  %v644_v14 = vld [vmem:[%s6719_s15 + $0x70] sm:$0xff] }
  0x1c   : > { %625 = vst [vmem:[%s6724_s16 + $0x20] sm:$0xff] %v624_v4  ;;  %v646_v15 = vld [vmem:[%s6719_s15 + $0x78] sm:$0xff]  ;;  %v648_v16 = vld [vmem:[%s6719_s15 + $0x80] sm:$0xff]  ;;  %v650_v17 = vld [vmem:[%s6719_s15 + $0x88] sm:$0xff] }
  0x1d   : > { %627 = vst [vmem:[%s6724_s16 + $0x28] sm:$0xff] %v626_v5  ;;  %v652_v18 = vld [vmem:[%s6719_s15 + $0x90] sm:$0xff]  ;;  %v654_v19 = vld [vmem:[%s6719_s15 + $0x98] sm:$0xff]  ;;  %v656_v20 = vld [vmem:[%s6719_s15 + $0xa0] sm:$0xff] }
  0x1e   : > { %629 = vst [vmem:[%s6724_s16 + $0x30] sm:$0xff] %v628_v6  ;;  %v658_v21 = vld [vmem:[%s6719_s15 + $0xa8] sm:$0xff]  ;;  %v660_v22 = vld [vmem:[%s6719_s15 + $0xb0] sm:$0xff]  ;;  %v662_v23 = vld [vmem:[%s6719_s15 + $0xb8] sm:$0xff] }
  0x1f   : > { %631 = vst [vmem:[%s6724_s16 + $0x38] sm:$0xff] %v630_v7  ;;  %v664_v24 = vld [vmem:[%s6719_s15 + $0xc0] sm:$0xff]  ;;  %v666_v25 = vld [vmem:[%s6719_s15 + $0xc8] sm:$0xff]  ;;  %v668_v26 = vld [vmem:[%s6719_s15 + $0xd0] sm:$0xff] }
  0x20   : > { %633 = vst [vmem:[%s6724_s16 + $0x40] sm:$0xff] %v632_v8  ;;  %v670_v27 = vld [vmem:[%s6719_s15 + $0xd8] sm:$0xff]  ;;  %v672_v28 = vld [vmem:[%s6719_s15 + $0xe0] sm:$0xff]  ;;  %v674_v29 = vld [vmem:[%s6719_s15 + $0xe8] sm:$0xff] }
  0x21   : > { %635 = vst [vmem:[%s6724_s16 + $0x48] sm:$0xff] %v634_v9  ;;  %v676_v30 = vld [vmem:[%s6719_s15 + $0xf0] sm:$0xff]  ;;  %v678_v31 = vld [vmem:[%s6719_s15 + $0xf8] sm:$0xff]  ;;  %v680_v32 = vld [vmem:[%s6719_s15 + $0x100] sm:$0xff] }
  0x22   : > { %637 = vst [vmem:[%s6724_s16 + $0x50] sm:$0xff] %v636_v10  ;;  %v682_v33 = vld [vmem:[%s6719_s15 + $0x108] sm:$0xff]  ;;  %v684_v34 = vld [vmem:[%s6719_s15 + $0x110] sm:$0xff]  ;;  %v686_v35 = vld [vmem:[%s6719_s15 + $0x118] sm:$0xff] }
  0x23   : > { %639 = vst [vmem:[%s6724_s16 + $0x58] sm:$0xff] %v638_v11  ;;  %v688_v36 = vld [vmem:[%s6719_s15 + $0x120] sm:$0xff]  ;;  %v690_v37 = vld [vmem:[%s6719_s15 + $0x128] sm:$0xff]  ;;  %v692_v38 = vld [vmem:[%s6719_s15 + $0x130] sm:$0xff] }
  0x24   : > { %641 = vst [vmem:[%s6724_s16 + $0x60] sm:$0xff] %v640_v12  ;;  %v694_v39 = vld [vmem:[%s6719_s15 + $0x138] sm:$0xff]  ;;  %v696_v40 = vld [vmem:[%s6719_s15 + $0x140] sm:$0xff]  ;;  %v698_v41 = vld [vmem:[%s6719_s15 + $0x148] sm:$0xff] }
  0x25   : > { %643 = vst [vmem:[%s6724_s16 + $0x68] sm:$0xff] %v642_v13  ;;  %v700_v42 = vld [vmem:[%s6719_s15 + $0x150] sm:$0xff]  ;;  %v702_v43 = vld [vmem:[%s6719_s15 + $0x158] sm:$0xff]  ;;  %v704_v44 = vld [vmem:[%s6719_s15 + $0x160] sm:$0xff] }
  0x26   : > { %645 = vst [vmem:[%s6724_s16 + $0x70] sm:$0xff] %v644_v14  ;;  %v706_v45 = vld [vmem:[%s6719_s15 + $0x168] sm:$0xff]  ;;  %v708_v46 = vld [vmem:[%s6719_s15 + $0x170] sm:$0xff]  ;;  %v710_v47 = vld [vmem:[%s6719_s15 + $0x178] sm:$0xff] }
  0x27   : > { %647 = vst [vmem:[%s6724_s16 + $0x78] sm:$0xff] %v646_v15  ;;  %v712_v48 = vld [vmem:[%s6719_s15 + $0x180] sm:$0xff]  ;;  %v714_v49 = vld [vmem:[%s6719_s15 + $0x188] sm:$0xff]  ;;  %v716_v50 = vld [vmem:[%s6719_s15 + $0x190] sm:$0xff] }
  0x28   : > { %649 = vst [vmem:[%s6724_s16 + $0x80] sm:$0xff] %v648_v16  ;;  %v718_v51 = vld [vmem:[%s6719_s15 + $0x198] sm:$0xff]  ;;  %v720_v52 = vld [vmem:[%s6719_s15 + $0x1a0] sm:$0xff]  ;;  %v722_v53 = vld [vmem:[%s6719_s15 + $0x1a8] sm:$0xff] }
  0x29   : > { %651 = vst [vmem:[%s6724_s16 + $0x88] sm:$0xff] %v650_v17  ;;  %v724_v54 = vld [vmem:[%s6719_s15 + $0x1b0] sm:$0xff]  ;;  %v726_v55 = vld [vmem:[%s6719_s15 + $0x1b8] sm:$0xff]  ;;  %v728_v56 = vld [vmem:[%s6719_s15 + $0x1c0] sm:$0xff] }
  0x2a   : > { %653 = vst [vmem:[%s6724_s16 + $0x90] sm:$0xff] %v652_v18  ;;  %v730_v57 = vld [vmem:[%s6719_s15 + $0x1c8] sm:$0xff]  ;;  %v732_v58 = vld [vmem:[%s6719_s15 + $0x1d0] sm:$0xff]  ;;  %v734_v59 = vld [vmem:[%s6719_s15 + $0x1d8] sm:$0xff] }
  0x2b   : > { %655 = vst [vmem:[%s6724_s16 + $0x98] sm:$0xff] %v654_v19  ;;  %v736_v60 = vld [vmem:[%s6719_s15 + $0x1e0] sm:$0xff]  ;;  %v738_v61 = vld [vmem:[%s6719_s15 + $0x1e8] sm:$0xff]  ;;  %v740_v62 = vld [vmem:[%s6719_s15 + $0x1f0] sm:$0xff] }
  0x2c   : > { %657 = vst [vmem:[%s6724_s16 + $0xa0] sm:$0xff] %v656_v20  ;;  %v742_v63 = vld [vmem:[%s6719_s15 + $0x1f8] sm:$0xff]  ;;  %v744_v0 = vld [vmem:[%s6719_s15 + $0x400] sm:$0xff]  ;;  %v746_v1 = vld [vmem:[%s6719_s15 + $0x408] sm:$0xff] }
  0x2d   : > { %659 = vst [vmem:[%s6724_s16 + $0xa8] sm:$0xff] %v658_v21  ;;  %v748_v2 = vld [vmem:[%s6719_s15 + $0x410] sm:$0xff]  ;;  %v750_v3 = vld [vmem:[%s6719_s15 + $0x418] sm:$0xff]  ;;  %v752_v4 = vld [vmem:[%s6719_s15 + $0x420] sm:$0xff] }
  0x2e   : > { %661 = vst [vmem:[%s6724_s16 + $0xb0] sm:$0xff] %v660_v22  ;;  %v754_v5 = vld [vmem:[%s6719_s15 + $0x428] sm:$0xff]  ;;  %v756_v6 = vld [vmem:[%s6719_s15 + $0x430] sm:$0xff]  ;;  %v758_v7 = vld [vmem:[%s6719_s15 + $0x438] sm:$0xff] }
  0x2f   : > { %663 = vst [vmem:[%s6724_s16 + $0xb8] sm:$0xff] %v662_v23  ;;  %v760_v8 = vld [vmem:[%s6719_s15 + $0x440] sm:$0xff]  ;;  %v762_v9 = vld [vmem:[%s6719_s15 + $0x448] sm:$0xff]  ;;  %v764_v10 = vld [vmem:[%s6719_s15 + $0x450] sm:$0xff] }
  0x30   : > { %665 = vst [vmem:[%s6724_s16 + $0xc0] sm:$0xff] %v664_v24  ;;  %v766_v11 = vld [vmem:[%s6719_s15 + $0x458] sm:$0xff]  ;;  %v768_v12 = vld [vmem:[%s6719_s15 + $0x460] sm:$0xff]  ;;  %v770_v13 = vld [vmem:[%s6719_s15 + $0x468] sm:$0xff] }
  0x31   : > { %667 = vst [vmem:[%s6724_s16 + $0xc8] sm:$0xff] %v666_v25  ;;  %v772_v14 = vld [vmem:[%s6719_s15 + $0x470] sm:$0xff]  ;;  %v774_v15 = vld [vmem:[%s6719_s15 + $0x478] sm:$0xff]  ;;  %v776_v16 = vld [vmem:[%s6719_s15 + $0x480] sm:$0xff] }
  0x32   : > { %669 = vst [vmem:[%s6724_s16 + $0xd0] sm:$0xff] %v668_v26  ;;  %v778_v17 = vld [vmem:[%s6719_s15 + $0x488] sm:$0xff]  ;;  %v780_v18 = vld [vmem:[%s6719_s15 + $0x490] sm:$0xff]  ;;  %v782_v19 = vld [vmem:[%s6719_s15 + $0x498] sm:$0xff] }
  0x33   : > { %671 = vst [vmem:[%s6724_s16 + $0xd8] sm:$0xff] %v670_v27  ;;  %v784_v20 = vld [vmem:[%s6719_s15 + $0x4a0] sm:$0xff]  ;;  %v786_v21 = vld [vmem:[%s6719_s15 + $0x4a8] sm:$0xff]  ;;  %v788_v22 = vld [vmem:[%s6719_s15 + $0x4b0] sm:$0xff] }
  0x34   : > { %673 = vst [vmem:[%s6724_s16 + $0xe0] sm:$0xff] %v672_v28  ;;  %v790_v23 = vld [vmem:[%s6719_s15 + $0x4b8] sm:$0xff]  ;;  %v792_v24 = vld [vmem:[%s6719_s15 + $0x4c0] sm:$0xff]  ;;  %v794_v25 = vld [vmem:[%s6719_s15 + $0x4c8] sm:$0xff] }
  0x35   : > { %675 = vst [vmem:[%s6724_s16 + $0xe8] sm:$0xff] %v674_v29  ;;  %v796_v26 = vld [vmem:[%s6719_s15 + $0x4d0] sm:$0xff]  ;;  %v798_v27 = vld [vmem:[%s6719_s15 + $0x4d8] sm:$0xff]  ;;  %v800_v28 = vld [vmem:[%s6719_s15 + $0x4e0] sm:$0xff] }
  0x36   : > { %677 = vst [vmem:[%s6724_s16 + $0xf0] sm:$0xff] %v676_v30  ;;  %v802_v29 = vld [vmem:[%s6719_s15 + $0x4e8] sm:$0xff]  ;;  %v804_v30 = vld [vmem:[%s6719_s15 + $0x4f0] sm:$0xff] }
  0x37   : > { %679 = vst [vmem:[%s6724_s16 + $0xf8] sm:$0xff] %v678_v31  ;;  %v806_v31 = vld [vmem:[%s6719_s15 + $0x4f8] sm:$0xff] }
  0x38   : > { %681 = vst [vmem:[%s6724_s16 + $0x100] sm:$0xff] %v680_v32  ;;  %v808_v32 = vld [vmem:[%s6719_s15 + $0x500] sm:$0xff] }
  0x39   : > { %683 = vst [vmem:[%s6724_s16 + $0x108] sm:$0xff] %v682_v33  ;;  %v810_v33 = vld [vmem:[%s6719_s15 + $0x508] sm:$0xff] }
  0x3a   : > { %685 = vst [vmem:[%s6724_s16 + $0x110] sm:$0xff] %v684_v34  ;;  %v812_v34 = vld [vmem:[%s6719_s15 + $0x510] sm:$0xff] }
  0x3b   : > { %687 = vst [vmem:[%s6724_s16 + $0x118] sm:$0xff] %v686_v35  ;;  %v814_v35 = vld [vmem:[%s6719_s15 + $0x518] sm:$0xff] }
  0x3c   : > { %689 = vst [vmem:[%s6724_s16 + $0x120] sm:$0xff] %v688_v36  ;;  %v816_v36 = vld [vmem:[%s6719_s15 + $0x520] sm:$0xff] }
  0x3d   : > { %691 = vst [vmem:[%s6724_s16 + $0x128] sm:$0xff] %v690_v37  ;;  %v818_v37 = vld [vmem:[%s6719_s15 + $0x528] sm:$0xff] }
  0x3e   : > { %693 = vst [vmem:[%s6724_s16 + $0x130] sm:$0xff] %v692_v38  ;;  %v820_v38 = vld [vmem:[%s6719_s15 + $0x530] sm:$0xff] }
  0x3f   : > { %695 = vst [vmem:[%s6724_s16 + $0x138] sm:$0xff] %v694_v39  ;;  %v822_v39 = vld [vmem:[%s6719_s15 + $0x538] sm:$0xff] }
  0x40   : > { %697 = vst [vmem:[%s6724_s16 + $0x140] sm:$0xff] %v696_v40  ;;  %v824_v40 = vld [vmem:[%s6719_s15 + $0x540] sm:$0xff] }
  0x41   : > { %699 = vst [vmem:[%s6724_s16 + $0x148] sm:$0xff] %v698_v41  ;;  %v826_v41 = vld [vmem:[%s6719_s15 + $0x548] sm:$0xff] }
  0x42   : > { %701 = vst [vmem:[%s6724_s16 + $0x150] sm:$0xff] %v700_v42  ;;  %v828_v42 = vld [vmem:[%s6719_s15 + $0x550] sm:$0xff] }
  0x43   : > { %703 = vst [vmem:[%s6724_s16 + $0x158] sm:$0xff] %v702_v43  ;;  %v830_v43 = vld [vmem:[%s6719_s15 + $0x558] sm:$0xff] }
  0x44   : > { %705 = vst [vmem:[%s6724_s16 + $0x160] sm:$0xff] %v704_v44  ;;  %v832_v44 = vld [vmem:[%s6719_s15 + $0x560] sm:$0xff] }
  0x45   : > { %707 = vst [vmem:[%s6724_s16 + $0x168] sm:$0xff] %v706_v45  ;;  %v834_v45 = vld [vmem:[%s6719_s15 + $0x568] sm:$0xff] }
  0x46   : > { %709 = vst [vmem:[%s6724_s16 + $0x170] sm:$0xff] %v708_v46  ;;  %v836_v46 = vld [vmem:[%s6719_s15 + $0x570] sm:$0xff] }
  0x47   : > { %711 = vst [vmem:[%s6724_s16 + $0x178] sm:$0xff] %v710_v47  ;;  %v838_v47 = vld [vmem:[%s6719_s15 + $0x578] sm:$0xff] }
  0x48   : > { %713 = vst [vmem:[%s6724_s16 + $0x180] sm:$0xff] %v712_v48  ;;  %v840_v48 = vld [vmem:[%s6719_s15 + $0x580] sm:$0xff] }
  0x49   : > { %715 = vst [vmem:[%s6724_s16 + $0x188] sm:$0xff] %v714_v49  ;;  %v842_v49 = vld [vmem:[%s6719_s15 + $0x588] sm:$0xff] }
  0x4a   : > { %717 = vst [vmem:[%s6724_s16 + $0x190] sm:$0xff] %v716_v50  ;;  %v844_v50 = vld [vmem:[%s6719_s15 + $0x590] sm:$0xff] }
  0x4b   : > { %719 = vst [vmem:[%s6724_s16 + $0x198] sm:$0xff] %v718_v51  ;;  %v846_v51 = vld [vmem:[%s6719_s15 + $0x598] sm:$0xff] }
  0x4c   : > { %721 = vst [vmem:[%s6724_s16 + $0x1a0] sm:$0xff] %v720_v52  ;;  %v848_v52 = vld [vmem:[%s6719_s15 + $0x5a0] sm:$0xff] }
  0x4d   : > { %723 = vst [vmem:[%s6724_s16 + $0x1a8] sm:$0xff] %v722_v53  ;;  %v850_v53 = vld [vmem:[%s6719_s15 + $0x5a8] sm:$0xff] }
  0x4e   : > { %725 = vst [vmem:[%s6724_s16 + $0x1b0] sm:$0xff] %v724_v54  ;;  %v852_v54 = vld [vmem:[%s6719_s15 + $0x5b0] sm:$0xff] }
  0x4f   : > { %727 = vst [vmem:[%s6724_s16 + $0x1b8] sm:$0xff] %v726_v55  ;;  %v854_v55 = vld [vmem:[%s6719_s15 + $0x5b8] sm:$0xff] }
  0x50   : > { %729 = vst [vmem:[%s6724_s16 + $0x1c0] sm:$0xff] %v728_v56  ;;  %v856_v56 = vld [vmem:[%s6719_s15 + $0x5c0] sm:$0xff] }
  0x51   : > { %731 = vst [vmem:[%s6724_s16 + $0x1c8] sm:$0xff] %v730_v57  ;;  %v858_v57 = vld [vmem:[%s6719_s15 + $0x5c8] sm:$0xff] }
  0x52   : > { %733 = vst [vmem:[%s6724_s16 + $0x1d0] sm:$0xff] %v732_v58  ;;  %v860_v58 = vld [vmem:[%s6719_s15 + $0x5d0] sm:$0xff] }
  0x53   : > { %735 = vst [vmem:[%s6724_s16 + $0x1d8] sm:$0xff] %v734_v59  ;;  %v862_v59 = vld [vmem:[%s6719_s15 + $0x5d8] sm:$0xff] }
  0x54   : > { %737 = vst [vmem:[%s6724_s16 + $0x1e0] sm:$0xff] %v736_v60  ;;  %v864_v60 = vld [vmem:[%s6719_s15 + $0x5e0] sm:$0xff] }
  0x55   : > { %739 = vst [vmem:[%s6724_s16 + $0x1e8] sm:$0xff] %v738_v61  ;;  %v866_v61 = vld [vmem:[%s6719_s15 + $0x5e8] sm:$0xff] }
  0x56   : > { %741 = vst [vmem:[%s6724_s16 + $0x1f0] sm:$0xff] %v740_v62  ;;  %v868_v62 = vld [vmem:[%s6719_s15 + $0x5f0] sm:$0xff] }
  0x57   : > { %743 = vst [vmem:[%s6724_s16 + $0x1f8] sm:$0xff] %v742_v63  ;;  %v870_v63 = vld [vmem:[%s6719_s15 + $0x5f8] sm:$0xff] }
  0x58   : > { %745 = vst [vmem:[%s6724_s16 + $0x200] sm:$0xff] %v744_v0  ;;  %v872_v0 = vld [vmem:[%s6719_s15 + $0x800] sm:$0xff] }
  0x59   : > { %747 = vst [vmem:[%s6724_s16 + $0x208] sm:$0xff] %v746_v1  ;;  %v874_v1 = vld [vmem:[%s6719_s15 + $0x808] sm:$0xff] }
  0x5a   : > { %749 = vst [vmem:[%s6724_s16 + $0x210] sm:$0xff] %v748_v2  ;;  %v876_v2 = vld [vmem:[%s6719_s15 + $0x810] sm:$0xff] }
  0x5b   : > { %751 = vst [vmem:[%s6724_s16 + $0x218] sm:$0xff] %v750_v3  ;;  %v878_v3 = vld [vmem:[%s6719_s15 + $0x818] sm:$0xff] }
  0x5c   : > { %753 = vst [vmem:[%s6724_s16 + $0x220] sm:$0xff] %v752_v4  ;;  %v880_v4 = vld [vmem:[%s6719_s15 + $0x820] sm:$0xff] }
  0x5d   : > { %755 = vst [vmem:[%s6724_s16 + $0x228] sm:$0xff] %v754_v5  ;;  %v882_v5 = vld [vmem:[%s6719_s15 + $0x828] sm:$0xff] }
  0x5e   : > { %757 = vst [vmem:[%s6724_s16 + $0x230] sm:$0xff] %v756_v6  ;;  %v884_v6 = vld [vmem:[%s6719_s15 + $0x830] sm:$0xff] }
  0x5f   : > { %759 = vst [vmem:[%s6724_s16 + $0x238] sm:$0xff] %v758_v7  ;;  %v886_v7 = vld [vmem:[%s6719_s15 + $0x838] sm:$0xff] }
  0x60   : > { %761 = vst [vmem:[%s6724_s16 + $0x240] sm:$0xff] %v760_v8  ;;  %v888_v8 = vld [vmem:[%s6719_s15 + $0x840] sm:$0xff] }
  0x61   : > { %763 = vst [vmem:[%s6724_s16 + $0x248] sm:$0xff] %v762_v9  ;;  %v890_v9 = vld [vmem:[%s6719_s15 + $0x848] sm:$0xff] }
  0x62   : > { %765 = vst [vmem:[%s6724_s16 + $0x250] sm:$0xff] %v764_v10  ;;  %v892_v10 = vld [vmem:[%s6719_s15 + $0x850] sm:$0xff] }
  0x63   : > { %767 = vst [vmem:[%s6724_s16 + $0x258] sm:$0xff] %v766_v11  ;;  %v894_v11 = vld [vmem:[%s6719_s15 + $0x858] sm:$0xff] }
  0x64   : > { %769 = vst [vmem:[%s6724_s16 + $0x260] sm:$0xff] %v768_v12  ;;  %v896_v12 = vld [vmem:[%s6719_s15 + $0x860] sm:$0xff] }
  0x65   : > { %771 = vst [vmem:[%s6724_s16 + $0x268] sm:$0xff] %v770_v13  ;;  %v898_v13 = vld [vmem:[%s6719_s15 + $0x868] sm:$0xff] }
  0x66   : > { %773 = vst [vmem:[%s6724_s16 + $0x270] sm:$0xff] %v772_v14  ;;  %v900_v14 = vld [vmem:[%s6719_s15 + $0x870] sm:$0xff] }
  0x67   : > { %775 = vst [vmem:[%s6724_s16 + $0x278] sm:$0xff] %v774_v15  ;;  %v902_v15 = vld [vmem:[%s6719_s15 + $0x878] sm:$0xff] }
  0x68   : > { %777 = vst [vmem:[%s6724_s16 + $0x280] sm:$0xff] %v776_v16  ;;  %v904_v16 = vld [vmem:[%s6719_s15 + $0x880] sm:$0xff] }
  0x69   : > { %779 = vst [vmem:[%s6724_s16 + $0x288] sm:$0xff] %v778_v17  ;;  %v906_v17 = vld [vmem:[%s6719_s15 + $0x888] sm:$0xff] }
  0x6a   : > { %781 = vst [vmem:[%s6724_s16 + $0x290] sm:$0xff] %v780_v18  ;;  %v908_v18 = vld [vmem:[%s6719_s15 + $0x890] sm:$0xff] }
  0x6b   : > { %783 = vst [vmem:[%s6724_s16 + $0x298] sm:$0xff] %v782_v19  ;;  %v910_v19 = vld [vmem:[%s6719_s15 + $0x898] sm:$0xff] }
  0x6c   : > { %785 = vst [vmem:[%s6724_s16 + $0x2a0] sm:$0xff] %v784_v20  ;;  %v912_v20 = vld [vmem:[%s6719_s15 + $0x8a0] sm:$0xff] }
  0x6d   : > { %787 = vst [vmem:[%s6724_s16 + $0x2a8] sm:$0xff] %v786_v21  ;;  %v914_v21 = vld [vmem:[%s6719_s15 + $0x8a8] sm:$0xff] }
  0x6e   : > { %789 = vst [vmem:[%s6724_s16 + $0x2b0] sm:$0xff] %v788_v22  ;;  %v916_v22 = vld [vmem:[%s6719_s15 + $0x8b0] sm:$0xff] }
  0x6f   : > { %791 = vst [vmem:[%s6724_s16 + $0x2b8] sm:$0xff] %v790_v23  ;;  %v918_v23 = vld [vmem:[%s6719_s15 + $0x8b8] sm:$0xff] }
  0x70   : > { %793 = vst [vmem:[%s6724_s16 + $0x2c0] sm:$0xff] %v792_v24  ;;  %v920_v24 = vld [vmem:[%s6719_s15 + $0x8c0] sm:$0xff] }
  0x71   : > { %795 = vst [vmem:[%s6724_s16 + $0x2c8] sm:$0xff] %v794_v25  ;;  %v922_v25 = vld [vmem:[%s6719_s15 + $0x8c8] sm:$0xff] }
  0x72   : > { %797 = vst [vmem:[%s6724_s16 + $0x2d0] sm:$0xff] %v796_v26  ;;  %v924_v26 = vld [vmem:[%s6719_s15 + $0x8d0] sm:$0xff] }
  0x73   : > { %799 = vst [vmem:[%s6724_s16 + $0x2d8] sm:$0xff] %v798_v27  ;;  %v926_v27 = vld [vmem:[%s6719_s15 + $0x8d8] sm:$0xff] }
  0x74   : > { %801 = vst [vmem:[%s6724_s16 + $0x2e0] sm:$0xff] %v800_v28  ;;  %v928_v28 = vld [vmem:[%s6719_s15 + $0x8e0] sm:$0xff] }
  0x75   : > { %803 = vst [vmem:[%s6724_s16 + $0x2e8] sm:$0xff] %v802_v29  ;;  %v930_v29 = vld [vmem:[%s6719_s15 + $0x8e8] sm:$0xff] }
  0x76   : > { %805 = vst [vmem:[%s6724_s16 + $0x2f0] sm:$0xff] %v804_v30  ;;  %v932_v30 = vld [vmem:[%s6719_s15 + $0x8f0] sm:$0xff] }
  0x77   : > { %807 = vst [vmem:[%s6724_s16 + $0x2f8] sm:$0xff] %v806_v31  ;;  %v934_v31 = vld [vmem:[%s6719_s15 + $0x8f8] sm:$0xff] }
  0x78   : > { %809 = vst [vmem:[%s6724_s16 + $0x300] sm:$0xff] %v808_v32  ;;  %v936_v32 = vld [vmem:[%s6719_s15 + $0x900] sm:$0xff] }
  0x79   : > { %811 = vst [vmem:[%s6724_s16 + $0x308] sm:$0xff] %v810_v33  ;;  %v938_v33 = vld [vmem:[%s6719_s15 + $0x908] sm:$0xff] }
  0x7a   : > { %813 = vst [vmem:[%s6724_s16 + $0x310] sm:$0xff] %v812_v34  ;;  %v940_v34 = vld [vmem:[%s6719_s15 + $0x910] sm:$0xff] }
  0x7b   : > { %815 = vst [vmem:[%s6724_s16 + $0x318] sm:$0xff] %v814_v35  ;;  %v942_v35 = vld [vmem:[%s6719_s15 + $0x918] sm:$0xff] }
  0x7c   : > { %817 = vst [vmem:[%s6724_s16 + $0x320] sm:$0xff] %v816_v36  ;;  %v944_v36 = vld [vmem:[%s6719_s15 + $0x920] sm:$0xff] }
  0x7d   : > { %819 = vst [vmem:[%s6724_s16 + $0x328] sm:$0xff] %v818_v37  ;;  %v946_v37 = vld [vmem:[%s6719_s15 + $0x928] sm:$0xff] }
  0x7e   : > { %821 = vst [vmem:[%s6724_s16 + $0x330] sm:$0xff] %v820_v38  ;;  %v948_v38 = vld [vmem:[%s6719_s15 + $0x930] sm:$0xff] }
  0x7f   : > { %823 = vst [vmem:[%s6724_s16 + $0x338] sm:$0xff] %v822_v39  ;;  %v950_v39 = vld [vmem:[%s6719_s15 + $0x938] sm:$0xff] }
  0x80   : > { %825 = vst [vmem:[%s6724_s16 + $0x340] sm:$0xff] %v824_v40  ;;  %v952_v40 = vld [vmem:[%s6719_s15 + $0x940] sm:$0xff] }
  0x81   : > { %827 = vst [vmem:[%s6724_s16 + $0x348] sm:$0xff] %v826_v41  ;;  %v954_v41 = vld [vmem:[%s6719_s15 + $0x948] sm:$0xff] }
  0x82   : > { %829 = vst [vmem:[%s6724_s16 + $0x350] sm:$0xff] %v828_v42  ;;  %v956_v42 = vld [vmem:[%s6719_s15 + $0x950] sm:$0xff] }
  0x83   : > { %831 = vst [vmem:[%s6724_s16 + $0x358] sm:$0xff] %v830_v43  ;;  %v958_v43 = vld [vmem:[%s6719_s15 + $0x958] sm:$0xff] }
  0x84   : > { %833 = vst [vmem:[%s6724_s16 + $0x360] sm:$0xff] %v832_v44  ;;  %v960_v44 = vld [vmem:[%s6719_s15 + $0x960] sm:$0xff] }
  0x85   : > { %835 = vst [vmem:[%s6724_s16 + $0x368] sm:$0xff] %v834_v45  ;;  %v962_v45 = vld [vmem:[%s6719_s15 + $0x968] sm:$0xff] }
  0x86   : > { %837 = vst [vmem:[%s6724_s16 + $0x370] sm:$0xff] %v836_v46  ;;  %v964_v46 = vld [vmem:[%s6719_s15 + $0x970] sm:$0xff] }
  0x87   : > { %839 = vst [vmem:[%s6724_s16 + $0x378] sm:$0xff] %v838_v47  ;;  %v966_v47 = vld [vmem:[%s6719_s15 + $0x978] sm:$0xff] }
  0x88   : > { %841 = vst [vmem:[%s6724_s16 + $0x380] sm:$0xff] %v840_v48  ;;  %v968_v48 = vld [vmem:[%s6719_s15 + $0x980] sm:$0xff] }
  0x89   : > { %843 = vst [vmem:[%s6724_s16 + $0x388] sm:$0xff] %v842_v49  ;;  %v970_v49 = vld [vmem:[%s6719_s15 + $0x988] sm:$0xff] }
  0x8a   : > { %845 = vst [vmem:[%s6724_s16 + $0x390] sm:$0xff] %v844_v50  ;;  %v972_v50 = vld [vmem:[%s6719_s15 + $0x990] sm:$0xff] }
  0x8b   : > { %847 = vst [vmem:[%s6724_s16 + $0x398] sm:$0xff] %v846_v51  ;;  %v974_v51 = vld [vmem:[%s6719_s15 + $0x998] sm:$0xff] }
  0x8c   : > { %849 = vst [vmem:[%s6724_s16 + $0x3a0] sm:$0xff] %v848_v52  ;;  %v976_v52 = vld [vmem:[%s6719_s15 + $0x9a0] sm:$0xff] }
  0x8d   : > { %851 = vst [vmem:[%s6724_s16 + $0x3a8] sm:$0xff] %v850_v53  ;;  %v978_v53 = vld [vmem:[%s6719_s15 + $0x9a8] sm:$0xff] }
  0x8e   : > { %853 = vst [vmem:[%s6724_s16 + $0x3b0] sm:$0xff] %v852_v54  ;;  %v980_v54 = vld [vmem:[%s6719_s15 + $0x9b0] sm:$0xff] }
  0x8f   : > { %855 = vst [vmem:[%s6724_s16 + $0x3b8] sm:$0xff] %v854_v55  ;;  %v982_v55 = vld [vmem:[%s6719_s15 + $0x9b8] sm:$0xff] }
  0x90   : > { %857 = vst [vmem:[%s6724_s16 + $0x3c0] sm:$0xff] %v856_v56  ;;  %v984_v56 = vld [vmem:[%s6719_s15 + $0x9c0] sm:$0xff] }
  0x91   : > { %859 = vst [vmem:[%s6724_s16 + $0x3c8] sm:$0xff] %v858_v57  ;;  %v986_v57 = vld [vmem:[%s6719_s15 + $0x9c8] sm:$0xff] }
  0x92   : > { %861 = vst [vmem:[%s6724_s16 + $0x3d0] sm:$0xff] %v860_v58  ;;  %v988_v58 = vld [vmem:[%s6719_s15 + $0x9d0] sm:$0xff] }
  0x93   : > { %863 = vst [vmem:[%s6724_s16 + $0x3d8] sm:$0xff] %v862_v59  ;;  %v990_v59 = vld [vmem:[%s6719_s15 + $0x9d8] sm:$0xff] }
  0x94   : > { %865 = vst [vmem:[%s6724_s16 + $0x3e0] sm:$0xff] %v864_v60  ;;  %v992_v60 = vld [vmem:[%s6719_s15 + $0x9e0] sm:$0xff] }
  0x95   : > { %867 = vst [vmem:[%s6724_s16 + $0x3e8] sm:$0xff] %v866_v61  ;;  %v994_v61 = vld [vmem:[%s6719_s15 + $0x9e8] sm:$0xff] }
  0x96   : > { %869 = vst [vmem:[%s6724_s16 + $0x3f0] sm:$0xff] %v868_v62  ;;  %v996_v62 = vld [vmem:[%s6719_s15 + $0x9f0] sm:$0xff] }
  0x97   : > { %871 = vst [vmem:[%s6724_s16 + $0x3f8] sm:$0xff] %v870_v63  ;;  %v998_v63 = vld [vmem:[%s6719_s15 + $0x9f8] sm:$0xff] }
  0x98   : > { %873 = vst [vmem:[%s6724_s16 + $0x400] sm:$0xff] %v872_v0 }
  0x99   : > { %875 = vst [vmem:[%s6724_s16 + $0x408] sm:$0xff] %v874_v1 }
  0x9a   : > { %877 = vst [vmem:[%s6724_s16 + $0x410] sm:$0xff] %v876_v2 }
  0x9b   : > { %879 = vst [vmem:[%s6724_s16 + $0x418] sm:$0xff] %v878_v3 }
  0x9c   : > { %881 = vst [vmem:[%s6724_s16 + $0x420] sm:$0xff] %v880_v4 }
  0x9d   : > { %883 = vst [vmem:[%s6724_s16 + $0x428] sm:$0xff] %v882_v5 }
  0x9e   : > { %885 = vst [vmem:[%s6724_s16 + $0x430] sm:$0xff] %v884_v6 }
  0x9f   : > { %887 = vst [vmem:[%s6724_s16 + $0x438] sm:$0xff] %v886_v7 }
  0xa0   : > { %889 = vst [vmem:[%s6724_s16 + $0x440] sm:$0xff] %v888_v8 }
  0xa1   : > { %891 = vst [vmem:[%s6724_s16 + $0x448] sm:$0xff] %v890_v9 }
  0xa2   : > { %893 = vst [vmem:[%s6724_s16 + $0x450] sm:$0xff] %v892_v10 }
  0xa3   : > { %895 = vst [vmem:[%s6724_s16 + $0x458] sm:$0xff] %v894_v11 }
  0xa4   : > { %897 = vst [vmem:[%s6724_s16 + $0x460] sm:$0xff] %v896_v12 }
  0xa5   : > { %899 = vst [vmem:[%s6724_s16 + $0x468] sm:$0xff] %v898_v13 }
  0xa6   : > { %901 = vst [vmem:[%s6724_s16 + $0x470] sm:$0xff] %v900_v14 }
  0xa7   : > { %903 = vst [vmem:[%s6724_s16 + $0x478] sm:$0xff] %v902_v15 }
  0xa8   : > { %905 = vst [vmem:[%s6724_s16 + $0x480] sm:$0xff] %v904_v16 }
  0xa9   : > { %907 = vst [vmem:[%s6724_s16 + $0x488] sm:$0xff] %v906_v17 }
  0xaa   : > { %909 = vst [vmem:[%s6724_s16 + $0x490] sm:$0xff] %v908_v18 }
  0xab   : > { %911 = vst [vmem:[%s6724_s16 + $0x498] sm:$0xff] %v910_v19 }
  0xac   : > { %913 = vst [vmem:[%s6724_s16 + $0x4a0] sm:$0xff] %v912_v20 }
  0xad   : > { %915 = vst [vmem:[%s6724_s16 + $0x4a8] sm:$0xff] %v914_v21 }
  0xae   : > { %917 = vst [vmem:[%s6724_s16 + $0x4b0] sm:$0xff] %v916_v22 }
  0xaf   : > { %919 = vst [vmem:[%s6724_s16 + $0x4b8] sm:$0xff] %v918_v23 }
  0xb0   : > { %921 = vst [vmem:[%s6724_s16 + $0x4c0] sm:$0xff] %v920_v24 }
  0xb1   : > { %923 = vst [vmem:[%s6724_s16 + $0x4c8] sm:$0xff] %v922_v25 }
  0xb2   : > { %925 = vst [vmem:[%s6724_s16 + $0x4d0] sm:$0xff] %v924_v26 }
  0xb3   : > { %927 = vst [vmem:[%s6724_s16 + $0x4d8] sm:$0xff] %v926_v27 }
  0xb4   : > { %929 = vst [vmem:[%s6724_s16 + $0x4e0] sm:$0xff] %v928_v28 }
  0xb5   : > { %931 = vst [vmem:[%s6724_s16 + $0x4e8] sm:$0xff] %v930_v29 }
  0xb6   : > { %933 = vst [vmem:[%s6724_s16 + $0x4f0] sm:$0xff] %v932_v30 }
  0xb7   : > { %935 = vst [vmem:[%s6724_s16 + $0x4f8] sm:$0xff] %v934_v31 }
  0xb8   : > { %937 = vst [vmem:[%s6724_s16 + $0x500] sm:$0xff] %v936_v32 }
  0xb9   : > { %939 = vst [vmem:[%s6724_s16 + $0x508] sm:$0xff] %v938_v33 }
  0xba   : > { %941 = vst [vmem:[%s6724_s16 + $0x510] sm:$0xff] %v940_v34 }
  0xbb   : > { %943 = vst [vmem:[%s6724_s16 + $0x518] sm:$0xff] %v942_v35 }
  0xbc   : > { %945 = vst [vmem:[%s6724_s16 + $0x520] sm:$0xff] %v944_v36 }
  0xbd   : > { %947 = vst [vmem:[%s6724_s16 + $0x528] sm:$0xff] %v946_v37 }
  0xbe   : > { %949 = vst [vmem:[%s6724_s16 + $0x530] sm:$0xff] %v948_v38 }
  0xbf   : > { %951 = vst [vmem:[%s6724_s16 + $0x538] sm:$0xff] %v950_v39 }
  0xc0   : > { %953 = vst [vmem:[%s6724_s16 + $0x540] sm:$0xff] %v952_v40 }
  0xc1   : > { %955 = vst [vmem:[%s6724_s16 + $0x548] sm:$0xff] %v954_v41 }
  0xc2   : > { %957 = vst [vmem:[%s6724_s16 + $0x550] sm:$0xff] %v956_v42 }
  0xc3   : > { %959 = vst [vmem:[%s6724_s16 + $0x558] sm:$0xff] %v958_v43 }
  0xc4   : > { %961 = vst [vmem:[%s6724_s16 + $0x560] sm:$0xff] %v960_v44 }
  0xc5   : > { %963 = vst [vmem:[%s6724_s16 + $0x568] sm:$0xff] %v962_v45 }
  0xc6   : > { %965 = vst [vmem:[%s6724_s16 + $0x570] sm:$0xff] %v964_v46 }
  0xc7   : > { %967 = vst [vmem:[%s6724_s16 + $0x578] sm:$0xff] %v966_v47 }
  0xc8   : > { %969 = vst [vmem:[%s6724_s16 + $0x580] sm:$0xff] %v968_v48 }
  0xc9   : > { %971 = vst [vmem:[%s6724_s16 + $0x588] sm:$0xff] %v970_v49 }
  0xca   : > { %973 = vst [vmem:[%s6724_s16 + $0x590] sm:$0xff] %v972_v50 }
  0xcb   : > { %975 = vst [vmem:[%s6724_s16 + $0x598] sm:$0xff] %v974_v51 }
  0xcc   : > { %977 = vst [vmem:[%s6724_s16 + $0x5a0] sm:$0xff] %v976_v52 }
  0xcd   : > { %979 = vst [vmem:[%s6724_s16 + $0x5a8] sm:$0xff] %v978_v53 }
  0xce   : > { %981 = vst [vmem:[%s6724_s16 + $0x5b0] sm:$0xff] %v980_v54 }
  0xcf   : > { %983 = vst [vmem:[%s6724_s16 + $0x5b8] sm:$0xff] %v982_v55 }
  0xd0   : > { %985 = vst [vmem:[%s6724_s16 + $0x5c0] sm:$0xff] %v984_v56 }
  0xd1   : > { %987 = vst [vmem:[%s6724_s16 + $0x5c8] sm:$0xff] %v986_v57 }
  0xd2   : > { %989 = vst [vmem:[%s6724_s16 + $0x5d0] sm:$0xff] %v988_v58 }
  0xd3   : > { %991 = vst [vmem:[%s6724_s16 + $0x5d8] sm:$0xff] %v990_v59 }
  0xd4   : > { %993 = vst [vmem:[%s6724_s16 + $0x5e0] sm:$0xff] %v992_v60 }
  0xd5   : > { %995 = vst [vmem:[%s6724_s16 + $0x5e8] sm:$0xff] %v994_v61 }
  0xd6   : > { %997 = vst [vmem:[%s6724_s16 + $0x5f0] sm:$0xff] %v996_v62 }
  0xd7   : > { %999 = vst [vmem:[%s6724_s16 + $0x5f8] sm:$0xff] %v998_v63 }
  0xd8 PF: > { %p5472_p7 = scmp.ge.s32.totalorder %s6627_s24, 1  ;;  %p1004_p8 = scmp.lt.s32.totalorder %s6627_s24, 5 }
  0xda   : > { %p1005_p9 = pnand %p5472_p7, %p1004_p8 }
  0xdb   : > { %s1011_s30 = sand.u32 (!%p1005_p9), 1, %s6603_s18   ;;  %s5473_s28 = sshll.u32 (!%p1005_p9), %s6611_s20, 6 }
  0xdc   : > { %1008 = sbr.rel (%p1005_p9) target bundleno = 1123 (0x463), region = 74  ;;  %p1044_p10 = scmp.lt.s32.totalorder (!%p1005_p9), %s6615_s21, 1 }
  0xdd   : > { %s5992_s7 = smul.u32 (!%p1005_p9), 1536, %s1011_s30  ;;  %p7570_p11 = scmp.lt.s32.totalorder (!%p1005_p9), %s5473_s28, 127 }
  0xdf   : > { %s7122_s12 = scalar_lea.vmem (!%p1005_p9), [#allocation2], %s5992_s7 }
  0xe1   : > { %v1120_v0 = vld [vmem:[%s10022_s1 + $0x18] sm:$0xff]  ;;  %v1119_v1 = vld [vmem:[%s10022_s1 + $0x10] sm:$0xff]  ;;  %v1118_v2 = vld [vmem:[%s10022_s1 + $0x8] sm:$0xff]  ;;  %vm1186_vm0 = vcmask 261120   ;;  %vm3495_vm2 = vcmask 523264   ;;  %s10149_s21 = smov (!%p1044_p10, %s6615_s21), 1 }
  0xe2   : > { %2258 = vmatpush.msra.mxu2 %v1120_v0  ;;  %1391 = vmatpush.msra.mxu0 %v1120_v0  ;;  %v1117_v3 = vld [vmem:[%s10022_s1] sm:$0xff]  ;;  %v5669_v7 = vld [vmem:[%s7122_s12 + $0x408] sm:$0xff]  ;;  %v5670_v10 = vld [vmem:[%s7122_s12 + $0x410] sm:$0xff]  ;;  %s10151_s28 = smov (!%p7570_p11, %s5473_s28), 127  ;;  %s5474_s30 = sshll.u32 %s10149_s21, 7 }
  0xe3   : > { %1792 = vmatpush.msra.mxu1 %v1120_v0  ;;  %v5668_v4 = vld [vmem:[%s7122_s12 + $0x400] sm:$0xff]  ;;  %v5477_v8 = vld [vmem:[%s7122_s12 + $0x208] sm:$0xff]  ;;  %v5478_v11 = vld [vmem:[%s7122_s12 + $0x210] sm:$0xff]  ;;  %s7630_s20 = sadd.s32 %s5474_s30, %s10151_s28 }
  0xe4   : > { %2259 = vmatpush.msra.mxu2 %v1119_v1  ;;  %1392 = vmatpush.msra.mxu0 %v1119_v1  ;;  %v5476_v5 = vld [vmem:[%s7122_s12 + $0x200] sm:$0xff]  ;;  %v1054_v9 = vld [vmem:[%s7122_s12 + $0x8] sm:$0xff]  ;;  %v1055_v12 = vld [vmem:[%s7122_s12 + $0x10] sm:$0xff]  ;;  %s5475_s21 = sshll.u32 %s7630_s20, 3 }
  0xe5   : > { %1793 = vmatpush.msra.mxu1 %v1119_v1  ;;  %v1053_v6 = vld [vmem:[%s7122_s12] sm:$0xff]  ;;  %v5671_v13 = vld [vmem:[%s7122_s12 + $0x418] sm:$0xff]  ;;  %v5673_v19 = vld [vmem:[%s7122_s12 + $0x428] sm:$0xff]  ;;  %s7682_s9 = scalar_lea.vmem %s10026_s5, %s5475_s21 }
  0xe6   : > { %2260 = vmatpush.msra.mxu2 %v1118_v2  ;;  %1393 = vmatpush.msra.mxu0 %v1118_v2  ;;  %v5479_v14 = vld [vmem:[%s7122_s12 + $0x218] sm:$0xff]  ;;  %v5672_v16 = vld [vmem:[%s7122_s12 + $0x420] sm:$0xff]  ;;  %v5481_v20 = vld [vmem:[%s7122_s12 + $0x228] sm:$0xff] }
  0xe7   : > { %1794 = vmatpush.msra.mxu1 %v1118_v2  ;;  %v1056_v15 = vld [vmem:[%s7122_s12 + $0x18] sm:$0xff]  ;;  %v5480_v17 = vld [vmem:[%s7122_s12 + $0x220] sm:$0xff]  ;;  %v1058_v21 = vld [vmem:[%s7122_s12 + $0x28] sm:$0xff] }
  0xe8   : > { %2261 = vmatpush.msra.mxu2 %v1117_v3  ;;  %1394 = vmatpush.msra.mxu0 %v1117_v3  ;;  %v1057_v18 = vld [vmem:[%s7122_s12 + $0x20] sm:$0xff]  ;;  %v5674_v22 = vld [vmem:[%s7122_s12 + $0x430] sm:$0xff]  ;;  %v5675_v25 = vld [vmem:[%s7122_s12 + $0x438] sm:$0xff] }
  0xe9   : > { %5732 = vmatmul.msk.f32.vlgmr.msra.gmra.mxu2 %vm1186_vm0, %v5668_v4  ;;  %1795 = vmatpush.msra.mxu1 %v1117_v3  ;;  %v5482_v23 = vld [vmem:[%s7122_s12 + $0x230] sm:$0xff]  ;;  %v5483_v26 = vld [vmem:[%s7122_s12 + $0x238] sm:$0xff]  ;;  %v5676_v28 = vld [vmem:[%s7122_s12 + $0x440] sm:$0xff] }
  0xea   : > { %5540 = vmatmul.msk.f32.vlgmr.msra.gmra.mxu0 %vm1186_vm0, %v5476_v5  ;;  %5604 = vmatmul.msk.f32.vlgmr.msra.gmra.mxu1 %vm1186_vm0, %v1053_v6  ;;  %v1059_v24 = vld [vmem:[%s7122_s12 + $0x30] sm:$0xff]  ;;  %v1060_v27 = vld [vmem:[%s7122_s12 + $0x38] sm:$0xff]  ;;  %v5484_v29 = vld [vmem:[%s7122_s12 + $0x240] sm:$0xff] }
  0xeb   : > { %v1061_v30 = vld [vmem:[%s7122_s12 + $0x40] sm:$0xff]  ;;  %v5677_v31 = vld [vmem:[%s7122_s12 + $0x448] sm:$0xff]  ;;  %v5678_v34 = vld [vmem:[%s7122_s12 + $0x450] sm:$0xff] }
  0xec   : > { %v5485_v32 = vld [vmem:[%s7122_s12 + $0x248] sm:$0xff]  ;;  %v5486_v35 = vld [vmem:[%s7122_s12 + $0x250] sm:$0xff]  ;;  %v5679_v37 = vld [vmem:[%s7122_s12 + $0x458] sm:$0xff] }
  0xed   : > { %v1062_v33 = vld [vmem:[%s7122_s12 + $0x48] sm:$0xff]  ;;  %v1063_v36 = vld [vmem:[%s7122_s12 + $0x50] sm:$0xff]  ;;  %v5487_v38 = vld [vmem:[%s7122_s12 + $0x258] sm:$0xff] }
  0xee   : > { %v1064_v39 = vld [vmem:[%s7122_s12 + $0x58] sm:$0xff]  ;;  %v5680_v40 = vld [vmem:[%s7122_s12 + $0x460] sm:$0xff]  ;;  %v5681_v43 = vld [vmem:[%s7122_s12 + $0x468] sm:$0xff] }
  0xef   : > { %v5488_v41 = vld [vmem:[%s7122_s12 + $0x260] sm:$0xff]  ;;  %v5489_v44 = vld [vmem:[%s7122_s12 + $0x268] sm:$0xff]  ;;  %v5682_v46 = vld [vmem:[%s7122_s12 + $0x470] sm:$0xff] }
  0xf0   : > { %v1065_v42 = vld [vmem:[%s7122_s12 + $0x60] sm:$0xff]  ;;  %v1066_v45 = vld [vmem:[%s7122_s12 + $0x68] sm:$0xff]  ;;  %v5490_v47 = vld [vmem:[%s7122_s12 + $0x270] sm:$0xff] }
  0xf1   : > { %5733 = vmatmul.msk.f32.gmra.mxu2 %vm1186_vm0, %v5669_v7  ;;  %v1067_v48 = vld [vmem:[%s7122_s12 + $0x70] sm:$0xff]  ;;  %v3490_v49 = vld [vmem:[%s10024_s3 + $0x38] sm:$0xff]  ;;  %v3488_v51 = vld [vmem:[%s10024_s3 + $0x28] sm:$0xff] }
  0xf2   : > { %5541 = vmatmul.msk.f32.gmra.mxu0 %vm1186_vm0, %v5477_v8  ;;  %5605 = vmatmul.msk.f32.gmra.mxu1 %vm1186_vm0, %v1054_v9  ;;  %v3489_v50 = vld [vmem:[%s10024_s3 + $0x30] sm:$0xff]  ;;  %v5683_v52 = vld [vmem:[%s7122_s12 + $0x478] sm:$0xff]  ;;  %v3487_v55 = vld [vmem:[%s10024_s3 + $0x20] sm:$0xff] }
  0xf3   : > { %3696 = vmatpush.msra.mxu3 %v3490_v49  ;;  %v5491_v53 = vld [vmem:[%s7122_s12 + $0x278] sm:$0xff]  ;;  %v3485_v57 = vld [vmem:[%s10024_s3 + $0x10] sm:$0xff]  ;;  %v3484_v58 = vld [vmem:[%s10024_s3 + $0x8] sm:$0xff] }
  0xf4   : > { %v1068_v54 = vld [vmem:[%s7122_s12 + $0x78] sm:$0xff]  ;;  %v5684_v59 = vld [vmem:[%s7122_s12 + $0x480] sm:$0xff]  ;;  %v5685_v5 = vld [vmem:[%s7122_s12 + $0x488] sm:$0xff] }
  0xf5   : > { %3697 = vmatpush.msra.mxu3 %v3489_v50  ;;  %v3486_v56 = vld [vmem:[%s10024_s3 + $0x18] sm:$0xff]  ;;  %v5492_v62 = vld [vmem:[%s7122_s12 + $0x280] sm:$0xff]  ;;  %v5493_v9 = vld [vmem:[%s7122_s12 + $0x288] sm:$0xff] }
  0xf6   : > { %v1069_v63 = vld [vmem:[%s7122_s12 + $0x80] sm:$0xff] }
  0xf7   : > { %3698 = vmatpush.msra.mxu3 %v3488_v51  ;;  %v3483_v0 = vld [vmem:[%s10024_s3] sm:$0xff] }
  0xf8   : > { %v7253_v2 = vld [vmem:[%s10023_s2] ss:$0 sm:$0xff] }
  0xf9   : > { %5734 = vmatmul.msk.f32.gmra.mxu2 %vm1186_vm0, %v5670_v10  ;;  %3699 = vmatpush.msra.mxu3 %v3487_v55  ;;  %v1070_v10 = vld [vmem:[%s7122_s12 + $0x88] sm:$0xff]  ;;  %v5688_v49 = vld [vmem:[%s7122_s12 + $0x4a0] sm:$0xff] }
  0xfa   : > { %5542 = vmatmul.msk.f32.gmra.mxu0 %vm1186_vm0, %v5478_v11  ;;  %5606 = vmatmul.msk.f32.gmra.mxu1 %vm1186_vm0, %v1055_v12  ;;  %v1073_v55 = vld [vmem:[%s7122_s12 + $0xa0] sm:$0xff] }
  0xfb   : > { %3700 = vmatpush.msra.mxu3 %v3486_v56 }
  0xfd   : > { %3701 = vmatpush.msra.mxu3 %v3485_v57 }
  0xff   : > { %3702 = vmatpush.msra.mxu3 %v3484_v58 }
 0x101   : > { %5735 = vmatmul.msk.f32.gmra.mxu2 %vm1186_vm0, %v5671_v13  ;;  %3703 = vmatpush.msra.mxu3 %v3483_v0 }
 0x102   : > { %5543 = vmatmul.msk.f32.gmra.mxu0 %vm1186_vm0, %v5479_v14  ;;  %5607 = vmatmul.msk.f32.gmra.mxu1 %vm1186_vm0, %v1056_v15 }
 0x109   : > { %5736 = vmatmul.msk.f32.gmra.mxu2 %vm1186_vm0, %v5672_v16  ;;  %v5686_v16 = vld [vmem:[%s7122_s12 + $0x490] sm:$0xff] }
 0x10a   : > { %5544 = vmatmul.msk.f32.gmra.mxu0 %vm1186_vm0, %v5480_v17  ;;  %5608 = vmatmul.msk.f32.gmra.mxu1 %vm1186_vm0, %v1057_v18 }
 0x111   : > { %5737 = vmatmul.msk.f32.gmra.mxu2 %vm1186_vm0, %v5673_v19 }
 0x112   : > { %5545 = vmatmul.msk.f32.gmra.mxu0 %vm1186_vm0, %v5481_v20  ;;  %5609 = vmatmul.msk.f32.gmra.mxu1 %vm1186_vm0, %v1058_v21  ;;  %v5494_v20 = vld [vmem:[%s7122_s12 + $0x290] sm:$0xff] }
 0x113   : > { %v1071_v21 = vld [vmem:[%s7122_s12 + $0x90] sm:$0xff] }
 0x119   : > { %5738 = vmatmul.msk.f32.gmra.mxu2 %vm1186_vm0, %v5674_v22 }
 0x11a   : > { %5546 = vmatmul.msk.f32.gmra.mxu0 %vm1186_vm0, %v5482_v23  ;;  %5610 = vmatmul.msk.f32.gmra.mxu1 %vm1186_vm0, %v1059_v24 }
 0x121   : > { %5739 = vmatmul.msk.f32.gmra.mxu2 %vm1186_vm0, %v5675_v25 }
 0x122   : > { %5547 = vmatmul.msk.f32.gmra.mxu0 %vm1186_vm0, %v5483_v26  ;;  %5611 = vmatmul.msk.f32.gmra.mxu1 %vm1186_vm0, %v1060_v27 }
 0x129   : > { %5740 = vmatmul.msk.f32.gmra.mxu2 %vm1186_vm0, %v5676_v28 }
 0x12a   : > { %5548 = vmatmul.msk.f32.gmra.mxu0 %vm1186_vm0, %v5484_v29  ;;  %5612 = vmatmul.msk.f32.gmra.mxu1 %vm1186_vm0, %v1061_v30  ;;  %v5687_v30 = vld [vmem:[%s7122_s12 + $0x498] sm:$0xff] }
 0x131   : > { %5741 = vmatmul.msk.f32.gmra.mxu2 %vm1186_vm0, %v5677_v31 }
 0x132   : > { %5549 = vmatmul.msk.f32.gmra.mxu0 %vm1186_vm0, %v5485_v32  ;;  %5613 = vmatmul.msk.f32.gmra.mxu1 %vm1186_vm0, %v1062_v33 }
 0x139   : > { %5742 = vmatmul.msk.f32.gmra.mxu2 %vm1186_vm0, %v5678_v34  ;;  %v5495_v34 = vld [vmem:[%s7122_s12 + $0x298] sm:$0xff] }
 0x13a   : > { %5550 = vmatmul.msk.f32.gmra.mxu0 %vm1186_vm0, %v5486_v35  ;;  %5614 = vmatmul.msk.f32.gmra.mxu1 %vm1186_vm0, %v1063_v36  ;;  %v1072_v35 = vld [vmem:[%s7122_s12 + $0x98] sm:$0xff] }
 0x141   : > { %5743 = vmatmul.msk.f32.gmra.mxu2 %vm1186_vm0, %v5679_v37 }
 0x142   : > { %5551 = vmatmul.msk.f32.gmra.mxu0 %vm1186_vm0, %v5487_v38  ;;  %5615 = vmatmul.msk.f32.gmra.mxu1 %vm1186_vm0, %v1064_v39 }
 0x149   : > { %5744 = vmatmul.msk.f32.gmra.mxu2 %vm1186_vm0, %v5680_v40 }
 0x14a   : > { %5552 = vmatmul.msk.f32.gmra.mxu0 %vm1186_vm0, %v5488_v41  ;;  %5616 = vmatmul.msk.f32.gmra.mxu1 %vm1186_vm0, %v1065_v42 }
 0x151   : > { %5745 = vmatmul.msk.f32.gmra.mxu2 %vm1186_vm0, %v5681_v43 }
 0x152   : > { %5553 = vmatmul.msk.f32.gmra.mxu0 %vm1186_vm0, %v5489_v44  ;;  %5617 = vmatmul.msk.f32.gmra.mxu1 %vm1186_vm0, %v1066_v45 }
 0x159   : > { %5746 = vmatmul.msk.f32.gmra.mxu2 %vm1186_vm0, %v5682_v46 }
 0x15a   : > { %5554 = vmatmul.msk.f32.gmra.mxu0 %vm1186_vm0, %v5490_v47  ;;  %5618 = vmatmul.msk.f32.gmra.mxu1 %vm1186_vm0, %v1067_v48 }
 0x161   : > { %5747 = vmatmul.msk.f32.gmra.mxu2 %vm1186_vm0, %v5683_v52 }
 0x162   : > { %5555 = vmatmul.msk.f32.gmra.mxu0 %vm1186_vm0, %v5491_v53  ;;  %5619 = vmatmul.msk.f32.gmra.mxu1 %vm1186_vm0, %v1068_v54  ;;  %v5496_v54 = vld [vmem:[%s7122_s12 + $0x2a0] sm:$0xff] }
 0x167   : > { %v1396_v60 = vpop.f32.mrf.mxu0  ;;  %v1797_v61 = vpop.f32.mrf.mxu1 }
 0x168   : > { %v1798_v1 = vadd.f32 %v1797_v61, %v1396_v60 }
 0x169   : > { %5748 = vmatmul.msk.f32.gmra.mxu2 %vm1186_vm0, %v5684_v59 }
 0x16a   : > { %5556 = vmatmul.msk.f32.gmra.mxu0 %vm1186_vm0, %v5492_v62  ;;  %5620 = vmatmul.msk.f32.gmra.mxu1 %vm1186_vm0, %v1069_v63 }
 0x16c   : > { %v2263_v3 = vpop.f32.mrf.mxu2 }
 0x16d   : > { %v2455_v4 = vadd.f32 %v2263_v3, %v1798_v1 }
 0x16f   : > { %v7257_v6 = vadd.f32 %v7253_v2, %v2455_v4  ;;  %v1399_v7 = vpop.f32.mrf.mxu0  ;;  %v1800_v8 = vpop.f32.mrf.mxu1 }
 0x170   : > { %v1801_v12 = vadd.f32 %v1800_v8, %v1399_v7  ;;  %v5689_v7 = vld [vmem:[%s7122_s12 + $0x4a8] sm:$0xff] }
 0x171   : > { %v2651_v11 = vmin.f32 %v7257_v6, 20.0  ;;  %5749 = vmatmul.msk.f32.gmra.mxu2 %vm1186_vm0, %v5685_v5  ;;  %vm2587_vm3 = vcmp.gt.f32.partialorder %v7257_v6, 20.0 }
 0x172   : > { %5557 = vmatmul.msk.f32.gmra.mxu0 %vm1186_vm0, %v5493_v9  ;;  %5621 = vmatmul.msk.f32.gmra.mxu1 %vm1186_vm0, %v1070_v10 }
 0x173   : > { %v2715_v13 = vmul.f32 1.442695, %v2651_v11 }
 0x174   : > { %v2266_v14 = vpop.f32.mrf.mxu2 }
 0x175   : > { %6051 = vpow2.f32 %v2715_v13  ;;  %v2456_v15 = vadd.f32 %v2266_v14, %v1801_v12  ;;  %v5497_v12 = vld [vmem:[%s7122_s12 + $0x2a8] sm:$0xff] }
 0x176   : > { %v1074_v13 = vld [vmem:[%s7122_s12 + $0xa8] sm:$0xff] }
 0x177   : > { %v7267_v17 = vadd.f32 %v7253_v2, %v2456_v15  ;;  %v1402_v18 = vpop.f32.mrf.mxu0  ;;  %v1803_v19 = vpop.f32.mrf.mxu1 }
 0x178   : > { %v1804_v23 = vadd.f32 %v1803_v19, %v1402_v18 }
 0x179   : > { %v2652_v22 = vmin.f32 %v7267_v17, 20.0  ;;  %5750 = vmatmul.msk.f32.gmra.mxu2 %vm1186_vm0, %v5686_v16  ;;  %vm2588_vm5 = vcmp.gt.f32.partialorder %v7267_v17, 20.0 }
 0x17a   : > { %5558 = vmatmul.msk.f32.gmra.mxu0 %vm1186_vm0, %v5494_v20  ;;  %5622 = vmatmul.msk.f32.gmra.mxu1 %vm1186_vm0, %v1071_v21 }
 0x17b   : > { %v6052_v24 = vpop.eup %6051  ;;  %v2717_v25 = vmul.f32 1.442695, %v2652_v22 }
 0x17c   : > { %v2269_v26 = vpop.f32.mrf.mxu2  ;;  %v2843_v27 = vadd.f32 1.0, %v6052_v24  ;;  %v2846_v29 = vmul.f32 -0.5, %v6052_v24  ;;  %v2849_v39 = vand.u32 2147483647, %v6052_v24 }
 0x17d   : > { %6053 = vpow2.f32 %v2717_v25  ;;  %v2457_v28 = vadd.f32 %v2269_v26, %v1804_v23 }
 0x17e   : > { %6055 = vlog2.f32 %v2843_v27  ;;  %v2847_v38 = vadd.f32 1.0, %v2846_v29  ;;  %vm2850_vm1 = vcmp.lt.f32.partialorder %v2849_v39, 0.0004427343 }
 0x17f   : > { %v7277_v31 = vadd.f32 %v7253_v2, %v2457_v28  ;;  %v1405_v32 = vpop.f32.mrf.mxu0  ;;  %v1806_v33 = vpop.f32.mrf.mxu1  ;;  %v5690_v28 = vld [vmem:[%s7122_s12 + $0x4b0] sm:$0xff] }
 0x180   : > { %v1807_v37 = vadd.f32 %v1806_v33, %v1405_v32  ;;  %v2848_v48 = vmul.f32 %v6052_v24, %v2847_v38 }
 0x181   : > { %v2653_v36 = vmin.f32 %v7277_v31, 20.0  ;;  %5751 = vmatmul.msk.f32.gmra.mxu2 %vm1186_vm0, %v5687_v30  ;;  %vm2589_vm7 = vcmp.gt.f32.partialorder %v7277_v31, 20.0 }
 0x182   : > { %5559 = vmatmul.msk.f32.gmra.mxu0 %vm1186_vm0, %v5495_v34  ;;  %5623 = vmatmul.msk.f32.gmra.mxu1 %vm1186_vm0, %v1072_v35  ;;  %v5498_v34 = vld [vmem:[%s7122_s12 + $0x2b0] sm:$0xff] }
 0x183   : > { %v6054_v40 = vpop.eup %6053  ;;  %v2719_v41 = vmul.f32 1.442695, %v2653_v36  ;;  %v1075_v35 = vld [vmem:[%s7122_s12 + $0xb0] sm:$0xff] }
 0x184   : > { %v6056_v42 = vpop.eup %6055  ;;  %v2272_v43 = vpop.f32.mrf.mxu2  ;;  %v2852_v44 = vadd.f32 1.0, %v6054_v40  ;;  %v2855_v45 = vmul.f32 -0.5, %v6054_v40  ;;  %v2858_v60 = vand.u32 2147483647, %v6054_v40 }
 0x185   : > { %6057 = vpow2.f32 %v2719_v41  ;;  %v2458_v46 = vadd.f32 %v2272_v43, %v1807_v37  ;;  %v2845_v47 = vmul.f32 0.6931472, %v6056_v42 }
 0x186   : > { %6059 = vlog2.f32 %v2852_v44  ;;  %v2856_v57 = vadd.f32 1.0, %v2855_v45  ;;  %vm2859_vm4 = vcmp.lt.f32.partialorder %v2858_v60, 0.0004427343 }
 0x187   : > { %v7287_v50 = vadd.f32 %v7253_v2, %v2458_v46  ;;  %v2851_v51 = vsel %vm2850_vm1, %v2848_v48, %v2845_v47  ;;  %v1408_v52 = vpop.f32.mrf.mxu0  ;;  %v1809_v53 = vpop.f32.mrf.mxu1 }
 0x188   : > { %v3419_v56 = vsel %vm2587_vm3, %v7257_v6, %v2851_v51  ;;  %v1810_v59 = vadd.f32 %v1809_v53, %v1408_v52  ;;  %v2857_v1 = vmul.f32 %v6054_v40, %v2856_v57 }
 0x189   : > { %v2654_v58 = vmin.f32 %v7287_v50, 20.0  ;;  %5752 = vmatmul.msk.f32.gmra.mxu2 %vm1186_vm0, %v5688_v49  ;;  %5796 = vmatmul.msk.f32.vlgmr.msra.gmra.mxu3 %vm3495_vm2, %v3419_v56  ;;  %v5691_v49 = vld [vmem:[%s7122_s12 + $0x4b8] sm:$0xff]  ;;  %vm2590_vm9 = vcmp.gt.f32.partialorder %v7287_v50, 20.0 }
 0x18a   : > { %5560 = vmatmul.msk.f32.gmra.mxu0 %vm1186_vm0, %v5496_v54  ;;  %5624 = vmatmul.msk.f32.gmra.mxu1 %vm1186_vm0, %v1073_v55  ;;  %v5499_v55 = vld [vmem:[%s7122_s12 + $0x2b8] sm:$0xff] }
 0x18b   : > { %v6058_v61 = vpop.eup %6057  ;;  %v2721_v62 = vmul.f32 1.442695, %v2654_v58  ;;  %v1076_v56 = vld [vmem:[%s7122_s12 + $0xb8] sm:$0xff] }
 0x18c   : > { %v6060_v63 = vpop.eup %6059  ;;  %v2275_v0 = vpop.f32.mrf.mxu2  ;;  %v2861_v3 = vadd.f32 1.0, %v6058_v61  ;;  %v2864_v6 = vmul.f32 -0.5, %v6058_v61  ;;  %v2867_v19 = vand.u32 2147483647, %v6058_v61 }
 0x18d   : > { %6061 = vpow2.f32 %v2721_v62  ;;  %v2459_v4 = vadd.f32 %v2275_v0, %v1810_v59  ;;  %v2854_v5 = vmul.f32 0.6931472, %v6060_v63 }
 0x18e   : > { %6063 = vlog2.f32 %v2861_v3  ;;  %v2865_v18 = vadd.f32 1.0, %v2864_v6  ;;  %vm2868_vm6 = vcmp.lt.f32.partialorder %v2867_v19, 0.0004427343 }
 0x18f   : > { %v7300_v8 = vadd.f32 %v7253_v2, %v2459_v4  ;;  %v2860_v9 = vsel %vm2859_vm4, %v2857_v1, %v2854_v5  ;;  %v1411_v10 = vpop.f32.mrf.mxu0  ;;  %v1812_v11 = vpop.f32.mrf.mxu1 }
 0x190   : > { %v3420_v14 = vsel %vm2588_vm5, %v7267_v17, %v2860_v9  ;;  %v1813_v16 = vadd.f32 %v1812_v11, %v1411_v10  ;;  %v2866_v27 = vmul.f32 %v6058_v61, %v2865_v18 }
 0x191   : > { %v2655_v15 = vmin.f32 %v7300_v8, 20.0  ;;  %5753 = vmatmul.msk.f32.gmra.mxu2 %vm1186_vm0, %v5689_v7  ;;  %5797 = vmatmul.msk.f32.gmra.mxu3 %vm3495_vm2, %v3420_v14  ;;  %v5692_v7 = vld [vmem:[%s7122_s12 + $0x4c0] sm:$0xff]  ;;  %vm2591_vm11 = vcmp.gt.f32.partialorder %v7300_v8, 20.0 }
 0x192   : > { %5561 = vmatmul.msk.f32.gmra.mxu0 %vm1186_vm0, %v5497_v12  ;;  %5625 = vmatmul.msk.f32.gmra.mxu1 %vm1186_vm0, %v1074_v13  ;;  %v5500_v13 = vld [vmem:[%s7122_s12 + $0x2c0] sm:$0xff] }
 0x193   : > { %v6062_v20 = vpop.eup %6061  ;;  %v2723_v21 = vmul.f32 1.442695, %v2655_v15  ;;  %v1077_v14 = vld [vmem:[%s7122_s12 + $0xc0] sm:$0xff] }
 0x194   : > { %v6064_v22 = vpop.eup %6063  ;;  %v2278_v23 = vpop.f32.mrf.mxu2  ;;  %v2870_v17 = vadd.f32 1.0, %v6062_v20  ;;  %v2873_v24 = vmul.f32 -0.5, %v6062_v20  ;;  %v2876_v40 = vand.u32 2147483647, %v6062_v20 }
 0x195   : > { %6065 = vpow2.f32 %v2723_v21  ;;  %v2460_v25 = vadd.f32 %v2278_v23, %v1813_v16  ;;  %v2863_v26 = vmul.f32 0.6931472, %v6064_v22 }
 0x196   : > { %6067 = vlog2.f32 %v2870_v17  ;;  %v2874_v37 = vadd.f32 1.0, %v2873_v24  ;;  %vm2877_vm8 = vcmp.lt.f32.partialorder %v2876_v40, 0.0004427343 }
 0x197   : > { %v7313_v29 = vadd.f32 %v7253_v2, %v2460_v25  ;;  %v2869_v30 = vsel %vm2868_vm6, %v2866_v27, %v2863_v26  ;;  %v1414_v32 = vpop.f32.mrf.mxu0  ;;  %v1815_v33 = vpop.f32.mrf.mxu1 }
 0x198   : > { %v3421_v36 = vsel %vm2589_vm7, %v7277_v31, %v2869_v30  ;;  %v1816_v39 = vadd.f32 %v1815_v33, %v1414_v32  ;;  %v2875_v31 = vmul.f32 %v6062_v20, %v2874_v37 }
 0x199   : > { %v2656_v38 = vmin.f32 %v7313_v29, 20.0  ;;  %5754 = vmatmul.msk.f32.gmra.mxu2 %vm1186_vm0, %v5690_v28  ;;  %5798 = vmatmul.msk.f32.gmra.mxu3 %vm3495_vm2, %v3421_v36  ;;  %v5693_v28 = vld [vmem:[%s7122_s12 + $0x4c8] sm:$0xff]  ;;  %vm2592_vm13 = vcmp.gt.f32.partialorder %v7313_v29, 20.0 }
 0x19a   : > { %5562 = vmatmul.msk.f32.gmra.mxu0 %vm1186_vm0, %v5498_v34  ;;  %5626 = vmatmul.msk.f32.gmra.mxu1 %vm1186_vm0, %v1075_v35  ;;  %v5501_v35 = vld [vmem:[%s7122_s12 + $0x2c8] sm:$0xff] }
 0x19b   : > { %v6066_v41 = vpop.eup %6065  ;;  %v2725_v42 = vmul.f32 1.442695, %v2656_v38  ;;  %v1078_v36 = vld [vmem:[%s7122_s12 + $0xc8] sm:$0xff] }
 0x19c   : > { %v6068_v43 = vpop.eup %6067  ;;  %v2281_v44 = vpop.f32.mrf.mxu2  ;;  %v2879_v45 = vadd.f32 1.0, %v6066_v41  ;;  %v2882_v48 = vmul.f32 -0.5, %v6066_v41  ;;  %v2885_v61 = vand.u32 2147483647, %v6066_v41 }
 0x19d   : > { %6069 = vpow2.f32 %v2725_v42  ;;  %v2461_v46 = vadd.f32 %v2281_v44, %v1816_v39  ;;  %v2872_v47 = vmul.f32 0.6931472, %v6068_v43 }
 0x19e   : > { %6071 = vlog2.f32 %v2879_v45  ;;  %v2883_v60 = vadd.f32 1.0, %v2882_v48  ;;  %vm2886_vm10 = vcmp.lt.f32.partialorder %v2885_v61, 0.0004427343 }
 0x19f   : > { %v7326_v51 = vadd.f32 %v7253_v2, %v2461_v46  ;;  %v2878_v52 = vsel %vm2877_vm8, %v2875_v31, %v2872_v47  ;;  %v1417_v53 = vpop.f32.mrf.mxu0  ;;  %v1818_v54 = vpop.f32.mrf.mxu1 }
 0x1a0   : > { %v3422_v57 = vsel %vm2590_vm9, %v7287_v50, %v2878_v52  ;;  %v1819_v59 = vadd.f32 %v1818_v54, %v1417_v53  ;;  %v2884_v6 = vmul.f32 %v6066_v41, %v2883_v60 }
 0x1a1   : > { %v2657_v58 = vmin.f32 %v7326_v51, 20.0  ;;  %5755 = vmatmul.msk.f32.gmra.mxu2 %vm1186_vm0, %v5691_v49  ;;  %5799 = vmatmul.msk.f32.gmra.mxu3 %vm3495_vm2, %v3422_v57  ;;  %v5694_v49 = vld [vmem:[%s7122_s12 + $0x4d0] sm:$0xff]  ;;  %vm2593_vm15 = vcmp.gt.f32.partialorder %v7326_v51, 20.0 }
 0x1a2   : > { %5563 = vmatmul.msk.f32.gmra.mxu0 %vm1186_vm0, %v5499_v55  ;;  %5627 = vmatmul.msk.f32.gmra.mxu1 %vm1186_vm0, %v1076_v56  ;;  %v5502_v56 = vld [vmem:[%s7122_s12 + $0x2d0] sm:$0xff] }
 0x1a3   : > { %v6070_v62 = vpop.eup %6069  ;;  %v2727_v63 = vmul.f32 1.442695, %v2657_v58  ;;  %v1079_v57 = vld [vmem:[%s7122_s12 + $0xd0] sm:$0xff] }
 0x1a4   : > { %v6072_v0 = vpop.eup %6071  ;;  %v2284_v1 = vpop.f32.mrf.mxu2  ;;  %v2888_v50 = vadd.f32 1.0, %v6070_v62  ;;  %v2891_v3 = vmul.f32 -0.5, %v6070_v62  ;;  %v2894_v20 = vand.u32 2147483647, %v6070_v62 }
 0x1a5   : > { %6073 = vpow2.f32 %v2727_v63  ;;  %v2462_v4 = vadd.f32 %v2284_v1, %v1819_v59  ;;  %v2881_v5 = vmul.f32 0.6931472, %v6072_v0 }
 0x1a6   : > { %6075 = vlog2.f32 %v2888_v50  ;;  %v2892_v16 = vadd.f32 1.0, %v2891_v3  ;;  %vm2895_vm12 = vcmp.lt.f32.partialorder %v2894_v20, 0.0004427343 }
 0x1a7   : > { %v7339_v9 = vadd.f32 %v7253_v2, %v2462_v4  ;;  %v2887_v10 = vsel %vm2886_vm10, %v2884_v6, %v2881_v5  ;;  %v1420_v11 = vpop.f32.mrf.mxu0  ;;  %v1821_v12 = vpop.f32.mrf.mxu1 }
 0x1a8   : > { %v3423_v15 = vsel %vm2591_vm11, %v7300_v8, %v2887_v10  ;;  %v1822_v19 = vadd.f32 %v1821_v12, %v1420_v11  ;;  %v2893_v8 = vmul.f32 %v6070_v62, %v2892_v16 }
 0x1a9   : > { %v2658_v18 = vmin.f32 %v7339_v9, 20.0  ;;  %5756 = vmatmul.msk.f32.gmra.mxu2 %vm1186_vm0, %v5692_v7  ;;  %5800 = vmatmul.msk.f32.gmra.mxu3 %vm3495_vm2, %v3423_v15  ;;  %v5695_v7 = vld [vmem:[%s7122_s12 + $0x4d8] sm:$0xff]  ;;  %vm2594_vm3 = vcmp.gt.f32.partialorder %v7339_v9, 20.0 }
 0x1aa   : > { %5564 = vmatmul.msk.f32.gmra.mxu0 %vm1186_vm0, %v5500_v13  ;;  %5628 = vmatmul.msk.f32.gmra.mxu1 %vm1186_vm0, %v1077_v14  ;;  %v5503_v14 = vld [vmem:[%s7122_s12 + $0x2d8] sm:$0xff] }
 0x1ab   : > { %v6074_v21 = vpop.eup %6073  ;;  %v2729_v22 = vmul.f32 1.442695, %v2658_v18  ;;  %v1080_v15 = vld [vmem:[%s7122_s12 + $0xd8] sm:$0xff] }
 0x1ac   : > { %v6076_v23 = vpop.eup %6075  ;;  %v2287_v17 = vpop.f32.mrf.mxu2  ;;  %v2897_v24 = vadd.f32 1.0, %v6074_v21  ;;  %v2900_v27 = vmul.f32 -0.5, %v6074_v21  ;;  %v2903_v41 = vand.u32 2147483647, %v6074_v21 }
 0x1ad   : > { %6077 = vpow2.f32 %v2729_v22  ;;  %v2463_v25 = vadd.f32 %v2287_v17, %v1822_v19  ;;  %v2890_v26 = vmul.f32 0.6931472, %v6076_v23 }
 0x1ae   : > { %6079 = vlog2.f32 %v2897_v24  ;;  %v2901_v40 = vadd.f32 1.0, %v2900_v27  ;;  %vm2904_vm14 = vcmp.lt.f32.partialorder %v2903_v41, 0.0004427343 }
 0x1af   : > { %v7352_v30 = vadd.f32 %v7253_v2, %v2463_v25  ;;  %v2896_v32 = vsel %vm2895_vm12, %v2893_v8, %v2890_v26  ;;  %v1423_v33 = vpop.f32.mrf.mxu0  ;;  %v1824_v34 = vpop.f32.mrf.mxu1 }
 0x1b0   : > { %v3424_v37 = vsel %vm2592_vm13, %v7313_v29, %v2896_v32  ;;  %v1825_v39 = vadd.f32 %v1824_v34, %v1423_v33  ;;  %v2902_v48 = vmul.f32 %v6074_v21, %v2901_v40 }
 0x1b1   : > { %v2659_v38 = vmin.f32 %v7352_v30, 20.0  ;;  %5757 = vmatmul.msk.f32.gmra.mxu2 %vm1186_vm0, %v5693_v28  ;;  %5801 = vmatmul.msk.f32.gmra.mxu3 %vm3495_vm2, %v3424_v37  ;;  %v5696_v28 = vld [vmem:[%s7122_s12 + $0x4e0] sm:$0xff]  ;;  %vm2595_vm5 = vcmp.gt.f32.partialorder %v7352_v30, 20.0 }
 0x1b2   : > { %5565 = vmatmul.msk.f32.gmra.mxu0 %vm1186_vm0, %v5501_v35  ;;  %5629 = vmatmul.msk.f32.gmra.mxu1 %vm1186_vm0, %v1078_v36  ;;  %v5504_v36 = vld [vmem:[%s7122_s12 + $0x2e0] sm:$0xff] }
 0x1b3   : > { %v6078_v42 = vpop.eup %6077  ;;  %v2731_v43 = vmul.f32 1.442695, %v2659_v38  ;;  %v1081_v37 = vld [vmem:[%s7122_s12 + $0xe0] sm:$0xff] }
 0x1b4   : > { %v6080_v44 = vpop.eup %6079  ;;  %v2290_v31 = vpop.f32.mrf.mxu2  ;;  %v2906_v29 = vadd.f32 1.0, %v6078_v42  ;;  %v2909_v45 = vmul.f32 -0.5, %v6078_v42  ;;  %v2912_v62 = vand.u32 2147483647, %v6078_v42 }
 0x1b5   : > { %6081 = vpow2.f32 %v2731_v43  ;;  %v2464_v46 = vadd.f32 %v2290_v31, %v1825_v39  ;;  %v2899_v47 = vmul.f32 0.6931472, %v6080_v44 }
 0x1b6   : > { %6083 = vlog2.f32 %v2906_v29  ;;  %v2910_v59 = vadd.f32 1.0, %v2909_v45  ;;  %vm2913_vm1 = vcmp.lt.f32.partialorder %v2912_v62, 0.0004427343 }
 0x1b7   : > { %v7365_v52 = vadd.f32 %v7253_v2, %v2464_v46  ;;  %v2905_v53 = vsel %vm2904_vm14, %v2902_v48, %v2899_v47  ;;  %v1426_v54 = vpop.f32.mrf.mxu0  ;;  %v1827_v55 = vpop.f32.mrf.mxu1 }
 0x1b8   : > { %v3425_v58 = vsel %vm2593_vm15, %v7326_v51, %v2905_v53  ;;  %v1828_v61 = vadd.f32 %v1827_v55, %v1426_v54  ;;  %v2911_v51 = vmul.f32 %v6078_v42, %v2910_v59 }
 0x1b9   : > { %v2660_v60 = vmin.f32 %v7365_v52, 20.0  ;;  %5758 = vmatmul.msk.f32.gmra.mxu2 %vm1186_vm0, %v5694_v49  ;;  %5802 = vmatmul.msk.f32.gmra.mxu3 %vm3495_vm2, %v3425_v58  ;;  %v5697_v49 = vld [vmem:[%s7122_s12 + $0x4e8] sm:$0xff]  ;;  %vm2596_vm7 = vcmp.gt.f32.partialorder %v7365_v52, 20.0 }
 0x1ba   : > { %5566 = vmatmul.msk.f32.gmra.mxu0 %vm1186_vm0, %v5502_v56  ;;  %5630 = vmatmul.msk.f32.gmra.mxu1 %vm1186_vm0, %v1079_v57  ;;  %v5505_v57 = vld [vmem:[%s7122_s12 + $0x2e8] sm:$0xff] }
 0x1bb   : > { %v6082_v63 = vpop.eup %6081  ;;  %v2733_v0 = vmul.f32 1.442695, %v2660_v60  ;;  %v1082_v58 = vld [vmem:[%s7122_s12 + $0xe8] sm:$0xff] }
 0x1bc   : > { %v6084_v1 = vpop.eup %6083  ;;  %v2293_v50 = vpop.f32.mrf.mxu2  ;;  %v2915_v3 = vadd.f32 1.0, %v6082_v63  ;;  %v2918_v6 = vmul.f32 -0.5, %v6082_v63  ;;  %v2921_v21 = vand.u32 2147483647, %v6082_v63 }
 0x1bd   : > { %6085 = vpow2.f32 %v2733_v0  ;;  %v2465_v4 = vadd.f32 %v2293_v50, %v1828_v61  ;;  %v2908_v5 = vmul.f32 0.6931472, %v6084_v1 }
 0x1be   : > { %6087 = vlog2.f32 %v2915_v3  ;;  %v2919_v20 = vadd.f32 1.0, %v2918_v6  ;;  %vm2922_vm4 = vcmp.lt.f32.partialorder %v2921_v21, 0.0004427343 }
 0x1bf   : > { %v7378_v10 = vadd.f32 %v7253_v2, %v2465_v4  ;;  %v2914_v11 = vsel %vm2913_vm1, %v2911_v51, %v2908_v5  ;;  %v1429_v12 = vpop.f32.mrf.mxu0  ;;  %v1830_v13 = vpop.f32.mrf.mxu1 }
 0x1c0   : > { %v3426_v16 = vsel %vm2594_vm3, %v7339_v9, %v2914_v11  ;;  %v1831_v19 = vadd.f32 %v1830_v13, %v1429_v12  ;;  %v2920_v27 = vmul.f32 %v6082_v63, %v2919_v20 }
 0x1c1   : > { %v2661_v18 = vmin.f32 %v7378_v10, 20.0  ;;  %5759 = vmatmul.msk.f32.gmra.mxu2 %vm1186_vm0, %v5695_v7  ;;  %5803 = vmatmul.msk.f32.gmra.mxu3 %vm3495_vm2, %v3426_v16  ;;  %v5698_v7 = vld [vmem:[%s7122_s12 + $0x4f0] sm:$0xff]  ;;  %vm2597_vm9 = vcmp.gt.f32.partialorder %v7378_v10, 20.0 }
 0x1c2   : > { %5567 = vmatmul.msk.f32.gmra.mxu0 %vm1186_vm0, %v5503_v14  ;;  %5631 = vmatmul.msk.f32.gmra.mxu1 %vm1186_vm0, %v1080_v15  ;;  %v5506_v15 = vld [vmem:[%s7122_s12 + $0x2f0] sm:$0xff] }
 0x1c3   : > { %v6086_v22 = vpop.eup %6085  ;;  %v2735_v23 = vmul.f32 1.442695, %v2661_v18  ;;  %v1083_v16 = vld [vmem:[%s7122_s12 + $0xf0] sm:$0xff] }
 0x1c4   : > { %v6088_v17 = vpop.eup %6087  ;;  %v2296_v8 = vpop.f32.mrf.mxu2  ;;  %v2924_v9 = vadd.f32 1.0, %v6086_v22  ;;  %v2927_v24 = vmul.f32 -0.5, %v6086_v22  ;;  %v2930_v42 = vand.u32 2147483647, %v6086_v22 }
 0x1c5   : > { %6089 = vpow2.f32 %v2735_v23  ;;  %v2466_v25 = vadd.f32 %v2296_v8, %v1831_v19  ;;  %v2917_v26 = vmul.f32 0.6931472, %v6088_v17 }
 0x1c6   : > { %6091 = vlog2.f32 %v2924_v9  ;;  %v2928_v39 = vadd.f32 1.0, %v2927_v24  ;;  %vm2931_vm6 = vcmp.lt.f32.partialorder %v2930_v42, 0.0004427343 }
 0x1c7   : > { %v7391_v32 = vadd.f32 %v7253_v2, %v2466_v25  ;;  %v2923_v33 = vsel %vm2922_vm4, %v2920_v27, %v2917_v26  ;;  %v1432_v34 = vpop.f32.mrf.mxu0  ;;  %v1833_v35 = vpop.f32.mrf.mxu1 }
 0x1c8   : > { %v3427_v38 = vsel %vm2595_vm5, %v7352_v30, %v2923_v33  ;;  %v1834_v41 = vadd.f32 %v1833_v35, %v1432_v34  ;;  %v2929_v30 = vmul.f32 %v6086_v22, %v2928_v39 }
 0x1c9   : > { %v2662_v40 = vmin.f32 %v7391_v32, 20.0  ;;  %5760 = vmatmul.msk.f32.gmra.mxu2 %vm1186_vm0, %v5696_v28  ;;  %5804 = vmatmul.msk.f32.gmra.mxu3 %vm3495_vm2, %v3427_v38  ;;  %v5699_v28 = vld [vmem:[%s7122_s12 + $0x4f8] sm:$0xff]  ;;  %vm2598_vm11 = vcmp.gt.f32.partialorder %v7391_v32, 20.0 }
 0x1ca   : > { %5568 = vmatmul.msk.f32.gmra.mxu0 %vm1186_vm0, %v5504_v36  ;;  %5632 = vmatmul.msk.f32.gmra.mxu1 %vm1186_vm0, %v1081_v37  ;;  %v5507_v37 = vld [vmem:[%s7122_s12 + $0x2f8] sm:$0xff] }
 0x1cb   : > { %v6090_v43 = vpop.eup %6089  ;;  %v2737_v44 = vmul.f32 1.442695, %v2662_v40  ;;  %v1084_v38 = vld [vmem:[%s7122_s12 + $0xf8] sm:$0xff] }
 0x1cc   : > { %v6092_v31 = vpop.eup %6091  ;;  %v2299_v29 = vpop.f32.mrf.mxu2  ;;  %v2933_v45 = vadd.f32 1.0, %v6090_v43  ;;  %v2936_v48 = vmul.f32 -0.5, %v6090_v43  ;;  %v2939_v63 = vand.u32 2147483647, %v6090_v43 }
 0x1cd   : > { %6093 = vpow2.f32 %v2737_v44  ;;  %v2467_v46 = vadd.f32 %v2299_v29, %v1834_v41  ;;  %v2926_v47 = vmul.f32 0.6931472, %v6092_v31 }
 0x1ce   : > { %6095 = vlog2.f32 %v2933_v45  ;;  %v2937_v62 = vadd.f32 1.0, %v2936_v48  ;;  %vm2940_vm8 = vcmp.lt.f32.partialorder %v2939_v63, 0.0004427343 }
 0x1cf   : > { %v7404_v53 = vadd.f32 %v7253_v2, %v2467_v46  ;;  %v2932_v54 = vsel %vm2931_vm6, %v2929_v30, %v2926_v47  ;;  %v1435_v55 = vpop.f32.mrf.mxu0  ;;  %v1836_v56 = vpop.f32.mrf.mxu1 }
 0x1d0   : > { %v3428_v59 = vsel %vm2596_vm7, %v7365_v52, %v2932_v54  ;;  %v1837_v61 = vadd.f32 %v1836_v56, %v1435_v55  ;;  %v2938_v6 = vmul.f32 %v6090_v43, %v2937_v62 }
 0x1d1   : > { %v2663_v60 = vmin.f32 %v7404_v53, 20.0  ;;  %5761 = vmatmul.msk.f32.gmra.mxu2 %vm1186_vm0, %v5697_v49  ;;  %5805 = vmatmul.msk.f32.gmra.mxu3 %vm3495_vm2, %v3428_v59  ;;  %v5700_v49 = vld [vmem:[%s7122_s12 + $0x500] sm:$0xff]  ;;  %vm2599_vm13 = vcmp.gt.f32.partialorder %v7404_v53, 20.0 }
 0x1d2   : > { %5569 = vmatmul.msk.f32.gmra.mxu0 %vm1186_vm0, %v5505_v57  ;;  %5633 = vmatmul.msk.f32.gmra.mxu1 %vm1186_vm0, %v1082_v58  ;;  %v5508_v58 = vld [vmem:[%s7122_s12 + $0x300] sm:$0xff] }
 0x1d3   : > { %v6094_v0 = vpop.eup %6093  ;;  %v2739_v1 = vmul.f32 1.442695, %v2663_v60  ;;  %v1085_v59 = vld [vmem:[%s7122_s12 + $0x100] sm:$0xff] }
 0x1d4   : > { %v6096_v50 = vpop.eup %6095  ;;  %v2302_v51 = vpop.f32.mrf.mxu2  ;;  %v2942_v52 = vadd.f32 1.0, %v6094_v0  ;;  %v2945_v3 = vmul.f32 -0.5, %v6094_v0  ;;  %v2948_v22 = vand.u32 2147483647, %v6094_v0 }
 0x1d5   : > { %6097 = vpow2.f32 %v2739_v1  ;;  %v2468_v4 = vadd.f32 %v2302_v51, %v1837_v61  ;;  %v2935_v5 = vmul.f32 0.6931472, %v6096_v50 }
 0x1d6   : > { %6099 = vlog2.f32 %v2942_v52  ;;  %v2946_v19 = vadd.f32 1.0, %v2945_v3  ;;  %vm2949_vm10 = vcmp.lt.f32.partialorder %v2948_v22, 0.0004427343 }
 0x1d7   : > { %v7417_v11 = vadd.f32 %v7253_v2, %v2468_v4  ;;  %v2941_v12 = vsel %vm2940_vm8, %v2938_v6, %v2935_v5  ;;  %v1438_v13 = vpop.f32.mrf.mxu0  ;;  %v1839_v14 = vpop.f32.mrf.mxu1 }
 0x1d8   : > { %v3429_v18 = vsel %vm2597_vm9, %v7378_v10, %v2941_v12  ;;  %v1840_v21 = vadd.f32 %v1839_v14, %v1438_v13  ;;  %v2947_v10 = vmul.f32 %v6094_v0, %v2946_v19 }
 0x1d9   : > { %v2664_v20 = vmin.f32 %v7417_v11, 20.0  ;;  %5762 = vmatmul.msk.f32.gmra.mxu2 %vm1186_vm0, %v5698_v7  ;;  %5806 = vmatmul.msk.f32.gmra.mxu3 %vm3495_vm2, %v3429_v18  ;;  %v5701_v7 = vld [vmem:[%s7122_s12 + $0x508] sm:$0xff]  ;;  %vm2600_vm15 = vcmp.gt.f32.partialorder %v7417_v11, 20.0 }
 0x1da   : > { %5570 = vmatmul.msk.f32.gmra.mxu0 %vm1186_vm0, %v5506_v15  ;;  %5634 = vmatmul.msk.f32.gmra.mxu1 %vm1186_vm0, %v1083_v16  ;;  %v5509_v16 = vld [vmem:[%s7122_s12 + $0x308] sm:$0xff] }
 0x1db   : > { %v6098_v23 = vpop.eup %6097  ;;  %v2741_v17 = vmul.f32 1.442695, %v2664_v20  ;;  %v1086_v18 = vld [vmem:[%s7122_s12 + $0x108] sm:$0xff] }
 0x1dc   : > { %v6100_v8 = vpop.eup %6099  ;;  %v2305_v9 = vpop.f32.mrf.mxu2  ;;  %v2951_v24 = vadd.f32 1.0, %v6098_v23  ;;  %v2954_v27 = vmul.f32 -0.5, %v6098_v23  ;;  %v2957_v43 = vand.u32 2147483647, %v6098_v23 }
 0x1dd   : > { %6101 = vpow2.f32 %v2741_v17  ;;  %v2469_v25 = vadd.f32 %v2305_v9, %v1840_v21  ;;  %v2944_v26 = vmul.f32 0.6931472, %v6100_v8 }
 0x1de   : > { %6103 = vlog2.f32 %v2951_v24  ;;  %v2955_v42 = vadd.f32 1.0, %v2954_v27  ;;  %vm2958_vm12 = vcmp.lt.f32.partialorder %v2957_v43, 0.0004427343 }
 0x1df   : > { %v7430_v33 = vadd.f32 %v7253_v2, %v2469_v25  ;;  %v2950_v34 = vsel %vm2949_vm10, %v2947_v10, %v2944_v26  ;;  %v1441_v35 = vpop.f32.mrf.mxu0  ;;  %v1842_v36 = vpop.f32.mrf.mxu1 }
 0x1e0   : > { %v3430_v39 = vsel %vm2598_vm11, %v7391_v32, %v2950_v34  ;;  %v1843_v41 = vadd.f32 %v1842_v36, %v1441_v35  ;;  %v2956_v48 = vmul.f32 %v6098_v23, %v2955_v42 }
 0x1e1   : > { %v2665_v40 = vmin.f32 %v7430_v33, 20.0  ;;  %5763 = vmatmul.msk.f32.gmra.mxu2 %vm1186_vm0, %v5699_v28  ;;  %5807 = vmatmul.msk.f32.gmra.mxu3 %vm3495_vm2, %v3430_v39  ;;  %v5702_v28 = vld [vmem:[%s7122_s12 + $0x510] sm:$0xff]  ;;  %vm2601_vm3 = vcmp.gt.f32.partialorder %v7430_v33, 20.0 }
 0x1e2   : > { %5571 = vmatmul.msk.f32.gmra.mxu0 %vm1186_vm0, %v5507_v37  ;;  %5635 = vmatmul.msk.f32.gmra.mxu1 %vm1186_vm0, %v1084_v38  ;;  %v5510_v38 = vld [vmem:[%s7122_s12 + $0x310] sm:$0xff] }
 0x1e3   : > { %v6102_v44 = vpop.eup %6101  ;;  %v2743_v31 = vmul.f32 1.442695, %v2665_v40  ;;  %v1087_v39 = vld [vmem:[%s7122_s12 + $0x110] sm:$0xff] }
 0x1e4   : > { %v6104_v29 = vpop.eup %6103  ;;  %v2308_v30 = vpop.f32.mrf.mxu2  ;;  %v2960_v32 = vadd.f32 1.0, %v6102_v44  ;;  %v2963_v45 = vmul.f32 -0.5, %v6102_v44  ;;  %v2966_v0 = vand.u32 2147483647, %v6102_v44 }
 0x1e5   : > { %6105 = vpow2.f32 %v2743_v31  ;;  %v2470_v46 = vadd.f32 %v2308_v30, %v1843_v41  ;;  %v2953_v47 = vmul.f32 0.6931472, %v6104_v29 }
 0x1e6   : > { %6107 = vlog2.f32 %v2960_v32  ;;  %v2964_v61 = vadd.f32 1.0, %v2963_v45  ;;  %vm2967_vm14 = vcmp.lt.f32.partialorder %v2966_v0, 0.0004427343 }
 0x1e7   : > { %v7443_v54 = vadd.f32 %v7253_v2, %v2470_v46  ;;  %v2959_v55 = vsel %vm2958_vm12, %v2956_v48, %v2953_v47  ;;  %v1444_v56 = vpop.f32.mrf.mxu0  ;;  %v1845_v57 = vpop.f32.mrf.mxu1 }
 0x1e8   : > { %v3431_v60 = vsel %vm2599_vm13, %v7404_v53, %v2959_v55  ;;  %v1846_v63 = vadd.f32 %v1845_v57, %v1444_v56  ;;  %v2965_v53 = vmul.f32 %v6102_v44, %v2964_v61 }
 0x1e9   : > { %v2666_v62 = vmin.f32 %v7443_v54, 20.0  ;;  %5764 = vmatmul.msk.f32.gmra.mxu2 %vm1186_vm0, %v5700_v49  ;;  %5808 = vmatmul.msk.f32.gmra.mxu3 %vm3495_vm2, %v3431_v60  ;;  %v5703_v49 = vld [vmem:[%s7122_s12 + $0x518] sm:$0xff]  ;;  %vm2602_vm5 = vcmp.gt.f32.partialorder %v7443_v54, 20.0 }
 0x1ea   : > { %5572 = vmatmul.msk.f32.gmra.mxu0 %vm1186_vm0, %v5508_v58  ;;  %5636 = vmatmul.msk.f32.gmra.mxu1 %vm1186_vm0, %v1085_v59  ;;  %v5511_v59 = vld [vmem:[%s7122_s12 + $0x318] sm:$0xff] }
 0x1eb   : > { %v6106_v1 = vpop.eup %6105  ;;  %v2745_v50 = vmul.f32 1.442695, %v2666_v62  ;;  %v1088_v60 = vld [vmem:[%s7122_s12 + $0x118] sm:$0xff] }
 0x1ec   : > { %v6108_v51 = vpop.eup %6107  ;;  %v2311_v52 = vpop.f32.mrf.mxu2  ;;  %v2969_v3 = vadd.f32 1.0, %v6106_v1  ;;  %v2972_v6 = vmul.f32 -0.5, %v6106_v1  ;;  %v2975_v23 = vand.u32 2147483647, %v6106_v1 }
 0x1ed   : > { %6109 = vpow2.f32 %v2745_v50  ;;  %v2471_v4 = vadd.f32 %v2311_v52, %v1846_v63  ;;  %v2962_v5 = vmul.f32 0.6931472, %v6108_v51 }
 0x1ee   : > { %6111 = vlog2.f32 %v2969_v3  ;;  %v2973_v22 = vadd.f32 1.0, %v2972_v6  ;;  %vm2976_vm1 = vcmp.lt.f32.partialorder %v2975_v23, 0.0004427343  ;;  %v7512_v23 = vld [vmem:[%s10025_s4] ss:$0 sm:$0xff] }
 0x1ef   : > { %v7456_v12 = vadd.f32 %v7253_v2, %v2471_v4  ;;  %v2968_v13 = vsel %vm2967_vm14, %v2965_v53, %v2962_v5  ;;  %v1447_v14 = vpop.f32.mrf.mxu0  ;;  %v1848_v15 = vpop.f32.mrf.mxu1  ;;  %v5704_v5 = vld [vmem:[%s7122_s12 + $0x520] sm:$0xff] }
 0x1f0   : > { %v3432_v19 = vsel %vm2600_vm15, %v7417_v11, %v2968_v13  ;;  %v1849_v21 = vadd.f32 %v1848_v15, %v1447_v14  ;;  %v2974_v27 = vmul.f32 %v6106_v1, %v2973_v22 }
 0x1f1   : > { %v2667_v20 = vmin.f32 %v7456_v12, 20.0  ;;  %5765 = vmatmul.msk.f32.gmra.mxu2 %vm1186_vm0, %v5701_v7  ;;  %5809 = vmatmul.msk.f32.gmra.mxu3 %vm3495_vm2, %v3432_v19  ;;  %v7497_v7 = vld [vmem:[%s10023_s2] ss:$0 sm:$0xff]  ;;  %vm2603_vm7 = vcmp.gt.f32.partialorder %v7456_v12, 20.0 }
 0x1f2   : > { %5573 = vmatmul.msk.f32.gmra.mxu0 %vm1186_vm0, %v5509_v16  ;;  %5637 = vmatmul.msk.f32.gmra.mxu1 %vm1186_vm0, %v1086_v18  ;;  %v5512_v18 = vld [vmem:[%s7122_s12 + $0x320] sm:$0xff] }
 0x1f3   : > { %v6110_v17 = vpop.eup %6109  ;;  %v2747_v8 = vmul.f32 1.442695, %v2667_v20  ;;  %v1089_v19 = vld [vmem:[%s7122_s12 + $0x120] sm:$0xff] }
 0x1f4   : > { %v6112_v9 = vpop.eup %6111  ;;  %v2314_v10 = vpop.f32.mrf.mxu2  ;;  %v2978_v11 = vadd.f32 1.0, %v6110_v17  ;;  %v2981_v24 = vmul.f32 -0.5, %v6110_v17  ;;  %v2984_v44 = vand.u32 2147483647, %v6110_v17 }
 0x1f5   : > { %6113 = vpow2.f32 %v2747_v8  ;;  %v2472_v25 = vadd.f32 %v2314_v10, %v1849_v21  ;;  %v2971_v26 = vmul.f32 0.6931472, %v6112_v9 }
 0x1f6   : > { %6115 = vlog2.f32 %v2978_v11  ;;  %v2982_v41 = vadd.f32 1.0, %v2981_v24  ;;  %vm2985_vm4 = vcmp.lt.f32.partialorder %v2984_v44, 0.0004427343  ;;  %v1090_v44 = vld [vmem:[%s7122_s12 + $0x128] sm:$0xff] }
 0x1f7   : > { %v7469_v34 = vadd.f32 %v7253_v2, %v2472_v25  ;;  %v2977_v35 = vsel %vm2976_vm1, %v2974_v27, %v2971_v26  ;;  %v1450_v36 = vpop.f32.mrf.mxu0  ;;  %v1851_v37 = vpop.f32.mrf.mxu1 }
 0x1f8   : > { %v3433_v40 = vsel %vm2601_vm3, %v7430_v33, %v2977_v35  ;;  %v1852_v43 = vadd.f32 %v1851_v37, %v1450_v36  ;;  %v2983_v33 = vmul.f32 %v6110_v17, %v2982_v41  ;;  %v5705_v35 = vld [vmem:[%s7122_s12 + $0x528] sm:$0xff] }
 0x1f9   : > { %v2668_v42 = vmin.f32 %v7469_v34, 20.0  ;;  %5766 = vmatmul.msk.f32.gmra.mxu2 %vm1186_vm0, %v5702_v28  ;;  %5810 = vmatmul.msk.f32.gmra.mxu3 %vm3495_vm2, %v3433_v40  ;;  %vm2604_vm9 = vcmp.gt.f32.partialorder %v7469_v34, 20.0 }
 0x1fa   : > { %5574 = vmatmul.msk.f32.gmra.mxu0 %vm1186_vm0, %v5510_v38  ;;  %5638 = vmatmul.msk.f32.gmra.mxu1 %vm1186_vm0, %v1087_v39 }
 0x1fb   : > { %v6114_v31 = vpop.eup %6113  ;;  %v2749_v29 = vmul.f32 1.442695, %v2668_v42  ;;  %v5513_v42 = vld [vmem:[%s7122_s12 + $0x328] sm:$0xff] }
 0x1fc   : > { %v6116_v30 = vpop.eup %6115  ;;  %v2317_v32 = vpop.f32.mrf.mxu2  ;;  %v2987_v45 = vadd.f32 1.0, %v6114_v31  ;;  %v2990_v48 = vmul.f32 -0.5, %v6114_v31 }
 0x1fd   : > { %6117 = vpow2.f32 %v2749_v29  ;;  %v2473_v46 = vadd.f32 %v2317_v32, %v1852_v43  ;;  %v2980_v47 = vmul.f32 0.6931472, %v6116_v30 }
 0x1fe   : > { %6119 = vlog2.f32 %v2987_v45  ;;  %v2991_v0 = vadd.f32 1.0, %v2990_v48 }
 0x1ff   : > { %v7482_v55 = vadd.f32 %v7253_v2, %v2473_v46  ;;  %v2986_v56 = vsel %vm2985_vm4, %v2983_v33, %v2980_v47  ;;  %v1453_v57 = vpop.f32.mrf.mxu0  ;;  %v1854_v58 = vpop.f32.mrf.mxu1  ;;  %v2993_v2 = vand.u32 2147483647, %v6114_v31 }
 0x200   : > { %v3434_v61 = vsel %vm2602_vm5, %v7443_v54, %v2986_v56  ;;  %v1855_v63 = vadd.f32 %v1854_v58, %v1453_v57  ;;  %v2992_v4 = vmul.f32 %v6114_v31, %v2991_v0  ;;  %vm5308_vm5 = vcmask 31744  }
 0x201   : > { %v2669_v62 = vmin.f32 %v7482_v55, 20.0  ;;  %5767 = vmatmul.msk.f32.gmra.mxu2 %vm1186_vm0, %v5703_v49  ;;  %5811 = vmatmul.msk.f32.gmra.mxu3 %vm3495_vm2, %v3434_v61  ;;  %vm2994_vm6 = vcmp.lt.f32.partialorder %v2993_v2, 0.0004427343  ;;  %v5706_v61 = vld [vmem:[%s7122_s12 + $0x530] sm:$0xff]  ;;  %vm2605_vm11 = vcmp.gt.f32.partialorder %v7482_v55, 20.0 }
 0x202   : > { %5575 = vmatmul.msk.f32.gmra.mxu0 %vm1186_vm0, %v5511_v59  ;;  %5639 = vmatmul.msk.f32.gmra.mxu1 %vm1186_vm0, %v1088_v60 }
 0x203   : > { %v6118_v1 = vpop.eup %6117  ;;  %v2751_v50 = vmul.f32 1.442695, %v2669_v62 }
 0x204   : > { %v6120_v51 = vpop.eup %6119  ;;  %v2320_v52 = vpop.f32.mrf.mxu2  ;;  %v2996_v54 = vadd.f32 1.0, %v6118_v1  ;;  %v2999_v6 = vmul.f32 -0.5, %v6118_v1  ;;  %v3002_v9 = vand.u32 2147483647, %v6118_v1 }
 0x205   : > { %6121 = vpow2.f32 %v2751_v50  ;;  %v2474_v53 = vadd.f32 %v2320_v52, %v1855_v63  ;;  %v2989_v3 = vmul.f32 0.6931472, %v6120_v51  ;;  %v5514_v51 = vld [vmem:[%s7122_s12 + $0x330] sm:$0xff] }
 0x206   : > { %6123 = vlog2.f32 %v2996_v54  ;;  %v3000_v17 = vadd.f32 1.0, %v2999_v6  ;;  %vm3003_vm8 = vcmp.lt.f32.partialorder %v3002_v9, 0.0004427343 }
 0x207   : > { %v7500_v13 = vadd.f32 %v7497_v7, %v2474_v53  ;;  %v2995_v14 = vsel %vm2994_vm6, %v2992_v4, %v2989_v3  ;;  %v1456_v15 = vpop.f32.mrf.mxu0  ;;  %v1857_v16 = vpop.f32.mrf.mxu1  ;;  %v1091_v53 = vld [vmem:[%s7122_s12 + $0x130] sm:$0xff] }
 0x208   : > { %v3435_v20 = vsel %vm2603_vm7, %v7456_v12, %v2995_v14  ;;  %v1858_v22 = vadd.f32 %v1857_v16, %v1456_v15  ;;  %v3001_v37 = vmul.f32 %v6118_v1, %v3000_v17  ;;  %v3897_v16 = vlaneseq }
 0x209   : > { %v2670_v21 = vmin.f32 %v7500_v13, 20.0  ;;  %5768 = vmatmul.msk.f32.gmra.mxu2 %vm1186_vm0, %v5704_v5  ;;  %5812 = vmatmul.msk.f32.gmra.mxu3 %vm3495_vm2, %v3435_v20  ;;  %vm2606_vm12 = vcmp.gt.f32.partialorder %v7500_v13, 20.0 }
 0x20a   : > { %5576 = vmatmul.msk.f32.gmra.mxu0 %vm1186_vm0, %v5512_v18  ;;  %5640 = vmatmul.msk.f32.gmra.mxu1 %vm1186_vm0, %v1089_v19 }
 0x20b   : > { %v6122_v8 = vpop.eup %6121  ;;  %v2753_v12 = vmul.f32 1.442695, %v2670_v21 }
 0x20c   : > { %v6124_v10 = vpop.eup %6123  ;;  %v2323_v11 = vpop.f32.mrf.mxu2  ;;  %v3005_v25 = vadd.f32 1.0, %v6122_v8  ;;  %v3008_v26 = vmul.f32 -0.5, %v6122_v8  ;;  %v3011_v33 = vand.u32 2147483647, %v6122_v8 }
 0x20d   : > { %v3705_v24 = vpop.f32.mrf.mxu3  ;;  %6125 = vpow2.f32 %v2753_v12  ;;  %v2475_v27 = vadd.f32 %v2323_v11, %v1858_v22  ;;  %v2998_v36 = vmul.f32 0.6931472, %v6124_v10  ;;  %v5707_v12 = vld [vmem:[%s7122_s12 + $0x538] sm:$0xff] }
 0x20e   : > { %v7517_v28 = vadd.f32 %v7512_v23, %v3705_v24  ;;  %6127 = vlog2.f32 %v3005_v25  ;;  %v3009_v31 = vadd.f32 1.0, %v3008_v26  ;;  %vm3012_vm10 = vcmp.lt.f32.partialorder %v3011_v33, 0.0004427343 }
 0x20f   : > { %v7521_v38 = vadd.f32 %v7497_v7, %v2475_v27  ;;  %v1459_v40 = vpop.f32.mrf.mxu0  ;;  %v1860_v41 = vpop.f32.mrf.mxu1  ;;  %v3004_v43 = vsel %vm3003_vm8, %v3001_v37, %v2998_v36  ;;  %v5515_v37 = vld [vmem:[%s7122_s12 + $0x338] sm:$0xff] }
 0x210   : > { %v5860_v39 = vmul.f32 -1.442695, %v7517_v28  ;;  %v3436_v30 = vsel %vm2604_vm9, %v7469_v34, %v3004_v43  ;;  %v1861_v32 = vadd.f32 %v1860_v41, %v1459_v40  ;;  %v3010_v56 = vmul.f32 %v6122_v8, %v3009_v31  ;;  %v1092_v43 = vld [vmem:[%s7122_s12 + $0x138] sm:$0xff] }
 0x211   : > { %v2671_v29 = vmin.f32 %v7521_v38, 20.0  ;;  %5769 = vmatmul.msk.f32.gmra.mxu2 %vm1186_vm0, %v5705_v35  ;;  %5813 = vmatmul.msk.f32.gmra.mxu3 %vm3495_vm2, %v3436_v30  ;;  %v7589_v40 = vand.u32 127, %v3897_v16  ;;  %vm2607_vm1 = vcmp.gt.f32.partialorder %v7521_v38, 20.0 }
 0x212   : > { %6129 = vpow2.f32 %v5860_v39  ;;  %5577 = vmatmul.msk.f32.gmra.mxu0 %vm1186_vm0, %v5513_v42  ;;  %5641 = vmatmul.msk.f32.gmra.mxu1 %vm1186_vm0, %v1090_v44 }
 0x213   : > { %v6126_v45 = vpop.eup %6125  ;;  %v2755_v46 = vmul.f32 1.442695, %v2671_v29  ;;  %vm5243_vm4 = vcmp.eq.s32.totalorder %v7589_v40, 0 }
 0x214   : > { %v6128_v47 = vpop.eup %6127  ;;  %v2326_v48 = vpop.f32.mrf.mxu2  ;;  %v3014_v57 = vadd.f32 1.0, %v6126_v45  ;;  %v3017_v58 = vmul.f32 -0.5, %v6126_v45  ;;  %v3020_v6 = vand.u32 2147483647, %v6126_v45 }
 0x215   : > { %v3708_v49 = vpop.f32.mrf.mxu3  ;;  %6131 = vpow2.f32 %v2755_v46  ;;  %v2476_v34 = vadd.f32 %v2326_v48, %v1861_v32  ;;  %v3007_v60 = vmul.f32 0.6931472, %v6128_v47 }
 0x216   : > { %v7534_v59 = vadd.f32 %v7512_v23, %v3708_v49  ;;  %6133 = vlog2.f32 %v3014_v57  ;;  %v3018_v3 = vadd.f32 1.0, %v3017_v58  ;;  %vm7563_vm13 = vcmp.lt.f32.partialorder %v3020_v6, 0.0004427343  ;;  %v5516_v6 = vld [vmem:[%s7122_s12 + $0x340] sm:$0xff] }
 0x217   : > { %v7538_v63 = vadd.f32 %v7497_v7, %v2476_v34  ;;  %v3013_v2 = vsel %vm3012_vm10, %v3010_v56, %v3007_v60  ;;  %v1462_v1 = vpop.f32.mrf.mxu0  ;;  %v1863_v50 = vpop.f32.mrf.mxu1 }
 0x218   : > { %v6130_v62 = vpop.eup %6129  ;;  %v5861_v0 = vmul.f32 -1.442695, %v7534_v59  ;;  %v3437_v54 = vsel %vm2605_vm11, %v7482_v55, %v3013_v2  ;;  %v1864_v5 = vadd.f32 %v1863_v50, %v1462_v1  ;;  %v3019_v20 = vmul.f32 %v6126_v45, %v3018_v3 }
 0x219   : > { %v7543_v52 = vadd.f32 1.0, %v6130_v62  ;;  %v2672_v4 = vmin.f32 %v7538_v63, 20.0  ;;  %5770 = vmatmul.msk.f32.gmra.mxu2 %vm1186_vm0, %v5706_v61  ;;  %5814 = vmatmul.msk.f32.gmra.mxu3 %vm3495_vm2, %v3437_v54  ;;  %vm2608_vm9 = vcmp.gt.f32.partialorder %v7538_v63, 20.0 }
 0x21a   : > { %6135 = vpow2.f32 %v5861_v0  ;;  %5578 = vmatmul.msk.f32.gmra.mxu0 %vm1186_vm0, %v5514_v51  ;;  %5642 = vmatmul.msk.f32.gmra.mxu1 %vm1186_vm0, %v1091_v53  ;;  %v5708_v0 = vld [vmem:[%s7122_s12 + $0x540] sm:$0xff] }
 0x21b   : > { %6137 = vrcp.f32 %v7543_v52  ;;  %v7552_v14 = vpop.eup %6131  ;;  %v2757_v55 = vmul.f32 1.442695, %v2672_v4  ;;  %v4164_v24 = vand.u32 2147483647, %v7543_v52  ;;  %v4166_v30 = vand.u32 2147483648, %v7543_v52 }
 0x21c   : > { %v6134_v15 = vpop.eup %6133  ;;  %v2329_v18 = vpop.f32.mrf.mxu2  ;;  %v3023_v21 = vadd.f32 1.0, %v7552_v14  ;;  %v3026_v10 = vmul.f32 -0.5, %v7552_v14  ;;  %vm4160_vm14 = vweird.f32 %v7543_v52  ;;  %v3029_v56 = vand.u32 2147483647, %v7552_v14 }
 0x21d   : > { %v3711_v19 = vpop.f32.mrf.mxu3  ;;  %6139 = vpow2.f32 %v2757_v55  ;;  %v2477_v22 = vadd.f32 %v2329_v18, %v1864_v5  ;;  %v3016_v8 = vmul.f32 0.6931472, %v6134_v15  ;;  %vm7612_vm15 = vcmp.eq.f32.partialorder %v4164_v24, 8.507059e+37 }
 0x21e   : > { %v7559_v17 = vadd.f32 %v7512_v23, %v3711_v19  ;;  %6141 = vlog2.f32 %v3023_v21  ;;  %v4167_v62 = vor.u32 1.1754944e-38, %v4166_v30  ;;  %vm7650_vm8 = vcmp.lt.f32.partialorder %v3029_v56, 0.0004427343 }
 0x21f   : > { %v7576_v25 = vadd.f32 %v7497_v7, %v2477_v22  ;;  %v3022_v27 = vsel %vm7563_vm13, %v3019_v20, %v3016_v8  ;;  %v1465_v35 = vpop.f32.mrf.mxu0  ;;  %v1866_v36 = vpop.f32.mrf.mxu1 }
 0x220   : > { %v6136_v11 = vpop.eup %6135  ;;  %v5862_v26 = vmul.f32 -1.442695, %v7559_v17  ;;  %v3438_v42 = vsel %vm2606_vm12, %v7500_v13, %v3022_v27  ;;  %v1867_v29 = vadd.f32 %v1866_v36, %v1465_v35  ;;  %v3027_v13 = vadd.f32 1.0, %v3026_v10 }
 0x221   : > { %v7582_v39 = vpop.eup %6137  ;;  %v7591_v41 = vadd.f32 1.0, %v6136_v11  ;;  %v2673_v31 = vmin.f32 %v7576_v25, 20.0  ;;  %5771 = vmatmul.msk.f32.gmra.mxu2 %vm1186_vm0, %v5707_v12  ;;  %5815 = vmatmul.msk.f32.gmra.mxu3 %vm3495_vm2, %v3438_v42 }
 0x222   : > { %v4156_v44 = vmul.f32 %v7582_v39, %v7543_v52  ;;  %6143 = vpow2.f32 %v5862_v26  ;;  %5579 = vmatmul.msk.f32.gmra.mxu0 %vm1186_vm0, %v5515_v37  ;;  %5643 = vmatmul.msk.f32.gmra.mxu1 %vm1186_vm0, %v1092_v43  ;;  %vm4161_vm3 = vweird.f32 %v7582_v39  ;;  %v3028_v1 = vmul.f32 %v7552_v14, %v3027_v13  ;;  %v1093_v14 = vld [vmem:[%s7122_s12 + $0x140] sm:$0xff]  ;;  %v5709_v13 = vld [vmem:[%s7122_s12 + $0x548] sm:$0xff] }
 0x223   : > { %6145 = vrcp.f32 %v7591_v41  ;;  %v7605_v32 = vpop.eup %6139  ;;  %v2759_v46 = vmul.f32 1.442695, %v2673_v31  ;;  %vm4175_vm6 = vweird.f32 %v7591_v41  ;;  %v4179_v54 = vand.u32 2147483647, %v7591_v41  ;;  %vm4162_vm7 = vmor %vm4160_vm14, %vm4161_vm3 }
 0x224   : > { %v4157_v33 = vsub.f32 1.0, %v4156_v44  ;;  %v6142_v47 = vpop.eup %6141  ;;  %v2332_v48 = vpop.f32.mrf.mxu2  ;;  %v3032_v57 = vadd.f32 1.0, %v7605_v32  ;;  %v3035_v58 = vmul.f32 -0.5, %v7605_v32  ;;  %v4181_v53 = vand.u32 2147483648, %v7591_v41 }
 0x225   : > { %v3714_v49 = vpop.f32.mrf.mxu3  ;;  %6147 = vpow2.f32 %v2759_v46  ;;  %v2478_v60 = vadd.f32 %v2332_v48, %v1867_v29  ;;  %v3025_v2 = vmul.f32 0.6931472, %v6142_v47  ;;  %v3038_v9 = vand.u32 2147483647, %v7605_v32 }
 0x226   : > { %v4158_v34 = vmul.f32 %v7582_v39, %v4157_v33  ;;  %v7626_v61 = vadd.f32 %v7512_v23, %v3714_v49  ;;  %6149 = vlog2.f32 %v3032_v57  ;;  %v3036_v19 = vadd.f32 1.0, %v3035_v58  ;;  %v5517_v49 = vld [vmem:[%s7122_s12 + $0x348] sm:$0xff] }
 0x227   : > { %v7637_v3 = vadd.f32 %v7497_v7, %v2478_v60  ;;  %v1468_v4 = vpop.f32.mrf.mxu0  ;;  %v1869_v5 = vpop.f32.mrf.mxu1  ;;  %v3031_v52 = vsel %vm7650_vm8, %v3028_v1, %v3025_v2  ;;  %vm7670_vm10 = vcmp.eq.f32.partialorder %v4179_v54, 8.507059e+37  ;;  %v4182_v36 = vor.u32 1.1754944e-38, %v4181_v53  ;;  %v1094_v60 = vld [vmem:[%s7122_s12 + $0x148] sm:$0xff] }
 0x228   : > { %v6144_v50 = vpop.eup %6143  ;;  %v4159_v51 = vadd.f32 %v7582_v39, %v4158_v34  ;;  %v5863_v16 = vmul.f32 -1.442695, %v7626_v61  ;;  %v1870_v12 = vadd.f32 %v1869_v5, %v1468_v4  ;;  %v3439_v37 = vsel %vm2607_vm1, %v7521_v38, %v3031_v52 }
 0x229   : > { %v7641_v55 = vpop.eup %6145  ;;  %v7647_v15 = vadd.f32 1.0, %v6144_v50  ;;  %v2674_v22 = vmin.f32 %v7637_v3, 20.0  ;;  %5772 = vmatmul.msk.f32.gmra.mxu2 %vm1186_vm0, %v5708_v0  ;;  %v3037_v43 = vmul.f32 %v7605_v32, %v3036_v19  ;;  %5816 = vmatmul.msk.f32.gmra.mxu3 %vm3495_vm2, %v3439_v37  ;;  %vm7696_vm12 = vcmp.lt.f32.partialorder %v3038_v9, 0.0004427343 }
 0x22a   : > { %v4163_v20 = vsel %vm4162_vm7, %v7582_v39, %v4159_v51  ;;  %v4171_v21 = vmul.f32 %v7641_v55, %v7591_v41  ;;  %5580 = vmatmul.msk.f32.gmra.mxu0 %vm1186_vm0, %v5516_v6  ;;  %5644 = vmatmul.msk.f32.gmra.mxu1 %vm1186_vm0, %v1093_v14  ;;  %vm4176_vm11 = vweird.f32 %v7641_v55  ;;  %vm2609_vm1 = vcmp.gt.f32.partialorder %v7576_v25, 20.0 }
 0x22b   : > { %v4168_v8 = vsel %vm7612_vm15, %v4167_v62, %v4163_v20  ;;  %6151 = vrcp.f32 %v7647_v15  ;;  %v7668_v10 = vpop.eup %6147  ;;  %v2761_v27 = vmul.f32 1.442695, %v2674_v22  ;;  %v4194_v29 = vand.u32 2147483647, %v7647_v15  ;;  %vm4177_vm13 = vmor %vm4175_vm6, %vm4176_vm11 }
 0x22c   : > { %v5115_v11 = vmul.f32 1.002, %v4168_v8  ;;  %v4172_v24 = vsub.f32 1.0, %v4171_v21  ;;  %v6150_v35 = vpop.eup %6149  ;;  %6153 = vpow2.f32 %v5863_v16  ;;  %v2335_v39 = vpop.f32.mrf.mxu2  ;;  %v3041_v56 = vadd.f32 1.0, %v7668_v10 }
 0x22d   : > { %v3717_v42 = vpop.f32.mrf.mxu3  ;;  %6155 = vpow2.f32 %v2761_v27  ;;  %v2479_v38 = vadd.f32 %v2335_v39, %v1870_v12  ;;  %v3034_v32 = vmul.f32 0.6931472, %v6150_v35  ;;  %v3044_v62 = vmul.f32 -0.5, %v7668_v10  ;;  %v5710_v12 = vld [vmem:[%s7122_s12 + $0x550] sm:$0xff] }
 0x22e   : > { %v5924_v44 = vadd.f32 -0.001, %v5115_v11  ;;  %v4173_v31 = vmul.f32 %v7641_v55, %v4172_v24  ;;  %v7689_v30 = vadd.f32 %v7512_v23, %v3717_v42  ;;  %v4196_v1 = vand.u32 2147483648, %v7647_v15  ;;  %v5518_v35 = vld [vmem:[%s7122_s12 + $0x350] sm:$0xff] }
 0x22f   : > { %v1471_v47 = vpop.f32.mrf.mxu0  ;;  %v1872_v48 = vpop.f32.mrf.mxu1  ;;  %v3040_v34 = vsel %vm7696_vm12, %v3037_v43, %v3034_v32  ;;  %vm4190_vm14 = vweird.f32 %v7647_v15  ;;  %v3045_v18 = vadd.f32 1.0, %v3044_v62  ;;  %v3047_v19 = vand.u32 2147483647, %v7668_v10 }
 0x230   : > { %v5244_v33 = vsel %vm5243_vm4, %v7517_v28, %v5924_v44  ;;  %v4174_v45 = vadd.f32 %v7641_v55, %v4173_v31  ;;  %v7711_v28 = vadd.f32 %v7497_v7, %v2479_v38  ;;  %v5864_v58 = vmul.f32 -1.442695, %v7689_v30 }
 0x231   : > { %v7702_v57 = vpop.eup %6151  ;;  %5309 = vst.msk [vmem:[%s7682_s9] sm:$0xff] %vm5308_vm5, %v5244_v33  ;;  %5773 = vmatmul.msk.f32.gmra.mxu2 %vm1186_vm0, %v5709_v13  ;;  %v1873_v41 = vadd.f32 %v1872_v48, %v1471_v47  ;;  %v3440_v53 = vsel %vm2608_vm9, %v7538_v63, %v3040_v34  ;;  %vm7742_vm3 = vcmp.eq.f32.partialorder %v4194_v29, 8.507059e+37  ;;  %v4197_v22 = vor.u32 1.1754944e-38, %v4196_v1 }
 0x232   : > { %v4178_v0 = vsel %vm4177_vm13, %v7641_v55, %v4174_v45  ;;  %v4186_v2 = vmul.f32 %v7702_v57, %v7647_v15  ;;  %v6154_v50 = vpop.eup %6153  ;;  %v2675_v54 = vmin.f32 %v7711_v28, 20.0  ;;  %6157 = vpow2.f32 %v5864_v58  ;;  %5581 = vmatmul.msk.f32.gmra.mxu0 %vm1186_vm0, %v5517_v49  ;;  %5645 = vmatmul.msk.f32.gmra.mxu1 %vm1186_vm0, %v1094_v60 }
 0x233   : > { %v4183_v51 = vsel %vm7670_vm10, %v4182_v36, %v4178_v0  ;;  %v7730_v6 = vadd.f32 1.0, %v6154_v50  ;;  %6159 = vlog2.f32 %v3041_v56  ;;  %v7733_v14 = vpop.eup %6155  ;;  %vm4191_vm15 = vweird.f32 %v7702_v57  ;;  %5817 = vmatmul.msk.f32.gmra.mxu3 %vm3495_vm2, %v3440_v53  ;;  %v1095_v36 = vld [vmem:[%s7122_s12 + $0x150] sm:$0xff] }
 0x234   : > { %v5116_v4 = vmul.f32 1.002, %v4183_v51  ;;  %v4187_v5 = vsub.f32 1.0, %v4186_v2  ;;  %v2338_v55 = vpop.f32.mrf.mxu2  ;;  %v2763_v52 = vmul.f32 1.442695, %v2675_v54  ;;  %v3050_v37 = vadd.f32 1.0, %v7733_v14  ;;  %vm4192_vm6 = vmor %vm4190_vm14, %vm4191_vm15 }
 0x235   : > { %v3720_v16 = vpop.f32.mrf.mxu3  ;;  %6161 = vrcp.f32 %v7730_v6  ;;  %v2480_v8 = vadd.f32 %v2338_v55, %v1873_v41  ;;  %v4211_v42 = vand.u32 2147483648, %v7730_v6  ;;  %v3046_v43 = vmul.f32 %v7668_v10, %v3045_v18  ;;  %v5711_v41 = vld [vmem:[%s7122_s12 + $0x558] sm:$0xff] }
 0x236   : > { %v5925_v63 = vadd.f32 -0.001, %v5116_v4  ;;  %v4188_v20 = vmul.f32 %v7702_v57, %v4187_v5  ;;  %v7752_v24 = vadd.f32 %v7512_v23, %v3720_v16  ;;  %vm7766_vm7 = vcmp.lt.f32.partialorder %v3047_v19, 0.0004427343  ;;  %v5519_v16 = vld [vmem:[%s7122_s12 + $0x358] sm:$0xff] }
 0x237   : > { %v1474_v26 = vpop.f32.mrf.mxu0  ;;  %v1875_v27 = vpop.f32.mrf.mxu1  ;;  %6163 = vlog2.f32 %v3050_v37  ;;  %v7778_v10 = vadd.f32 %v7497_v7, %v2480_v8  ;;  %v3053_v47 = vmul.f32 -0.5, %v7733_v14  ;;  %vm4205_vm8 = vweird.f32 %v7730_v6 }
 0x238   : > { %v5245_v9 = vsel %vm5243_vm4, %v7534_v59, %v5925_v63  ;;  %v4189_v11 = vadd.f32 %v7702_v57, %v4188_v20  ;;  %v6158_v39 = vpop.eup %6157  ;;  %v4209_v59 = vand.u32 2147483647, %v7730_v6  ;;  %v5865_v13 = vmul.f32 -1.442695, %v7752_v24  ;;  %v1096_v63 = vld [vmem:[%s7122_s12 + $0x158] sm:$0xff] }
 0x239   : > { %5310 = vst.msk [vmem:[%s7682_s9 + $0x8] sm:$0xff] %vm5308_vm5, %v5245_v9  ;;  %v6160_v31 = vpop.eup %6159  ;;  %v7771_v38 = vadd.f32 1.0, %v6158_v39  ;;  %5774 = vmatmul.msk.f32.gmra.mxu2 %vm1186_vm0, %v5710_v12  ;;  %6165 = vpow2.f32 %v2763_v52  ;;  %v1876_v46 = vadd.f32 %v1875_v27, %v1474_v26  ;;  %vm2610_vm10 = vcmp.gt.f32.partialorder %v7637_v3, 20.0 }
 0x23a   : > { %v4193_v29 = vsel %vm4192_vm6, %v7702_v57, %v4189_v11  ;;  %v3043_v32 = vmul.f32 0.6931472, %v6160_v31  ;;  %5582 = vmatmul.msk.f32.gmra.mxu0 %vm1186_vm0, %v5518_v35  ;;  %5646 = vmatmul.msk.f32.gmra.mxu1 %vm1186_vm0, %v1095_v36  ;;  %vm7789_vm9 = vcmp.eq.f32.partialorder %v4209_v59, 8.507059e+37  ;;  %v4212_v34 = vor.u32 1.1754944e-38, %v4211_v42 }
 0x23b   : > { %v4198_v15 = vsel %vm7742_vm3, %v4197_v22, %v4193_v29  ;;  %v7781_v33 = vpop.eup %6161  ;;  %6167 = vrcp.f32 %v7771_v38  ;;  %v4224_v0 = vand.u32 2147483647, %v7771_v38  ;;  %v2676_v2 = vmin.f32 %v7778_v10, 20.0 }
 0x23c   : > { %v5117_v45 = vmul.f32 1.002, %v4198_v15  ;;  %v4201_v48 = vmul.f32 %v7781_v33, %v7730_v6  ;;  %v2341_v56 = vpop.f32.mrf.mxu2  ;;  %6169 = vpow2.f32 %v5865_v13  ;;  %v3049_v60 = vsel %vm7766_vm7, %v3046_v43, %v3043_v32  ;;  %v5712_v32 = vld [vmem:[%s7122_s12 + $0x560] sm:$0xff] }
 0x23d   : > { %v3723_v57 = vpop.f32.mrf.mxu3  ;;  %v3441_v1 = vsel %vm2609_vm1, %v7576_v25, %v3049_v60  ;;  %v6164_v50 = vpop.eup %6163  ;;  %v2481_v54 = vadd.f32 %v2341_v56, %v1876_v46  ;;  %v3054_v4 = vadd.f32 1.0, %v3053_v47  ;;  %vm4206_vm11 = vweird.f32 %v7781_v33  ;;  %v5520_v47 = vld [vmem:[%s7122_s12 + $0x360] sm:$0xff] }
 0x23e   : > { %v5926_v58 = vadd.f32 -0.001, %v5117_v45  ;;  %v4202_v62 = vsub.f32 1.0, %v4201_v48  ;;  %5818 = vmatmul.msk.f32.gmra.mxu3 %vm3495_vm2, %v3441_v1  ;;  %v7807_v53 = vadd.f32 %v7512_v23, %v3723_v57  ;;  %v3052_v19 = vmul.f32 0.6931472, %v6164_v50  ;;  %vm4207_vm13 = vmor %vm4205_vm8, %vm4206_vm11 }
 0x23f   : > { %v1477_v5 = vpop.f32.mrf.mxu0  ;;  %v1878_v55 = vpop.f32.mrf.mxu1  ;;  %v7819_v21 = vadd.f32 %v7497_v7, %v2481_v54  ;;  %v3055_v52 = vmul.f32 %v7733_v14, %v3054_v4  ;;  %v4226_v11 = vand.u32 2147483648, %v7771_v38  ;;  %v2765_v27 = vmul.f32 1.442695, %v2676_v2 }
 0x240   : > { %v5246_v51 = vsel %vm5243_vm4, %v7559_v17, %v5926_v58  ;;  %v7810_v18 = vpop.eup %6165  ;;  %v4203_v25 = vmul.f32 %v7781_v33, %v4202_v62  ;;  %v3056_v17 = vand.u32 2147483647, %v7733_v14  ;;  %v5866_v22 = vmul.f32 -1.442695, %v7807_v53 }
 0x241   : > { %5311 = vst.msk [vmem:[%s7682_s9 + $0x10] sm:$0xff] %vm5308_vm5, %v5246_v51  ;;  %v6168_v20 = vpop.eup %6167  ;;  %5775 = vmatmul.msk.f32.gmra.mxu2 %vm1186_vm0, %v5711_v41  ;;  %v1879_v8 = vadd.f32 %v1878_v55, %v1477_v5  ;;  %v3059_v14 = vadd.f32 1.0, %v7810_v18  ;;  %v2677_v44 = vmin.f32 %v7819_v21, 20.0  ;;  %vm4220_vm15 = vweird.f32 %v7771_v38 }
 0x242   : > { %v4204_v12 = vadd.f32 %v7781_v33, %v4203_v25  ;;  %v4216_v9 = vmul.f32 %v6168_v20, %v7771_v38  ;;  %vm3057_vm12 = vcmp.lt.f32.partialorder %v3056_v17, 0.0004427343  ;;  %5583 = vmatmul.msk.f32.gmra.mxu0 %vm1186_vm0, %v5519_v16  ;;  %v6170_v26 = vpop.eup %6169  ;;  %6171 = vpow2.f32 %v5866_v22  ;;  %5647 = vmatmul.msk.f32.gmra.mxu1 %vm1186_vm0, %v1096_v63  ;;  %v1097_v38 = vld [vmem:[%s7122_s12 + $0x160] sm:$0xff] }
 0x243   : > { %v3058_v35 = vsel %vm3057_vm12, %v3055_v52, %v3052_v19  ;;  %v7835_v39 = vadd.f32 1.0, %v6170_v26  ;;  %vm4221_vm14 = vweird.f32 %v6168_v20  ;;  %vm7849_vm1 = vcmp.eq.f32.partialorder %v4224_v0, 8.507059e+37 }
 0x244   : > { %v4208_v36 = vsel %vm4207_vm13, %v7781_v33, %v4204_v12  ;;  %v4217_v37 = vsub.f32 1.0, %v4216_v9  ;;  %v3442_v59 = vsel %vm2610_vm10, %v7637_v3, %v3058_v35  ;;  %v2344_v42 = vpop.f32.mrf.mxu2  ;;  %vm4222_vm3 = vmor %vm4220_vm15, %vm4221_vm14  ;;  %v4227_v58 = vor.u32 1.1754944e-38, %v4226_v11 }
 0x245   : > { %v3726_v6 = vpop.f32.mrf.mxu3  ;;  %v4213_v43 = vsel %vm7789_vm9, %v4212_v34, %v4208_v36  ;;  %v2482_v31 = vadd.f32 %v2344_v42, %v1879_v8  ;;  %6173 = vrcp.f32 %v7835_v39  ;;  %v2767_v34 = vmul.f32 1.442695, %v2677_v44  ;;  %v5713_v8 = vld [vmem:[%s7122_s12 + $0x568] sm:$0xff] }
 0x246   : > { %v7844_v29 = vadd.f32 %v7512_v23, %v3726_v6  ;;  %v5118_v13 = vmul.f32 1.002, %v4213_v43  ;;  %v4218_v15 = vmul.f32 %v6168_v20, %v4217_v37  ;;  %6175 = vpow2.f32 %v2765_v27  ;;  %5819 = vmatmul.msk.f32.gmra.mxu3 %vm3495_vm2, %v3442_v59  ;;  %v1098_v6 = vld [vmem:[%s7122_s12 + $0x168] sm:$0xff] }
 0x247   : > { %v7855_v33 = vadd.f32 %v7497_v7, %v2482_v31  ;;  %v1480_v45 = vpop.f32.mrf.mxu0  ;;  %v1881_v46 = vpop.f32.mrf.mxu1  ;;  %6177 = vlog2.f32 %v3059_v14  ;;  %v3062_v62 = vmul.f32 -0.5, %v7810_v18  ;;  %vm2611_vm6 = vcmp.gt.f32.partialorder %v7711_v28, 20.0  ;;  %v5521_v14 = vld [vmem:[%s7122_s12 + $0x368] sm:$0xff] }
 0x248   : > { %v5927_v48 = vadd.f32 -0.001, %v5118_v13  ;;  %v4219_v49 = vadd.f32 %v6168_v20, %v4218_v15  ;;  %v5867_v56 = vmul.f32 -1.442695, %v7844_v29  ;;  %v6172_v57 = vpop.eup %6171  ;;  %v3065_v4 = vand.u32 2147483647, %v7810_v18 }
 0x249   : > { %v2678_v60 = vmin.f32 %v7855_v33, 20.0  ;;  %5776 = vmatmul.msk.f32.gmra.mxu2 %vm1186_vm0, %v5712_v32  ;;  %v7867_v1 = vadd.f32 1.0, %v6172_v57  ;;  %v3063_v50 = vadd.f32 1.0, %v3062_v62  ;;  %v4241_v19 = vand.u32 2147483648, %v7835_v39 }
 0x24a   : > { %v5247_v0 = vsel %vm5243_vm4, %v7626_v61, %v5927_v48  ;;  %v4223_v2 = vsel %vm4222_vm3, %v6168_v20, %v4219_v49  ;;  %6179 = vpow2.f32 %v5867_v56  ;;  %5584 = vmatmul.msk.f32.gmra.mxu0 %vm1186_vm0, %v5520_v47  ;;  %5648 = vmatmul.msk.f32.gmra.mxu1 %vm1186_vm0, %v1097_v38  ;;  %v4239_v61 = vand.u32 2147483647, %v7835_v39 }
 0x24b   : > { %5312 = vst.msk [vmem:[%s7682_s9 + $0x18] sm:$0xff] %vm5308_vm5, %v5247_v0  ;;  %v4228_v41 = vsel %vm7849_vm1, %v4227_v58, %v4223_v2  ;;  %v7876_v51 = vpop.eup %6173  ;;  %6181 = vrcp.f32 %v7867_v1  ;;  %v2769_v17 = vmul.f32 1.442695, %v2678_v60  ;;  %v4254_v22 = vand.u32 2147483647, %v7867_v1  ;;  %v5714_v60 = vld [vmem:[%s7122_s12 + $0x570] sm:$0xff] }
 0x24c   : > { %v5119_v54 = vmul.f32 1.002, %v4228_v41  ;;  %v2347_v5 = vpop.f32.mrf.mxu2  ;;  %v7881_v16 = vpop.eup %6175  ;;  %v4231_v25 = vmul.f32 %v7876_v51, %v7835_v39  ;;  %6183 = vpow2.f32 %v2767_v34  ;;  %vm4236_vm7 = vweird.f32 %v7876_v51 }
 0x24d   : > { %v3729_v55 = vpop.f32.mrf.mxu3  ;;  %v6178_v63 = vpop.eup %6177  ;;  %v4256_v52 = vand.u32 2147483648, %v7867_v1  ;;  %v3064_v11 = vmul.f32 %v7810_v18, %v3063_v50  ;;  %v1882_v26 = vadd.f32 %v1881_v46, %v1480_v45  ;;  %vm3066_vm8 = vcmp.lt.f32.partialorder %v3065_v4, 0.0004427343 }
 0x24e   : > { %v5928_v20 = vadd.f32 -0.001, %v5119_v54  ;;  %v4232_v12 = vsub.f32 1.0, %v4231_v25  ;;  %v3061_v9 = vmul.f32 0.6931472, %v6178_v63  ;;  %v7896_v59 = vadd.f32 %v7512_v23, %v3729_v55  ;;  %v1099_v55 = vld [vmem:[%s7122_s12 + $0x170] sm:$0xff] }
 0x24f   : > { %v1483_v27 = vpop.f32.mrf.mxu0  ;;  %v1884_v35 = vpop.f32.mrf.mxu1  ;;  %v3068_v42 = vadd.f32 1.0, %v7881_v16  ;;  %v2483_v31 = vadd.f32 %v2347_v5, %v1882_v26  ;;  %v3071_v32 = vmul.f32 -0.5, %v7881_v16  ;;  %vm4235_vm9 = vweird.f32 %v7835_v39 }
 0x250   : > { %v6180_v36 = vpop.eup %6179  ;;  %v5248_v37 = vsel %vm5243_vm4, %v7689_v30, %v5928_v20  ;;  %v4233_v18 = vmul.f32 %v7876_v51, %v4232_v12  ;;  %v3067_v44 = vsel %vm3066_vm8, %v3064_v11, %v3061_v9  ;;  %v5868_v15 = vmul.f32 -1.442695, %v7896_v59  ;;  %vm4237_vm10 = vmor %vm4235_vm9, %vm4236_vm7 }
 0x251   : > { %5313 = vst.msk [vmem:[%s7682_s9 + $0x20] sm:$0xff] %vm5308_vm5, %v5248_v37  ;;  %v7903_v43 = vadd.f32 1.0, %v6180_v36  ;;  %5777 = vmatmul.msk.f32.gmra.mxu2 %vm1186_vm0, %v5713_v8  ;;  %v7906_v13 = vpop.eup %6181  ;;  %v3443_v30 = vsel %vm2611_vm6, %v7711_v28, %v3067_v44  ;;  %6185 = vlog2.f32 %v3068_v42  ;;  %vm4240_vm11 = vcmp.eq.f32.partialorder %v4239_v61, 8.507059e+37 }
 0x252   : > { %5585 = vmatmul.msk.f32.gmra.mxu0 %vm1186_vm0, %v5521_v14  ;;  %v7914_v3 = vpop.eup %6183  ;;  %v4234_v45 = vadd.f32 %v7876_v51, %v4233_v18  ;;  %v4246_v46 = vmul.f32 %v7906_v13, %v7867_v1  ;;  %5820 = vmatmul.msk.f32.gmra.mxu3 %vm3495_vm2, %v3443_v30  ;;  %v4242_v28 = vor.u32 1.1754944e-38, %v4241_v19  ;;  %vm4250_vm12 = vweird.f32 %v7867_v1 }
 0x253   : > { %6187 = vrcp.f32 %v7903_v43  ;;  %5649 = vmatmul.msk.f32.gmra.mxu1 %vm1186_vm0, %v1098_v6  ;;  %v3072_v56 = vadd.f32 1.0, %v3071_v32  ;;  %vm7927_vm13 = vcmp.eq.f32.partialorder %v4254_v22, 8.507059e+37  ;;  %v4257_v58 = vor.u32 1.1754944e-38, %v4256_v52 }
 0x254   : > { %6189 = vpow2.f32 %v2769_v17  ;;  %v2350_v47 = vpop.f32.mrf.mxu2  ;;  %v4238_v48 = vsel %vm4237_vm10, %v7876_v51, %v4234_v45  ;;  %v4247_v49 = vsub.f32 1.0, %v4246_v46  ;;  %v7932_v34 = vadd.f32 %v7497_v7, %v2483_v31  ;;  %v5522_v51 = vld [vmem:[%s7122_s12 + $0x370] sm:$0xff] }
 0x255   : > { %v3732_v39 = vpop.f32.mrf.mxu3  ;;  %6191 = vpow2.f32 %v5868_v15  ;;  %v4243_v38 = vsel %vm4240_vm11, %v4242_v28, %v4238_v48  ;;  %vm4251_vm14 = vweird.f32 %v7906_v13  ;;  %v3074_v2 = vand.u32 2147483647, %v7881_v16  ;;  %v1100_v28 = vld [vmem:[%s7122_s12 + $0x178] sm:$0xff] }
 0x256   : > { %v5120_v62 = vmul.f32 1.002, %v4243_v38  ;;  %v4248_v0 = vmul.f32 %v7906_v13, %v4247_v49  ;;  %v4271_v61 = vand.u32 2147483648, %v7903_v43  ;;  %vm2612_vm15 = vcmp.gt.f32.partialorder %v7778_v10, 20.0  ;;  %vm4252_vm1 = vmor %vm4250_vm12, %vm4251_vm14 }
 0x257   : > { %v1486_v41 = vpop.f32.mrf.mxu0  ;;  %v1887_v50 = vpop.f32.mrf.mxu1  ;;  %v1885_v4 = vadd.f32 %v1884_v35, %v1483_v27  ;;  %v7942_v5 = vadd.f32 %v7512_v23, %v3732_v39  ;;  %v3073_v20 = vmul.f32 %v7881_v16, %v3072_v56  ;;  %v2679_v8 = vmin.f32 %v7932_v34, 20.0 }
 0x258   : > { %v6186_v54 = vpop.eup %6185  ;;  %v5929_v19 = vadd.f32 -0.001, %v5120_v62  ;;  %v4249_v17 = vadd.f32 %v7906_v13, %v4248_v0  ;;  %vm3075_vm3 = vcmp.lt.f32.partialorder %v3074_v2, 0.0004427343  ;;  %v3077_v18 = vadd.f32 1.0, %v7914_v3 }
 0x259   : > { %v6188_v25 = vpop.eup %6187  ;;  %v3070_v63 = vmul.f32 0.6931472, %v6186_v54  ;;  %5778 = vmatmul.msk.f32.gmra.mxu2 %vm1186_vm0, %v5714_v60  ;;  %v2484_v12 = vadd.f32 %v2350_v47, %v1885_v4  ;;  %v5869_v27 = vmul.f32 -1.442695, %v7942_v5  ;;  %v4269_v31 = vand.u32 2147483647, %v7903_v43 }
 0x25a   : > { %v7948_v22 = vpop.eup %6189  ;;  %v4261_v52 = vmul.f32 %v6188_v25, %v7903_v43  ;;  %5586 = vmatmul.msk.f32.gmra.mxu0 %vm1186_vm0, %v5522_v51  ;;  %v5249_v16 = vsel %vm5243_vm4, %v7752_v24, %v5929_v19  ;;  %v4253_v11 = vsel %vm4252_vm1, %v7906_v13, %v4249_v17  ;;  %vm4266_vm6 = vweird.f32 %v6188_v25  ;;  %v5716_v17 = vld [vmem:[%s7122_s12 + $0x580] sm:$0xff] }
 0x25b   : > { %v6192_v9 = vpop.eup %6191  ;;  %v3076_v26 = vsel %vm3075_vm3, %v3073_v20, %v3070_v63  ;;  %5650 = vmatmul.msk.f32.gmra.mxu1 %vm1186_vm0, %v1099_v55  ;;  %5314 = vst.msk [vmem:[%s7682_s9 + $0x28] sm:$0xff] %vm5308_vm5, %v5249_v16  ;;  %v4258_v1 = vsel %vm7927_vm13, %v4257_v58, %v4253_v11  ;;  %v7974_v6 = vadd.f32 %v7497_v7, %v2484_v12  ;;  %6193 = vpow2.f32 %v5869_v27  ;;  %v5523_v7 = vld [vmem:[%s7122_s12 + $0x378] sm:$0xff]  ;;  %v5524_v16 = vld [vmem:[%s7122_s12 + $0x380] sm:$0xff] }
 0x25c   : > { %v4262_v35 = vsub.f32 1.0, %v4261_v52  ;;  %v7967_v14 = vadd.f32 1.0, %v6192_v9  ;;  %v3444_v24 = vsel %vm2612_vm15, %v7778_v10, %v3076_v26  ;;  %v2353_v36 = vpop.f32.mrf.mxu2  ;;  %v5121_v42 = vmul.f32 1.002, %v4258_v1  ;;  %v5715_v10 = vld [vmem:[%s7122_s12 + $0x578] sm:$0xff]  ;;  %v1101_v1 = vld [vmem:[%s7122_s12 + $0x180] sm:$0xff] }
 0x25d   : > { %v3735_v37 = vpop.f32.mrf.mxu3  ;;  %5821 = vmatmul.msk.f32.gmra.mxu3 %vm3495_vm2, %v3444_v24  ;;  %v2771_v30 = vmul.f32 1.442695, %v2679_v8  ;;  %vm4265_vm7 = vweird.f32 %v7903_v43  ;;  %v3080_v46 = vmul.f32 -0.5, %v7914_v3  ;;  %v4272_v39 = vor.u32 1.1754944e-38, %v4271_v61  ;;  %v8030_v26 = vld [vmem:[%s10023_s2] ss:$0 sm:$0xff] }
 0x25e   : > { %v4263_v44 = vmul.f32 %v6188_v25, %v4262_v35  ;;  %6195 = vrcp.f32 %v7967_v14  ;;  %v5930_v13 = vadd.f32 -0.001, %v5121_v42  ;;  %vm4267_vm8 = vmor %vm4265_vm7, %vm4266_vm6  ;;  %v2680_v48 = vmin.f32 %v7974_v6, 20.0 }
 0x25f   : > { %6197 = vlog2.f32 %v3077_v18  ;;  %v7980_v15 = vpop.f32.mrf.mxu0  ;;  %v7982_v32 = vpop.f32.mrf.mxu1  ;;  %v1888_v49 = vadd.f32 %v1887_v50, %v1486_v41  ;;  %vm4270_vm9 = vcmp.eq.f32.partialorder %v4269_v31, 8.507059e+37  ;;  %vm2613_vm10 = vcmp.gt.f32.partialorder %v7819_v21, 20.0 }
 0x260   : > { %v4264_v45 = vadd.f32 %v6188_v25, %v4263_v44  ;;  %v5250_v47 = vsel %vm5243_vm4, %v7807_v53, %v5930_v13  ;;  %v7998_v43 = vadd.f32 %v7512_v23, %v3735_v37  ;;  %6199 = vpow2.f32 %v2771_v30 }
 0x261   : > { %5779 = vmatmul.msk.f32.gmra.mxu2 %vm1186_vm0, %v5715_v10  ;;  %5315 = vst.msk [vmem:[%s7682_s9 + $0x30] sm:$0xff] %vm5308_vm5, %v5250_v47  ;;  %v6194_v53 = vpop.eup %6193  ;;  %v3081_v57 = vadd.f32 1.0, %v3080_v46  ;;  %v3083_v58 = vand.u32 2147483647, %v7914_v3  ;;  %v2485_v2 = vadd.f32 %v2353_v36, %v1888_v49  ;;  %vm4280_vm11 = vweird.f32 %v7967_v14  ;;  %v8063_v10 = vld [vmem:[%s10025_s4] ss:$0 sm:$0xff] }
 0x262   : > { %v4268_v56 = vsel %vm4267_vm8, %v6188_v25, %v4264_v45  ;;  %5587 = vmatmul.msk.f32.gmra.mxu0 %vm1186_vm0, %v5523_v7  ;;  %v8005_v0 = vadd.f32 1.0, %v6194_v53  ;;  %v5870_v23 = vmul.f32 -1.442695, %v7998_v43  ;;  %v4284_v61 = vand.u32 2147483647, %v7967_v14 }
 0x263   : > { %v4273_v38 = vsel %vm4270_vm9, %v4272_v39, %v4268_v56  ;;  %5651 = vmatmul.msk.f32.gmra.mxu1 %vm1186_vm0, %v1100_v28  ;;  %v2773_v4 = vmul.f32 1.442695, %v2680_v48  ;;  %v4286_v25 = vand.u32 2147483648, %v7967_v14  ;;  %v3086_v19 = vadd.f32 1.0, %v7948_v22 }
 0x264   : > { %v8003_v60 = vpop.eup %6195  ;;  %v5122_v62 = vmul.f32 1.002, %v4273_v38  ;;  %v2356_v41 = vpop.f32.mrf.mxu2  ;;  %6201 = vrcp.f32 %v8005_v0  ;;  %v3082_v52 = vmul.f32 %v7914_v3, %v3081_v57  ;;  %vm8017_vm12 = vcmp.lt.f32.partialorder %v3083_v58, 0.0004427343  ;;  %v5717_v38 = vld [vmem:[%s7122_s12 + $0x588] sm:$0xff] }
 0x265   : > { %v3738_v50 = vpop.f32.mrf.mxu3  ;;  %v6198_v51 = vpop.eup %6197  ;;  %v4276_v54 = vmul.f32 %v8003_v60, %v7967_v14  ;;  %v8033_v27 = vadd.f32 %v8030_v26, %v2485_v2  ;;  %6203 = vpow2.f32 %v5870_v23  ;;  %v3089_v3 = vmul.f32 -0.5, %v7948_v22 }
 0x266   : > { %v5931_v55 = vadd.f32 -0.001, %v5122_v62  ;;  %v3079_v20 = vmul.f32 0.6931472, %v6198_v51  ;;  %v8037_v35 = vpop.eup %6199  ;;  %vm4281_vm13 = vweird.f32 %v8003_v60  ;;  %6205 = vpow2.f32 %v2773_v4 }
 0x267   : > { %v4277_v63 = vsub.f32 1.0, %v4276_v54  ;;  %v8021_v12 = vpop.f32.mrf.mxu0  ;;  %v1893_v9 = vpop.f32.mrf.mxu1  ;;  %vm8046_vm14 = vcmp.eq.f32.partialorder %v4284_v61, 8.507059e+37  ;;  %v4287_v37 = vor.u32 1.1754944e-38, %v4286_v25  ;;  %6207 = vlog2.f32 %v3086_v19  ;;  %vm4282_vm1 = vmor %vm4280_vm11, %vm4281_vm13  ;;  %v5525_v25 = vld [vmem:[%s7122_s12 + $0x388] sm:$0xff] }
 0x268   : > { %v5251_v11 = vsel %vm5243_vm4, %v7844_v29, %v5931_v55  ;;  %v3085_v29 = vsel %vm8017_vm12, %v3082_v52, %v3079_v20  ;;  %vm4295_vm15 = vweird.f32 %v8005_v0  ;;  %v4299_v44 = vand.u32 2147483647, %v8005_v0  ;;  %v1102_v19 = vld [vmem:[%s7122_s12 + $0x188] sm:$0xff] }
 0x269   : > { %5316 = vst.msk [vmem:[%s7682_s9 + $0x38] sm:$0xff] %vm5308_vm5, %v5251_v11  ;;  %v4278_v24 = vmul.f32 %v8003_v60, %v4277_v63  ;;  %5780 = vmatmul.msk.f32.gmra.mxu2 %vm1186_vm0, %v5716_v17  ;;  %v3445_v42 = vsel %vm2613_vm10, %v7819_v21, %v3085_v29  ;;  %v1891_v31 = vadd.f32 %v7982_v32, %v7980_v15  ;;  %v4301_v30 = vand.u32 2147483648, %v8005_v0 }
 0x26a   : > { %5588 = vmatmul.msk.f32.gmra.mxu0 %vm1186_vm0, %v5524_v16  ;;  %5822 = vmatmul.msk.f32.gmra.mxu3 %vm3495_vm2, %v3445_v42  ;;  %v8066_v21 = vadd.f32 %v8063_v10, %v3738_v50  ;;  %v8069_v13 = vpop.eup %6201  ;;  %v2681_v15 = vmin.f32 %v8033_v27, 20.0  ;;  %vm2614_vm3 = vcmp.gt.f32.partialorder %v7855_v33, 20.0  ;;  %v3090_v32 = vadd.f32 1.0, %v3089_v3 }
 0x26b   : > { %v4279_v18 = vadd.f32 %v8003_v60, %v4278_v24  ;;  %5652 = vmatmul.msk.f32.gmra.mxu1 %vm1186_vm0, %v1101_v1  ;;  %v3095_v7 = vadd.f32 1.0, %v8037_v35  ;;  %v4291_v47 = vmul.f32 %v8069_v13, %v8005_v0  ;;  %v3092_v14 = vand.u32 2147483647, %v7948_v22  ;;  %v6204_v48 = vpop.eup %6203 }
 0x26c   : > { %v2359_v45 = vpop.f32.mrf.mxu2  ;;  %v2486_v39 = vadd.f32 %v2356_v41, %v1891_v31  ;;  %v5871_v56 = vmul.f32 -1.442695, %v8066_v21  ;;  %v3098_v53 = vmul.f32 -0.5, %v8037_v35  ;;  %v8088_v57 = vpop.eup %6205  ;;  %v8090_v62 = vadd.f32 1.0, %v6204_v48  ;;  %v5526_v48 = vld [vmem:[%s7122_s12 + $0x390] sm:$0xff] }
 0x26d   : > { %v3741_v46 = vpop.f32.mrf.mxu3  ;;  %v4283_v28 = vsel %vm4282_vm1, %v8003_v60, %v4279_v18  ;;  %6209 = vlog2.f32 %v3095_v7  ;;  %v4292_v60 = vsub.f32 1.0, %v4291_v47  ;;  %v6208_v50 = vpop.eup %6207  ;;  %vm4296_vm6 = vweird.f32 %v8069_v13 }
 0x26e   : > { %v4288_v49 = vsel %vm8046_vm14, %v4287_v37, %v4283_v28  ;;  %v8093_v2 = vadd.f32 %v8030_v26, %v2486_v39  ;;  %vm8100_vm7 = vcmp.eq.f32.partialorder %v4299_v44, 8.507059e+37  ;;  %v2775_v54 = vmul.f32 1.442695, %v2681_v15  ;;  %vm4297_vm9 = vmor %vm4295_vm15, %vm4296_vm6 }
 0x26f   : > { %v5123_v58 = vmul.f32 1.002, %v4288_v49  ;;  %v8095_v23 = vpop.f32.mrf.mxu0  ;;  %v8097_v41 = vpop.f32.mrf.mxu1  ;;  %6211 = vpow2.f32 %v5871_v56  ;;  %v4293_v4 = vmul.f32 %v8069_v13, %v4292_v60  ;;  %v1894_v55 = vadd.f32 %v1893_v9, %v8021_v12  ;;  %v1103_v49 = vld [vmem:[%s7122_s12 + $0x190] sm:$0xff] }
 0x270   : > { %6213 = vrcp.f32 %v8090_v62  ;;  %v3088_v17 = vmul.f32 0.6931472, %v6208_v50  ;;  %v3091_v63 = vmul.f32 %v7948_v22, %v3090_v32  ;;  %v3099_v20 = vadd.f32 1.0, %v3098_v53 }
 0x271   : > { %v5932_v61 = vadd.f32 -0.001, %v5123_v58  ;;  %5781 = vmatmul.msk.f32.gmra.mxu2 %vm1186_vm0, %v5717_v38  ;;  %v3101_v52 = vand.u32 2147483647, %v8037_v35  ;;  %v4294_v16 = vadd.f32 %v8069_v13, %v4293_v4  ;;  %vm3093_vm8 = vcmp.lt.f32.partialorder %v3092_v14, 0.0004427343 }
 0x272   : > { %5589 = vmatmul.msk.f32.gmra.mxu0 %vm1186_vm0, %v5525_v25  ;;  %v2682_v12 = vmin.f32 %v8093_v2, 20.0  ;;  %v4302_v22 = vor.u32 1.1754944e-38, %v4301_v30  ;;  %6215 = vpow2.f32 %v2775_v54  ;;  %v3094_v11 = vsel %vm3093_vm8, %v3091_v63, %v3088_v17 }
 0x273   : > { %v5252_v8 = vsel %vm5243_vm4, %v7896_v59, %v5932_v61  ;;  %5653 = vmatmul.msk.f32.gmra.mxu1 %vm1186_vm0, %v1102_v19  ;;  %v6210_v9 = vpop.eup %6209  ;;  %v4314_v59 = vand.u32 2147483647, %v8090_v62  ;;  %v4298_v24 = vsel %vm4297_vm9, %v8069_v13, %v4294_v16  ;;  %v3446_v29 = vsel %vm2614_vm3, %v7855_v33, %v3094_v11  ;;  %v5718_v13 = vld [vmem:[%s7122_s12 + $0x590] sm:$0xff] }
 0x274   : > { %5317 = vst.msk [vmem:[%s7682_s9 + $0x40] sm:$0xff] %vm5308_vm5, %v5252_v8  ;;  %v2362_v3 = vpop.f32.mrf.mxu2  ;;  %v3097_v36 = vmul.f32 0.6931472, %v6210_v9  ;;  %v2487_v37 = vadd.f32 %v2359_v45, %v1894_v55  ;;  %v4303_v0 = vsel %vm8100_vm7, %v4302_v22, %v4298_v24  ;;  %5823 = vmatmul.msk.f32.gmra.mxu3 %vm3495_vm2, %v3446_v29  ;;  %v3100_v18 = vmul.f32 %v8037_v35, %v3099_v20  ;;  %v5719_v20 = vld [vmem:[%s7122_s12 + $0x598] sm:$0xff] }
 0x275   : > { %v3744_v1 = vpop.f32.mrf.mxu3  ;;  %v6212_v42 = vpop.eup %6211  ;;  %vm8134_vm10 = vcmp.lt.f32.partialorder %v3101_v52, 0.0004427343  ;;  %v8139_v31 = vadd.f32 %v8063_v10, %v3741_v46  ;;  %v5124_v30 = vmul.f32 1.002, %v4303_v0  ;;  %v2777_v15 = vmul.f32 1.442695, %v2682_v12 }
 0x276   : > { %v6214_v33 = vpop.eup %6213  ;;  %v8142_v32 = vadd.f32 1.0, %v6212_v42  ;;  %v3103_v35 = vsel %vm8134_vm10, %v3100_v18, %v3097_v36  ;;  %v8148_v45 = vadd.f32 %v8030_v26, %v2487_v37  ;;  %v4316_v39 = vand.u32 2147483648, %v8090_v62 }
 0x277   : > { %v4306_v7 = vmul.f32 %v6214_v33, %v8090_v62  ;;  %v5872_v28 = vmul.f32 -1.442695, %v8139_v31  ;;  %v8151_v46 = vpop.f32.mrf.mxu0  ;;  %v8153_v47 = vpop.f32.mrf.mxu1  ;;  %v5933_v14 = vadd.f32 -0.001, %v5124_v30  ;;  %vm2615_vm11 = vcmp.gt.f32.partialorder %v7932_v34, 20.0 }
 0x278   : > { %6217 = vrcp.f32 %v8142_v32  ;;  %v8161_v56 = vpop.eup %6215  ;;  %vm4310_vm12 = vweird.f32 %v8090_v62  ;;  %vm8164_vm13 = vcmp.eq.f32.partialorder %v4314_v59, 8.507059e+37  ;;  %v3447_v60 = vsel %vm2615_vm11, %v7932_v34, %v3103_v35 }
 0x279   : > { %5782 = vmatmul.msk.f32.gmra.mxu2 %vm1186_vm0, %v5718_v13  ;;  %v4307_v53 = vsub.f32 1.0, %v4306_v7  ;;  %6219 = vpow2.f32 %v5872_v28  ;;  %v5253_v58 = vsel %vm5243_vm4, %v7942_v5, %v5933_v14  ;;  %v3104_v50 = vadd.f32 1.0, %v8088_v57  ;;  %v5527_v13 = vld [vmem:[%s7122_s12 + $0x398] sm:$0xff] }
 0x27a   : > { %5590 = vmatmul.msk.f32.gmra.mxu0 %vm1186_vm0, %v5526_v48  ;;  %v3107_v51 = vmul.f32 -0.5, %v8088_v57  ;;  %5318 = vst.msk [vmem:[%s7682_s9 + $0x48] sm:$0xff] %vm5308_vm5, %v5253_v58  ;;  %vm4311_vm14 = vweird.f32 %v6214_v33  ;;  %6221 = vpow2.f32 %v2777_v15  ;;  %v2683_v61 = vmin.f32 %v8148_v45, 20.0 }
 0x27b   : > { %5654 = vmatmul.msk.f32.gmra.mxu1 %vm1186_vm0, %v1103_v49  ;;  %v4308_v54 = vmul.f32 %v6214_v33, %v4307_v53  ;;  %v4317_v5 = vor.u32 1.1754944e-38, %v4316_v39  ;;  %6223 = vlog2.f32 %v3104_v50  ;;  %v1897_v34 = vadd.f32 %v8097_v41, %v8095_v23  ;;  %vm4312_vm1 = vmor %vm4310_vm12, %vm4311_vm14 }
 0x27c   : > { %v8179_v4 = vpop.f32.mrf.mxu2  ;;  %v8186_v25 = vadd.f32 %v8063_v10, %v3744_v1  ;;  %v4329_v17 = vand.u32 2147483647, %v8142_v32  ;;  %v4331_v63 = vand.u32 2147483648, %v8142_v32  ;;  %5824 = vmatmul.msk.f32.gmra.mxu3 %vm3495_vm2, %v3447_v60  ;;  %vm2616_vm15 = vcmp.gt.f32.partialorder %v7974_v6, 20.0 }
 0x27d   : > { %v8181_v55 = vpop.f32.mrf.mxu3  ;;  %v4309_v19 = vadd.f32 %v6214_v33, %v4308_v54  ;;  %v3108_v23 = vadd.f32 1.0, %v3107_v51  ;;  %v2488_v41 = vadd.f32 %v2362_v3, %v1897_v34  ;;  %v3113_v16 = vadd.f32 1.0, %v8161_v56  ;;  %v5720_v51 = vld [vmem:[%s7122_s12 + $0x5a0] sm:$0xff] }
 0x27e   : > { %v8193_v52 = vpop.eup %6217  ;;  %v5873_v8 = vmul.f32 -1.442695, %v8186_v25  ;;  %v2779_v59 = vmul.f32 1.442695, %v2683_v61  ;;  %v3116_v11 = vmul.f32 -0.5, %v8161_v56  ;;  %vm4325_vm3 = vweird.f32 %v8142_v32 }
 0x27f   : > { %v6220_v12 = vpop.eup %6219  ;;  %v4313_v9 = vsel %vm4312_vm1, %v6214_v33, %v4309_v19  ;;  %v4321_v22 = vmul.f32 %v8193_v52, %v8142_v32  ;;  %v3110_v62 = vand.u32 2147483647, %v8088_v57  ;;  %v8212_v37 = vpop.f32.mrf.mxu0  ;;  %vm4326_vm6 = vweird.f32 %v8193_v52  ;;  %v1104_v33 = vld [vmem:[%s7122_s12 + $0x198] sm:$0xff] }
 0x280   : > { %v4318_v1 = vsel %vm8164_vm13, %v4317_v5, %v4313_v9  ;;  %v8205_v24 = vadd.f32 1.0, %v6220_v12  ;;  %6225 = vpow2.f32 %v5873_v8  ;;  %v8209_v3 = vpop.eup %6221  ;;  %v8214_v42 = vpop.f32.mrf.mxu1  ;;  %v3109_v18 = vmul.f32 %v8088_v57, %v3108_v23  ;;  %vm4327_vm9 = vmor %vm4325_vm3, %vm4326_vm6  ;;  %v1105_v8 = vld [vmem:[%s7122_s12 + $0x1a0] sm:$0xff] }
 0x281   : > { %5783 = vmatmul.msk.f32.gmra.mxu2 %vm1186_vm0, %v5719_v20  ;;  %v5125_v29 = vmul.f32 1.002, %v4318_v1  ;;  %v4322_v36 = vsub.f32 1.0, %v4321_v22  ;;  %6227 = vlog2.f32 %v3113_v16  ;;  %v6224_v0 = vpop.eup %6223  ;;  %v8220_v44 = vadd.f32 %v8030_v26, %v2488_v41  ;;  %v5528_v41 = vld [vmem:[%s7122_s12 + $0x3a0] sm:$0xff] }
 0x282   : > { %6229 = vrcp.f32 %v8205_v24  ;;  %v3106_v7 = vmul.f32 0.6931472, %v6224_v0  ;;  %v3117_v35 = vadd.f32 1.0, %v3116_v11  ;;  %5591 = vmatmul.msk.f32.gmra.mxu0 %vm1186_vm0, %v5527_v13  ;;  %vm8231_vm7 = vcmp.eq.f32.partialorder %v4329_v17, 8.507059e+37 }
 0x283   : > { %v5934_v30 = vadd.f32 -0.001, %v5125_v29  ;;  %v4323_v15 = vmul.f32 %v8193_v52, %v4322_v36  ;;  %5655 = vmatmul.msk.f32.gmra.mxu1 %vm1186_vm0, %v1104_v33  ;;  %v4332_v39 = vor.u32 1.1754944e-38, %v4331_v63  ;;  %6231 = vpow2.f32 %v2779_v59 }
 0x284   : > { %v8225_v28 = vpop.f32.mrf.mxu2  ;;  %vm3111_vm8 = vcmp.lt.f32.partialorder %v3110_v62, 0.0004427343  ;;  %v3119_v38 = vand.u32 2147483647, %v8161_v56  ;;  %vm2617_vm10 = vcmp.gt.f32.partialorder %v8033_v27, 20.0  ;;  %v8254_v50 = vadd.f32 %v8063_v10, %v8181_v55 }
 0x285   : > { %v8227_v14 = vpop.f32.mrf.mxu3  ;;  %v5254_v48 = vsel %vm5243_vm4, %v7998_v43, %v5934_v30  ;;  %v4324_v49 = vadd.f32 %v8193_v52, %v4323_v15  ;;  %v3112_v53 = vsel %vm3111_vm8, %v3109_v18, %v3106_v7  ;;  %v1900_v43 = vadd.f32 %v8153_v47, %v8151_v46  ;;  %v5721_v15 = vld [vmem:[%s7122_s12 + $0x5a8] sm:$0xff] }
 0x286   : > { %v6226_v58 = vpop.eup %6225  ;;  %5319 = vst.msk [vmem:[%s7682_s9 + $0x50] sm:$0xff] %vm5308_vm5, %v5254_v48  ;;  %v3448_v60 = vsel %vm2616_vm15, %v7974_v6, %v3112_v53  ;;  %v2684_v32 = vmin.f32 %v8220_v44, 20.0  ;;  %v3118_v6 = vmul.f32 %v8161_v56, %v3117_v35  ;;  %v5874_v19 = vmul.f32 -1.442695, %v8254_v50  ;;  %v5529_v56 = vld [vmem:[%s7122_s12 + $0x3a8] sm:$0xff] }
 0x287   : > { %v6228_v54 = vpop.eup %6227  ;;  %v4328_v61 = vsel %vm4327_vm9, %v8193_v52, %v4324_v49  ;;  %5825 = vmatmul.msk.f32.gmra.mxu3 %vm3495_vm2, %v3448_v60  ;;  %v8260_v5 = vadd.f32 1.0, %v6226_v58  ;;  %v2489_v55 = vadd.f32 %v8179_v4, %v1900_v43  ;;  %vm8270_vm11 = vcmp.lt.f32.partialorder %v3119_v38, 0.0004427343  ;;  %v8286_v59 = vpop.f32.mrf.mxu0 }
 0x288   : > { %v6230_v34 = vpop.eup %6229  ;;  %v4333_v46 = vsel %vm8231_vm7, %v4332_v39, %v4328_v61  ;;  %v3115_v47 = vmul.f32 0.6931472, %v6228_v54  ;;  %vm4340_vm12 = vweird.f32 %v8205_v24  ;;  %v4344_v52 = vand.u32 2147483647, %v8205_v24  ;;  %v8288_v11 = vpop.f32.mrf.mxu1 }
 0x289   : > { %5784 = vmatmul.msk.f32.gmra.mxu2 %vm1186_vm0, %v5720_v51  ;;  %v5126_v17 = vmul.f32 1.002, %v4333_v46  ;;  %v4336_v63 = vmul.f32 %v6230_v34, %v8205_v24  ;;  %6233 = vrcp.f32 %v8260_v5  ;;  %v8274_v20 = vpop.eup %6231  ;;  %v4346_v4 = vand.u32 2147483648, %v8205_v24 }
 0x28a   : > { %v3121_v23 = vsel %vm8270_vm11, %v3118_v6, %v3115_v47  ;;  %v2781_v9 = vmul.f32 1.442695, %v2684_v32  ;;  %v8284_v22 = vadd.f32 %v8030_v26, %v2489_v55  ;;  %5592 = vmatmul.msk.f32.gmra.mxu0 %vm1186_vm0, %v5528_v41  ;;  %vm4341_vm13 = vweird.f32 %v6230_v34 }
 0x28b   : > { %v5935_v16 = vadd.f32 -0.001, %v5126_v17  ;;  %v4337_v12 = vsub.f32 1.0, %v4336_v63  ;;  %5656 = vmatmul.msk.f32.gmra.mxu1 %vm1186_vm0, %v1105_v8  ;;  %v3449_v1 = vsel %vm2617_vm10, %v8033_v27, %v3121_v23  ;;  %6235 = vpow2.f32 %v5874_v19  ;;  %vm4342_vm15 = vmor %vm4340_vm12, %vm4341_vm13 }
 0x28c   : > { %v3122_v62 = vadd.f32 1.0, %v8209_v3  ;;  %v2685_v0 = vmin.f32 %v8284_v22, 20.0  ;;  %v3125_v18 = vmul.f32 -0.5, %v8209_v3  ;;  %v8301_v13 = vpop.f32.mrf.mxu2  ;;  %vm8307_vm14 = vcmp.eq.f32.partialorder %v4344_v52, 8.507059e+37  ;;  %v1106_v52 = vld [vmem:[%s7122_s12 + $0x1a8] sm:$0xff] }
 0x28d   : > { %v5255_v29 = vsel %vm5243_vm4, %v8066_v21, %v5935_v16  ;;  %v4338_v36 = vmul.f32 %v6230_v34, %v4337_v12  ;;  %v8303_v33 = vpop.f32.mrf.mxu3  ;;  %v1903_v30 = vadd.f32 %v8214_v42, %v8212_v37  ;;  %v8315_v21 = vadd.f32 %v8063_v10, %v8227_v14 }
 0x28e   : > { %5320 = vst.msk [vmem:[%s7682_s9 + $0x58] sm:$0xff] %vm5308_vm5, %v5255_v29  ;;  %6237 = vlog2.f32 %v3122_v62  ;;  %v4347_v57 = vor.u32 1.1754944e-38, %v4346_v4  ;;  %v4359_v39 = vand.u32 2147483647, %v8260_v5  ;;  %v4361_v37 = vand.u32 2147483648, %v8260_v5 }
 0x28f   : > { %v6234_v7 = vpop.eup %6233  ;;  %v4339_v35 = vadd.f32 %v6230_v34, %v4338_v36  ;;  %6239 = vpow2.f32 %v2781_v9  ;;  %5826 = vmatmul.msk.f32.gmra.mxu3 %vm3495_vm2, %v3449_v1  ;;  %vm2618_vm1 = vcmp.gt.f32.partialorder %v8093_v2, 20.0  ;;  %v3128_v42 = vand.u32 2147483647, %v8209_v3  ;;  %v8347_v17 = vpop.f32.mrf.mxu0 }
 0x290   : > { %v4351_v48 = vmul.f32 %v6234_v7, %v8260_v5  ;;  %v2490_v14 = vadd.f32 %v8225_v28, %v1903_v30  ;;  %v2783_v53 = vmul.f32 1.442695, %v2685_v0  ;;  %v3126_v38 = vadd.f32 1.0, %v3125_v18  ;;  %v8349_v63 = vpop.f32.mrf.mxu1  ;;  %v5722_v30 = vld [vmem:[%s7122_s12 + $0x5b0] sm:$0xff] }
 0x291   : > { %5785 = vmatmul.msk.f32.gmra.mxu2 %vm1186_vm0, %v5721_v15  ;;  %v4343_v49 = vsel %vm4342_vm15, %v6230_v34, %v4339_v35  ;;  %v5875_v58 = vmul.f32 -1.442695, %v8315_v21  ;;  %v6236_v60 = vpop.eup %6235  ;;  %v3131_v54 = vadd.f32 1.0, %v8274_v20  ;;  %v3134_v32 = vmul.f32 -0.5, %v8274_v20 }
 0x292   : > { %v4348_v24 = vsel %vm8307_vm14, %v4347_v57, %v4343_v49  ;;  %v4352_v43 = vsub.f32 1.0, %v4351_v48  ;;  %v8333_v51 = vadd.f32 %v8030_v26, %v2490_v14  ;;  %v8336_v28 = vadd.f32 1.0, %v6236_v60  ;;  %5593 = vmatmul.msk.f32.gmra.mxu0 %vm1186_vm0, %v5529_v56 }
 0x293   : > { %v5127_v61 = vmul.f32 1.002, %v4348_v24  ;;  %6241 = vpow2.f32 %v5875_v58  ;;  %vm4355_vm3 = vweird.f32 %v8260_v5  ;;  %vm4356_vm6 = vweird.f32 %v6234_v7  ;;  %5657 = vmatmul.msk.f32.gmra.mxu1 %vm1186_vm0, %v1106_v52  ;;  %v5723_v52 = vld [vmem:[%s7122_s12 + $0x5b8] sm:$0xff] }
 0x294   : > { %v6238_v6 = vpop.eup %6237  ;;  %v4353_v34 = vmul.f32 %v6234_v7, %v4352_v43  ;;  %6243 = vlog2.f32 %v3131_v54  ;;  %vm8342_vm7 = vcmp.eq.f32.partialorder %v4359_v39, 8.507059e+37  ;;  %v4362_v19 = vor.u32 1.1754944e-38, %v4361_v37  ;;  %vm4357_vm8 = vmor %vm4355_vm3, %vm4356_vm6  ;;  %v8363_v9 = vpop.f32.mrf.mxu2 }
 0x295   : > { %v8340_v46 = vpop.eup %6239  ;;  %v5936_v47 = vadd.f32 -0.001, %v5127_v61  ;;  %6245 = vrcp.f32 %v8336_v28  ;;  %v3124_v23 = vmul.f32 0.6931472, %v6238_v6  ;;  %v3127_v41 = vmul.f32 %v8209_v3, %v3126_v38  ;;  %v3756_v3 = vpop.f32.mrf.mxu3  ;;  %v1107_v38 = vld [vmem:[%s7122_s12 + $0x1b0] sm:$0xff] }
 0x296   : > { %v4354_v4 = vadd.f32 %v6234_v7, %v4353_v34  ;;  %v2686_v8 = vmin.f32 %v8333_v51, 20.0  ;;  %6247 = vpow2.f32 %v2783_v53  ;;  %vm3129_vm9 = vcmp.lt.f32.partialorder %v3128_v42, 0.0004427343  ;;  %v5530_v53 = vld [vmem:[%s7122_s12 + $0x3b0] sm:$0xff] }
 0x297   : > { %v5256_v16 = vsel %vm5243_vm4, %v8139_v31, %v5936_v47  ;;  %v3135_v12 = vadd.f32 1.0, %v3134_v32  ;;  %v4374_v62 = vand.u32 2147483647, %v8336_v28  ;;  %v3130_v29 = vsel %vm3129_vm9, %v3127_v41, %v3124_v23 }
 0x298   : > { %5321 = vst.msk [vmem:[%s7682_s9 + $0x60] sm:$0xff] %vm5308_vm5, %v5256_v16  ;;  %v4358_v1 = vsel %vm4357_vm8, %v6234_v7, %v4354_v4  ;;  %v3137_v36 = vand.u32 2147483647, %v8274_v20  ;;  %v4376_v0 = vand.u32 2147483648, %v8336_v28  ;;  %v3450_v18 = vsel %vm2618_vm1, %v8093_v2, %v3130_v29  ;;  %v1911_v6 = vpop.f32.mrf.mxu1 }
 0x299   : > { %v6242_v31 = vpop.eup %6241  ;;  %v4363_v5 = vsel %vm8342_vm7, %v4362_v19, %v4358_v1  ;;  %v1906_v27 = vadd.f32 %v8288_v11, %v8286_v59  ;;  %5827 = vmatmul.msk.f32.gmra.mxu3 %vm3495_vm2, %v3450_v18  ;;  %v2785_v35 = vmul.f32 1.442695, %v2686_v8  ;;  %v3136_v39 = vmul.f32 %v8274_v20, %v3135_v12  ;;  %5786 = vmatmul.msk.f32.gmra.mxu2 %vm1186_vm0, %v5722_v30 }
 0x29a   : > { %v6244_v15 = vpop.eup %6243  ;;  %v5128_v7 = vmul.f32 1.002, %v4363_v5  ;;  %v8379_v57 = vadd.f32 1.0, %v6242_v31  ;;  %v8386_v59 = vadd.f32 %v8063_v10, %v8303_v33  ;;  %v3140_v11 = vadd.f32 1.0, %v8340_v46  ;;  %5594 = vmatmul.msk.f32.gmra.mxu0 %vm1186_vm0, %v5530_v53 }
 0x29b   : > { %v6246_v48 = vpop.eup %6245  ;;  %v3133_v37 = vmul.f32 0.6931472, %v6244_v15  ;;  %v2491_v2 = vadd.f32 %v8301_v13, %v1906_v27  ;;  %vm8391_vm10 = vcmp.lt.f32.partialorder %v3137_v36, 0.0004427343  ;;  %vm4370_vm11 = vweird.f32 %v8336_v28  ;;  %5658 = vmatmul.msk.f32.gmra.mxu1 %vm1186_vm0, %v1107_v38 }
 0x29c   : > { %v5937_v42 = vadd.f32 -0.001, %v5128_v7  ;;  %v4366_v14 = vmul.f32 %v6246_v48, %v8336_v28  ;;  %6249 = vrcp.f32 %v8379_v57  ;;  %v8395_v49 = vpop.eup %6247  ;;  %vm8398_vm12 = vcmp.eq.f32.partialorder %v4374_v62, 8.507059e+37 }
 0x29d   : > { %vm2619_vm13 = vcmp.gt.f32.partialorder %v8148_v45, 20.0  ;;  %v3139_v33 = vsel %vm8391_vm10, %v3136_v39, %v3133_v37  ;;  %v8411_v24 = vadd.f32 %v8030_v26, %v2491_v2  ;;  %v3143_v43 = vmul.f32 -0.5, %v8340_v46  ;;  %v8427_v56 = vpop.f32.mrf.mxu3 }
 0x29e   : > { %v5257_v58 = vsel %vm5243_vm4, %v8186_v25, %v5937_v42  ;;  %v4367_v60 = vsub.f32 1.0, %v4366_v14  ;;  %v4377_v54 = vor.u32 1.1754944e-38, %v4376_v0  ;;  %v3451_v61 = vsel %vm2619_vm13, %v8148_v45, %v3139_v33  ;;  %v1510_v25 = vpop.f32.mrf.mxu0  ;;  %v2377_v45 = vpop.f32.mrf.mxu2 }
 0x29f   : > { %5322 = vst.msk [vmem:[%s7682_s9 + $0x68] sm:$0xff] %vm5308_vm5, %v5257_v58  ;;  %v5876_v32 = vmul.f32 -1.442695, %v8386_v59  ;;  %6251 = vlog2.f32 %v3140_v11  ;;  %vm4371_vm14 = vweird.f32 %v6246_v48  ;;  %v2687_v47 = vmin.f32 %v8411_v24, 20.0 }
 0x2a0   : > { %v4368_v34 = vmul.f32 %v6246_v48, %v4367_v60  ;;  %6253 = vpow2.f32 %v2785_v35  ;;  %vm2620_vm15 = vcmp.gt.f32.partialorder %v8220_v44, 20.0  ;;  %v1909_v55 = vadd.f32 %v8349_v63, %v8347_v17  ;;  %vm4372_vm1 = vmor %vm4370_vm11, %vm4371_vm14  ;;  %v1914_v20 = vpop.f32.mrf.mxu1 }
 0x2a1   : > { %6255 = vpow2.f32 %v5876_v32  ;;  %v8425_v19 = vadd.f32 %v8063_v10, %v3756_v3  ;;  %v4389_v41 = vand.u32 2147483647, %v8379_v57  ;;  %v4391_v8 = vand.u32 2147483648, %v8379_v57  ;;  %5828 = vmatmul.msk.f32.gmra.mxu3 %vm3495_vm2, %v3451_v61  ;;  %5787 = vmatmul.msk.f32.gmra.mxu2 %vm1186_vm0, %v5723_v52 }
 0x2a2   : > { %v6250_v4 = vpop.eup %6249  ;;  %v4369_v23 = vadd.f32 %v6246_v48, %v4368_v34  ;;  %v3144_v16 = vadd.f32 1.0, %v3143_v43  ;;  %v3146_v63 = vand.u32 2147483647, %v8340_v46  ;;  %v2492_v12 = vadd.f32 %v8363_v9, %v1909_v55  ;;  %v5531_v43 = vld [vmem:[%s7122_s12 + $0x3b8] sm:$0xff] }
 0x2a3   : > { %v4381_v17 = vmul.f32 %v6250_v4, %v8379_v57  ;;  %v5877_v3 = vmul.f32 -1.442695, %v8425_v19  ;;  %v2787_v62 = vmul.f32 1.442695, %v2687_v47  ;;  %v3149_v29 = vadd.f32 1.0, %v8395_v49  ;;  %5595 = vmatmul.msk.f32.gmra.mxu0 %vm1186_vm0, %v5531_v43 }
 0x2a4   : > { %v4373_v1 = vsel %vm4372_vm1, %v6246_v48, %v4369_v23  ;;  %v3152_v36 = vmul.f32 -0.5, %v8395_v49  ;;  %v8446_v0 = vadd.f32 %v8030_v26, %v2492_v12  ;;  %v3145_v30 = vmul.f32 %v8340_v46, %v3144_v16  ;;  %v5724_v16 = vld [vmem:[%s7122_s12 + $0x5c0] sm:$0xff] }
 0x2a5   : > { %v6252_v31 = vpop.eup %6251  ;;  %v4378_v5 = vsel %vm8398_vm12, %v4377_v54, %v4373_v1  ;;  %v4382_v28 = vsub.f32 1.0, %v4381_v17  ;;  %6257 = vpow2.f32 %v5877_v3  ;;  %vm4386_vm3 = vweird.f32 %v6250_v4  ;;  %v3762_v60 = vpop.f32.mrf.mxu3  ;;  %v1108_v54 = vld [vmem:[%s7122_s12 + $0x1b8] sm:$0xff] }
 0x2a6   : > { %v8448_v18 = vpop.eup %6253  ;;  %v5129_v9 = vmul.f32 1.002, %v4378_v5  ;;  %v3142_v27 = vmul.f32 0.6931472, %v6252_v31  ;;  %6259 = vlog2.f32 %v3149_v29  ;;  %vm3147_vm6 = vcmp.lt.f32.partialorder %v3146_v63, 0.0004427343  ;;  %v1513_v14 = vpop.f32.mrf.mxu0  ;;  %5659 = vmatmul.msk.f32.gmra.mxu1 %vm1186_vm0, %v1108_v54 }
 0x2a7   : > { %v6256_v15 = vpop.eup %6255  ;;  %v4383_v7 = vmul.f32 %v6250_v4, %v4382_v28  ;;  %v1912_v35 = vadd.f32 %v1911_v6, %v1510_v25  ;;  %v2688_v2 = vmin.f32 %v8446_v0, 20.0  ;;  %vm4385_vm7 = vweird.f32 %v8379_v57  ;;  %v8472_v58 = vpop.f32.mrf.mxu2 }
 0x2a8   : > { %v5938_v39 = vadd.f32 -0.001, %v5129_v9  ;;  %v8451_v48 = vadd.f32 1.0, %v6256_v15  ;;  %v3148_v37 = vsel %vm3147_vm6, %v3145_v30, %v3142_v27  ;;  %v3153_v42 = vadd.f32 1.0, %v3152_v36  ;;  %vm8461_vm8 = vmor %vm4385_vm7, %vm4386_vm3  ;;  %v1917_v31 = vpop.f32.mrf.mxu1 }
 0x2a9   : > { %v4384_v11 = vadd.f32 %v6250_v4, %v4383_v7  ;;  %v3452_v46 = vsel %vm2620_vm15, %v8220_v44, %v3148_v37  ;;  %v4392_v53 = vor.u32 1.1754944e-38, %v4391_v8  ;;  %v3155_v44 = vand.u32 2147483647, %v8395_v49  ;;  %5788 = vmatmul.msk.f32.gmra.mxu2 %vm1186_vm0, %v5724_v16  ;;  %v5532_v7 = vld [vmem:[%s7122_s12 + $0x3c0] sm:$0xff]  ;;  %v5533_v16 = vld [vmem:[%s7122_s12 + $0x3c8] sm:$0xff] }
 0x2aa   : > { %v5258_v13 = vsel %vm5243_vm4, %v8254_v50, %v5938_v39  ;;  %6261 = vrcp.f32 %v8451_v48  ;;  %5829 = vmatmul.msk.f32.gmra.mxu3 %vm3495_vm2, %v3452_v46  ;;  %vm4390_vm9 = vcmp.eq.f32.partialorder %v4389_v41, 8.507059e+37  ;;  %v2493_v50 = vadd.f32 %v2377_v45, %v1912_v35  ;;  %v1109_v35 = vld [vmem:[%s7122_s12 + $0x1c0] sm:$0xff] }
 0x2ab   : > { %v6258_v57 = vpop.eup %6257  ;;  %5323 = vst.msk [vmem:[%s7682_s9 + $0x70] sm:$0xff] %vm5308_vm5, %v5258_v13  ;;  %v4388_v38 = vsel %vm8461_vm8, %v6250_v4, %v4384_v11  ;;  %6263 = vpow2.f32 %v2787_v62  ;;  %v2789_v25 = vmul.f32 1.442695, %v2688_v2  ;;  %v8480_v34 = vadd.f32 %v8063_v10, %v8427_v56  ;;  %5596 = vmatmul.msk.f32.gmra.mxu0 %vm1186_vm0, %v5532_v7  ;;  %v5726_v7 = vld [vmem:[%s7122_s12 + $0x5d0] sm:$0xff] }
 0x2ac   : > { %v6260_v61 = vpop.eup %6259  ;;  %v4393_v32 = vsel %vm4390_vm9, %v4392_v53, %v4388_v38  ;;  %v8476_v6 = vadd.f32 1.0, %v6258_v57  ;;  %v3154_v45 = vmul.f32 %v8395_v49, %v3153_v42  ;;  %v8486_v52 = vadd.f32 %v8030_v26, %v2493_v50 }
 0x2ad   : > { %v5130_v47 = vmul.f32 1.002, %v4393_v32  ;;  %v3151_v55 = vmul.f32 0.6931472, %v6260_v61  ;;  %v4404_v4 = vand.u32 2147483647, %v8451_v48  ;;  %vm4400_vm12 = vweird.f32 %v8451_v48  ;;  %v3765_v15 = vpop.f32.mrf.mxu3 }
 0x2ae   : > { %6265 = vrcp.f32 %v8476_v6  ;;  %vm2621_vm10 = vcmp.gt.f32.partialorder %v8284_v22, 20.0  ;;  %vm3156_vm11 = vcmp.lt.f32.partialorder %v3155_v44, 0.0004427343  ;;  %v2689_v41 = vmin.f32 %v8486_v52, 20.0  ;;  %v1516_v36 = vpop.f32.mrf.mxu0  ;;  %5660 = vmatmul.msk.f32.gmra.mxu1 %vm1186_vm0, %v1109_v35 }
 0x2af   : > { %v5939_v56 = vadd.f32 -0.001, %v5130_v47  ;;  %v3157_v23 = vsel %vm3156_vm11, %v3154_v45, %v3151_v55  ;;  %v5878_v8 = vmul.f32 -1.442695, %v8480_v34  ;;  %v4406_v49 = vand.u32 2147483648, %v8451_v48  ;;  %v8520_v30 = vpop.f32.mrf.mxu2 }
 0x2b0   : > { %v8494_v17 = vpop.eup %6261  ;;  %6267 = vpow2.f32 %v2789_v25  ;;  %v3453_v63 = vsel %vm2621_vm10, %v8284_v22, %v3157_v23  ;;  %v4419_v62 = vand.u32 2147483647, %v8476_v6  ;;  %v4421_v29 = vand.u32 2147483648, %v8476_v6  ;;  %v8562_v55 = vpop.f32.mrf.mxu1 }
 0x2b1   : > { %v8499_v12 = vpop.eup %6263  ;;  %v5259_v3 = vsel %vm5243_vm4, %v8315_v21, %v5939_v56  ;;  %v4396_v1 = vmul.f32 %v8494_v17, %v8451_v48  ;;  %vm8511_vm13 = vcmp.eq.f32.partialorder %v4404_v4, 8.507059e+37  ;;  %6269 = vpow2.f32 %v5878_v8 }
 0x2b2   : > { %5324 = vst.msk [vmem:[%s7682_s9 + $0x78] sm:$0xff] %vm5308_vm5, %v5259_v3  ;;  %5830 = vmatmul.msk.f32.gmra.mxu3 %vm3495_vm2, %v3453_v63  ;;  %v3158_v21 = vadd.f32 1.0, %v8448_v18  ;;  %v2791_v28 = vmul.f32 1.442695, %v2689_v41  ;;  %v1915_v9 = vadd.f32 %v1914_v20, %v1513_v14  ;;  %v8518_v27 = vadd.f32 %v8063_v10, %v3762_v60  ;;  %v5725_v60 = vld [vmem:[%s7122_s12 + $0x5c8] sm:$0xff]  ;;  %v5727_v63 = vld [vmem:[%s7122_s12 + $0x5d8] sm:$0xff] }
 0x2b3   : > { %v4397_v5 = vsub.f32 1.0, %v4396_v1  ;;  %v4407_v37 = vor.u32 1.1754944e-38, %v4406_v49  ;;  %vm4415_vm14 = vweird.f32 %v8476_v6  ;;  %v3161_v2 = vmul.f32 -0.5, %v8448_v18  ;;  %5789 = vmatmul.msk.f32.gmra.mxu2 %vm1186_vm0, %v5725_v60  ;;  %5597 = vmatmul.msk.f32.gmra.mxu0 %vm1186_vm0, %v5533_v16  ;;  %v5534_v60 = vld [vmem:[%s7122_s12 + $0x3d0] sm:$0xff] }
 0x2b4   : > { %v8524_v39 = vpop.eup %6265  ;;  %6271 = vlog2.f32 %v3158_v21  ;;  %vm4401_vm15 = vweird.f32 %v8494_v17  ;;  %vm8534_vm1 = vcmp.eq.f32.partialorder %v4419_v62, 8.507059e+37  ;;  %v4422_v14 = vor.u32 1.1754944e-38, %v4421_v29 }
 0x2b5   : > { %v4398_v11 = vmul.f32 %v8494_v17, %v4397_v5  ;;  %v4411_v46 = vmul.f32 %v8524_v39, %v8476_v6  ;;  %v3164_v13 = vand.u32 2147483647, %v8448_v18  ;;  %v2494_v33 = vadd.f32 %v8472_v58, %v1915_v9  ;;  %vm4402_vm3 = vmor %vm4400_vm12, %vm4401_vm15 }
 0x2b6   : > { %v8538_v20 = vpop.eup %6267  ;;  %v5879_v53 = vmul.f32 -1.442695, %v8518_v27  ;;  %v3167_v44 = vadd.f32 1.0, %v8499_v12  ;;  %6273 = vpow2.f32 %v2791_v28  ;;  %v3170_v50 = vmul.f32 -0.5, %v8499_v12  ;;  %v8560_v48 = vpop.f32.mrf.mxu0 }
 0x2b7   : > { %v4399_v57 = vadd.f32 %v8494_v17, %v4398_v11  ;;  %v4412_v38 = vsub.f32 1.0, %v4411_v46  ;;  %v6270_v43 = vpop.eup %6269  ;;  %vm4416_vm6 = vweird.f32 %v8524_v39  ;;  %v3162_v58 = vadd.f32 1.0, %v3161_v2  ;;  %v8572_v8 = vpop.f32.mrf.mxu2  ;;  %v8618_v11 = vld [vmem:[%s10023_s2] ss:$0 sm:$0xff] }
 0x2b8   : > { %6275 = vpow2.f32 %v5879_v53  ;;  %v1918_v54 = vadd.f32 %v1917_v31, %v1516_v36  ;;  %v8555_v25 = vadd.f32 1.0, %v6270_v43  ;;  %v8558_v47 = vadd.f32 %v8063_v10, %v3765_v15  ;;  %vm4417_vm8 = vmor %vm4415_vm14, %vm4416_vm6  ;;  %v3768_v3 = vpop.f32.mrf.mxu3  ;;  %v1111_v43 = vld [vmem:[%s7122_s12 + $0x1d0] sm:$0xff] }
 0x2b9   : > { %v4403_v61 = vsel %vm4402_vm3, %v8494_v17, %v4399_v57  ;;  %v4413_v32 = vmul.f32 %v8524_v39, %v4412_v38  ;;  %vm2622_vm7 = vcmp.gt.f32.partialorder %v8333_v51, 20.0  ;;  %v8568_v56 = vadd.f32 %v8030_v26, %v2494_v33  ;;  %v1110_v17 = vld [vmem:[%s7122_s12 + $0x1c8] sm:$0xff] }
 0x2ba   : > { %v6272_v45 = vpop.eup %6271  ;;  %v4408_v4 = vsel %vm8511_vm13, %v4407_v37, %v4403_v61  ;;  %6277 = vlog2.f32 %v3167_v44  ;;  %v3171_v10 = vadd.f32 1.0, %v3170_v50  ;;  %v3163_v26 = vmul.f32 %v8448_v18, %v3162_v58  ;;  %5661 = vmatmul.msk.f32.gmra.mxu1 %vm1186_vm0, %v1110_v17  ;;  %v8633_v44 = vpop.f32.mrf.mxu1  ;;  %v8663_v17 = vld [vmem:[%s10025_s4] ss:$0 sm:$0xff] }
 0x2bb   : > { %v5131_v23 = vmul.f32 1.002, %v4408_v4  ;;  %v4414_v41 = vadd.f32 %v8524_v39, %v4413_v32  ;;  %6279 = vrcp.f32 %v8555_v25  ;;  %v3160_v49 = vmul.f32 0.6931472, %v6272_v45  ;;  %5790 = vmatmul.msk.f32.gmra.mxu2 %vm1186_vm0, %v5726_v7  ;;  %5598 = vmatmul.msk.f32.gmra.mxu0 %vm1186_vm0, %v5534_v60  ;;  %v1112_v60 = vld [vmem:[%s7122_s12 + $0x1d8] sm:$0xff] }
 0x2bc   : > { %vm8581_vm9 = vcmp.lt.f32.partialorder %v3164_v13, 0.0004427343  ;;  %vm2623_vm10 = vcmp.gt.f32.partialorder %v8411_v24, 20.0  ;;  %v8588_v1 = vpop.eup %6273  ;;  %v2495_v18 = vadd.f32 %v8520_v30, %v1918_v54  ;;  %v5880_v29 = vmul.f32 -1.442695, %v8558_v47 }
 0x2bd   : > { %v5940_v6 = vadd.f32 -0.001, %v5131_v23  ;;  %v4418_v62 = vsel %vm4417_vm8, %v8524_v39, %v4414_v41  ;;  %v3166_v22 = vsel %vm8581_vm9, %v3163_v26, %v3160_v49  ;;  %v2690_v21 = vmin.f32 %v8568_v56, 20.0 }
 0x2be   : > { %v6276_v36 = vpop.eup %6275  ;;  %v4423_v31 = vsel %vm8534_vm1, %v4422_v14, %v4418_v62  ;;  %v3173_v5 = vand.u32 2147483647, %v8499_v12  ;;  %v3454_v30 = vsel %vm2622_vm7, %v8333_v51, %v3166_v22  ;;  %v3172_v15 = vmul.f32 %v8499_v12, %v3171_v10  ;;  %v8631_v53 = vpop.f32.mrf.mxu0 }
 0x2bf   : > { %v5260_v28 = vsel %vm5243_vm4, %v8386_v59, %v5940_v6  ;;  %v5132_v9 = vmul.f32 1.002, %v4423_v31  ;;  %v4434_v39 = vand.u32 2147483647, %v8555_v25  ;;  %v4436_v37 = vand.u32 2147483648, %v8555_v25  ;;  %5831 = vmatmul.msk.f32.gmra.mxu3 %vm3495_vm2, %v3454_v30  ;;  %v8649_v32 = vpop.f32.mrf.mxu2 }
 0x2c0   : > { %v6278_v35 = vpop.eup %6277  ;;  %5325 = vst.msk [vmem:[%s7682_s9 + $0x80] sm:$0xff] %vm5308_vm5, %v5260_v28  ;;  %v8612_v2 = vadd.f32 1.0, %v6276_v36  ;;  %6281 = vpow2.f32 %v5880_v29  ;;  %v8621_v46 = vadd.f32 %v8618_v11, %v2495_v18  ;;  %v3176_v42 = vadd.f32 1.0, %v8538_v20 }
 0x2c1   : > { %v6280_v59 = vpop.eup %6279  ;;  %v5941_v51 = vadd.f32 -0.001, %v5132_v9  ;;  %v3169_v12 = vmul.f32 0.6931472, %v6278_v35  ;;  %vm8626_vm11 = vcmp.lt.f32.partialorder %v3173_v5, 0.0004427343  ;;  %vm4430_vm12 = vweird.f32 %v8555_v25  ;;  %v8668_v26 = vpop.f32.mrf.mxu3 }
 0x2c2   : > { %v4426_v14 = vmul.f32 %v6280_v59, %v8555_v25  ;;  %6283 = vrcp.f32 %v8612_v2  ;;  %v3179_v33 = vmul.f32 -0.5, %v8538_v20  ;;  %v2793_v38 = vmul.f32 1.442695, %v2690_v21  ;;  %5662 = vmatmul.msk.f32.gmra.mxu1 %vm1186_vm0, %v1111_v43  ;;  %v8699_v35 = vpop.f32.mrf.mxu1 }
 0x2c3   : > { %v5261_v57 = vsel %vm5243_vm4, %v8425_v19, %v5941_v51  ;;  %v3175_v50 = vsel %vm8626_vm11, %v3172_v15, %v3169_v12  ;;  %vm8645_vm13 = vcmp.eq.f32.partialorder %v4434_v39, 8.507059e+37  ;;  %v4437_v61 = vor.u32 1.1754944e-38, %v4436_v37  ;;  %5791 = vmatmul.msk.f32.gmra.mxu2 %vm1186_vm0, %v5727_v63 }
 0x2c4   : > { %5326 = vst.msk [vmem:[%s7682_s9 + $0x88] sm:$0xff] %vm5308_vm5, %v5261_v57  ;;  %v4427_v58 = vsub.f32 1.0, %v4426_v14  ;;  %6285 = vlog2.f32 %v3176_v42  ;;  %vm4431_vm14 = vweird.f32 %v6280_v59  ;;  %v4449_v19 = vand.u32 2147483647, %v8612_v2 }
 0x2c5   : > { %v3455_v45 = vsel %vm2623_vm10, %v8411_v24, %v3175_v50  ;;  %v2691_v4 = vmin.f32 %v8621_v46, 20.0  ;;  %v3180_v10 = vadd.f32 1.0, %v3179_v33  ;;  %v1921_v16 = vadd.f32 %v8562_v55, %v8560_v48  ;;  %vm4432_vm3 = vmor %vm4430_vm12, %vm4431_vm14  ;;  %v5535_v50 = vld [vmem:[%s7122_s12 + $0x3d8] sm:$0xff] }
 0x2c6   : > { %v6282_v23 = vpop.eup %6281  ;;  %v4428_v41 = vmul.f32 %v6280_v59, %v4427_v58  ;;  %v8666_v49 = vadd.f32 %v8663_v17, %v3768_v3  ;;  %6287 = vpow2.f32 %v2793_v38  ;;  %vm4445_vm15 = vweird.f32 %v8612_v2  ;;  %v8697_v7 = vpop.f32.mrf.mxu0  ;;  %5599 = vmatmul.msk.f32.gmra.mxu0 %vm1186_vm0, %v5535_v50 }
 0x2c7   : > { %v8671_v24 = vadd.f32 1.0, %v6282_v23  ;;  %vm2624_vm1 = vcmp.gt.f32.partialorder %v8446_v0, 20.0  ;;  %5832 = vmatmul.msk.f32.gmra.mxu3 %vm3495_vm2, %v3455_v45  ;;  %v3182_v55 = vand.u32 2147483647, %v8538_v20  ;;  %v2496_v62 = vadd.f32 %v8572_v8, %v1921_v16  ;;  %v8708_v13 = vpop.f32.mrf.mxu2  ;;  %v5728_v16 = vld [vmem:[%s7122_s12 + $0x5e0] sm:$0xff] }
 0x2c8   : > { %v6284_v6 = vpop.eup %6283  ;;  %v4429_v48 = vadd.f32 %v6280_v59, %v4428_v41  ;;  %v5881_v3 = vmul.f32 -1.442695, %v8666_v49  ;;  %vm8684_vm6 = vcmp.eq.f32.partialorder %v4449_v19, 8.507059e+37  ;;  %v4451_v36 = vand.u32 2147483648, %v8612_v2 }
 0x2c9   : > { %v4441_v18 = vmul.f32 %v6284_v6, %v8612_v2  ;;  %6289 = vrcp.f32 %v8671_v24  ;;  %v2795_v22 = vmul.f32 1.442695, %v2691_v4  ;;  %v3181_v21 = vmul.f32 %v8538_v20, %v3180_v10 }
 0x2ca   : > { %v6286_v31 = vpop.eup %6285  ;;  %v4433_v8 = vsel %vm4432_vm3, %v6280_v59, %v4429_v48  ;;  %v8692_v5 = vadd.f32 %v8618_v11, %v2496_v62  ;;  %6291 = vpow2.f32 %v5881_v3  ;;  %vm4446_vm7 = vweird.f32 %v6284_v6  ;;  %5663 = vmatmul.msk.f32.gmra.mxu1 %vm1186_vm0, %v1112_v60  ;;  %v5729_v60 = vld [vmem:[%s7122_s12 + $0x5e8] sm:$0xff] }
 0x2cb   : > { %v4438_v25 = vsel %vm8645_vm13, %v4437_v61, %v4433_v8  ;;  %v4442_v28 = vsub.f32 1.0, %v4441_v18  ;;  %v3178_v9 = vmul.f32 0.6931472, %v6286_v31  ;;  %vm3183_vm8 = vcmp.lt.f32.partialorder %v3182_v55, 0.0004427343  ;;  %vm8723_vm10 = vmor %vm4445_vm15, %vm4446_vm7  ;;  %5792 = vmatmul.msk.f32.gmra.mxu2 %vm1186_vm0, %v5728_v16  ;;  %v8766_v18 = vpop.f32.mrf.mxu1 }
 0x2cc   : > { %v5133_v30 = vmul.f32 1.002, %v4438_v25  ;;  %v2692_v15 = vmin.f32 %v8692_v5, 20.0  ;;  %v8701_v20 = vpop.eup %6287  ;;  %v3185_v59 = vadd.f32 1.0, %v8588_v1  ;;  %v3188_v51 = vmul.f32 -0.5, %v8588_v1 }
 0x2cd   : > { %v4443_v39 = vmul.f32 %v6284_v6, %v4442_v28  ;;  %v3184_v37 = vsel %vm3183_vm8, %v3181_v21, %v3178_v9  ;;  %v4452_v42 = vor.u32 1.1754944e-38, %v4451_v36  ;;  %6293 = vpow2.f32 %v2795_v22  ;;  %v5536_v9 = vld [vmem:[%s7122_s12 + $0x3e0] sm:$0xff] }
 0x2ce   : > { %v5942_v12 = vadd.f32 -0.001, %v5133_v30  ;;  %v3456_v14 = vsel %vm2624_vm1, %v8446_v0, %v3184_v37  ;;  %vm4460_vm9 = vweird.f32 %v8671_v24  ;;  %6295 = vlog2.f32 %v3185_v59  ;;  %v8764_v3 = vpop.f32.mrf.mxu0  ;;  %v1113_v30 = vld [vmem:[%s7122_s12 + $0x1e0] sm:$0xff]  ;;  %5600 = vmatmul.msk.f32.gmra.mxu0 %vm1186_vm0, %v5536_v9 }
 0x2cf   : > { %v8710_v33 = vpop.eup %6289  ;;  %v4444_v57 = vadd.f32 %v6284_v6, %v4443_v39  ;;  %v1924_v38 = vadd.f32 %v8633_v44, %v8631_v53  ;;  %v4464_v54 = vand.u32 2147483647, %v8671_v24  ;;  %v4466_v53 = vand.u32 2147483648, %v8671_v24  ;;  %5833 = vmatmul.msk.f32.gmra.mxu3 %vm3495_vm2, %v3456_v14  ;;  %v8771_v28 = vpop.f32.mrf.mxu2 }
 0x2d0   : > { %v5262_v43 = vsel %vm5243_vm4, %v8480_v34, %v5942_v12  ;;  %v4456_v58 = vmul.f32 %v8710_v33, %v8671_v24  ;;  %vm2625_vm11 = vcmp.gt.f32.partialorder %v8486_v52, 20.0  ;;  %v3774_v34 = vpop.f32.mrf.mxu3  ;;  %v6292_v2 = vpop.eup %6291  ;;  %v2797_v61 = vmul.f32 1.442695, %v2692_v15 }
 0x2d1   : > { %5327 = vst.msk [vmem:[%s7682_s9 + $0x90] sm:$0xff] %vm5308_vm5, %v5262_v43  ;;  %v4448_v44 = vsel %vm8723_vm10, %v6284_v6, %v4444_v57  ;;  %v3189_v19 = vadd.f32 1.0, %v3188_v51  ;;  %v2497_v45 = vadd.f32 %v8649_v32, %v1924_v38  ;;  %v8742_v41 = vadd.f32 1.0, %v6292_v2 }
 0x2d2   : > { %v4453_v4 = vsel %vm8684_vm6, %v4452_v42, %v4448_v44  ;;  %v4457_v23 = vsub.f32 1.0, %v4456_v58  ;;  %v8746_v10 = vadd.f32 %v8663_v17, %v8668_v26  ;;  %v3191_v6 = vand.u32 2147483647, %v8588_v1  ;;  %5664 = vmatmul.msk.f32.gmra.mxu1 %vm1186_vm0, %v1113_v30  ;;  %v5537_v26 = vld [vmem:[%s7122_s12 + $0x3e8] sm:$0xff] }
 0x2d3   : > { %v5134_v63 = vmul.f32 1.002, %v4453_v4  ;;  %v8751_v48 = vadd.f32 %v8618_v11, %v2497_v45  ;;  %v3194_v32 = vadd.f32 1.0, %v8701_v20  ;;  %v8755_v55 = vpop.eup %6293  ;;  %vm4461_vm12 = vweird.f32 %v8710_v33  ;;  %5793 = vmatmul.msk.f32.gmra.mxu2 %vm1186_vm0, %v5729_v60 }
 0x2d4   : > { %v4458_v62 = vmul.f32 %v8710_v33, %v4457_v23  ;;  %vm8759_vm13 = vcmp.eq.f32.partialorder %v4464_v54, 8.507059e+37  ;;  %6297 = vrcp.f32 %v8742_v41  ;;  %v6296_v29 = vpop.eup %6295  ;;  %v4467_v31 = vor.u32 1.1754944e-38, %v4466_v53  ;;  %vm4462_vm14 = vmor %vm4460_vm9, %vm4461_vm12  ;;  %v8819_v23 = vpop.f32.mrf.mxu1 }
 0x2d5   : > { %v5943_v36 = vadd.f32 -0.001, %v5134_v63  ;;  %6299 = vpow2.f32 %v2797_v61  ;;  %v5882_v8 = vmul.f32 -1.442695, %v8746_v10  ;;  %v3187_v21 = vmul.f32 0.6931472, %v6296_v29 }
 0x2d6   : > { %v4459_v22 = vadd.f32 %v8710_v33, %v4458_v62  ;;  %v3190_v25 = vmul.f32 %v8588_v1, %v3189_v19  ;;  %6301 = vlog2.f32 %v3194_v32  ;;  %vm3192_vm15 = vcmp.lt.f32.partialorder %v3191_v6, 0.0004427343  ;;  %v8817_v4 = vpop.f32.mrf.mxu0  ;;  %v1114_v29 = vld [vmem:[%s7122_s12 + $0x1e8] sm:$0xff]  ;;  %5601 = vmatmul.msk.f32.gmra.mxu0 %vm1186_vm0, %v5537_v26 }
 0x2d7   : > { %v5263_v15 = vsel %vm5243_vm4, %v8518_v27, %v5943_v36  ;;  %v2693_v39 = vmin.f32 %v8751_v48, 20.0  ;;  %6303 = vpow2.f32 %v5882_v8  ;;  %vm2626_vm1 = vcmp.gt.f32.partialorder %v8568_v56, 20.0  ;;  %v8834_v62 = vpop.f32.mrf.mxu2 }
 0x2d8   : > { %5328 = vst.msk [vmem:[%s7682_s9 + $0x98] sm:$0xff] %vm5308_vm5, %v5263_v15  ;;  %v4463_v1 = vsel %vm4462_vm14, %v8710_v33, %v4459_v22  ;;  %v3193_v37 = vsel %vm3192_vm15, %v3190_v25, %v3187_v21  ;;  %v3197_v59 = vmul.f32 -0.5, %v8701_v20  ;;  %v4479_v24 = vand.u32 2147483647, %v8742_v41  ;;  %v3777_v50 = vpop.f32.mrf.mxu3 }
 0x2d9   : > { %v4468_v27 = vsel %vm8759_vm13, %v4467_v31, %v4463_v1  ;;  %v3457_v51 = vsel %vm2625_vm11, %v8486_v52, %v3193_v37  ;;  %v1927_v12 = vadd.f32 %v8699_v35, %v8697_v7  ;;  %v3200_v57 = vand.u32 2147483647, %v8701_v20 }
 0x2da   : > { %v6298_v42 = vpop.eup %6297  ;;  %v5135_v14 = vmul.f32 1.002, %v4468_v27  ;;  %5834 = vmatmul.msk.f32.gmra.mxu3 %vm3495_vm2, %v3457_v51  ;;  %v3198_v33 = vadd.f32 1.0, %v3197_v59  ;;  %v8801_v38 = vadd.f32 %v8663_v17, %v3774_v34  ;;  %v4481_v7 = vand.u32 2147483648, %v8742_v41  ;;  %5665 = vmatmul.msk.f32.gmra.mxu1 %vm1186_vm0, %v1114_v29 }
 0x2db   : > { %v8804_v43 = vpop.eup %6299  ;;  %v4471_v52 = vmul.f32 %v6298_v42, %v8742_v41  ;;  %v2799_v35 = vmul.f32 1.442695, %v2693_v39  ;;  %v2498_v0 = vadd.f32 %v8708_v13, %v1927_v12  ;;  %v3203_v2 = vadd.f32 1.0, %v8755_v55  ;;  %v5730_v39 = vld [vmem:[%s7122_s12 + $0x5f0] sm:$0xff] }
 0x2dc   : > { %v6302_v58 = vpop.eup %6301  ;;  %v5944_v54 = vadd.f32 -0.001, %v5135_v14  ;;  %v3199_v53 = vmul.f32 %v8701_v20, %v3198_v33  ;;  %v5883_v34 = vmul.f32 -1.442695, %v8801_v38  ;;  %v3206_v13 = vmul.f32 -0.5, %v8755_v55  ;;  %5794 = vmatmul.msk.f32.gmra.mxu2 %vm1186_vm0, %v5730_v39 }
 0x2dd   : > { %v6304_v44 = vpop.eup %6303  ;;  %v4472_v61 = vsub.f32 1.0, %v4471_v52  ;;  %v3196_v19 = vmul.f32 0.6931472, %v6302_v58  ;;  %v8814_v45 = vadd.f32 %v8618_v11, %v2498_v0  ;;  %vm8826_vm3 = vcmp.lt.f32.partialorder %v3200_v57, 0.0004427343  ;;  %v1115_v0 = vld [vmem:[%s7122_s12 + $0x1f0] sm:$0xff] }
 0x2de   : > { %v5264_v20 = vsel %vm5243_vm4, %v8558_v47, %v5944_v54  ;;  %v8824_v16 = vadd.f32 1.0, %v6304_v44  ;;  %6305 = vpow2.f32 %v5883_v34  ;;  %vm4476_vm6 = vweird.f32 %v6298_v42 }
 0x2df   : > { %5329 = vst.msk [vmem:[%s7682_s9 + $0xa0] sm:$0xff] %vm5308_vm5, %v5264_v20  ;;  %v4473_v6 = vmul.f32 %v6298_v42, %v4472_v61  ;;  %v3202_v32 = vsel %vm8826_vm3, %v3199_v53, %v3196_v19  ;;  %6307 = vlog2.f32 %v3203_v2  ;;  %vm4475_vm7 = vweird.f32 %v8742_v41 }
 0x2e0   : > { %vm8839_vm8 = vcmp.eq.f32.partialorder %v4479_v24, 8.507059e+37  ;;  %6309 = vrcp.f32 %v8824_v16  ;;  %v2694_v36 = vmin.f32 %v8814_v45, 20.0  ;;  %v4482_v8 = vor.u32 1.1754944e-38, %v4481_v7  ;;  %vm4477_vm9 = vmor %vm4475_vm7, %vm4476_vm6  ;;  %v3780_v51 = vpop.f32.mrf.mxu3  ;;  %v8878_v7 = vpop.f32.mrf.mxu0 }
 0x2e1   : > { %v4474_v31 = vadd.f32 %v6298_v42, %v4473_v6  ;;  %v3458_v22 = vsel %vm2626_vm1, %v8568_v56, %v3202_v32  ;;  %v3207_v21 = vadd.f32 1.0, %v3206_v13  ;;  %6311 = vpow2.f32 %v2799_v35  ;;  %v5538_v35 = vld [vmem:[%s7122_s12 + $0x3f0] sm:$0xff]  ;;  %v8898_v13 = vpop.f32.mrf.mxu2  ;;  %v5731_v32 = vld [vmem:[%s7122_s12 + $0x5f8] sm:$0xff] }
 0x2e2   : > { %5835 = vmatmul.msk.f32.gmra.mxu3 %vm3495_vm2, %v3458_v22  ;;  %vm2627_vm10 = vcmp.gt.f32.partialorder %v8621_v46, 20.0  ;;  %v3209_v41 = vand.u32 2147483647, %v8755_v55  ;;  %v1930_v25 = vadd.f32 %v8766_v18, %v8764_v3  ;;  %v4494_v30 = vand.u32 2147483647, %v8824_v16  ;;  %5602 = vmatmul.msk.f32.gmra.mxu0 %vm1186_vm0, %v5538_v35  ;;  %v5539_v35 = vld [vmem:[%s7122_s12 + $0x3f8] sm:$0xff] }
 0x2e3   : > { %v4478_v9 = vsel %vm4477_vm9, %v6298_v42, %v4474_v31  ;;  %v4496_v56 = vand.u32 2147483648, %v8824_v16  ;;  %v8859_v15 = vadd.f32 %v8663_v17, %v3777_v50  ;;  %v2801_v59 = vmul.f32 1.442695, %v2694_v36  ;;  %5666 = vmatmul.msk.f32.gmra.mxu1 %vm1186_vm0, %v1115_v0  ;;  %v1116_v0 = vld [vmem:[%s7122_s12 + $0x1f8] sm:$0xff] }
 0x2e4   : > { %v6306_v1 = vpop.eup %6305  ;;  %v4483_v37 = vsel %vm8839_vm8, %v4482_v8, %v4478_v9  ;;  %v2499_v27 = vadd.f32 %v8771_v28, %v1930_v25  ;;  %v3212_v24 = vadd.f32 1.0, %v8804_v43  ;;  %vm4490_vm11 = vweird.f32 %v8824_v16  ;;  %5795 = vmatmul.msk.f32.gmra.mxu2 %vm1186_vm0, %v5731_v32 }
 0x2e5   : > { %v6308_v3 = vpop.eup %6307  ;;  %v5136_v18 = vmul.f32 1.002, %v4483_v37  ;;  %v8868_v12 = vadd.f32 1.0, %v6306_v1  ;;  %v3208_v42 = vmul.f32 %v8755_v55, %v3207_v21  ;;  %v5884_v14 = vmul.f32 -1.442695, %v8859_v15  ;;  %v8880_v55 = vpop.f32.mrf.mxu1 }
 0x2e6   : > { %v6310_v33 = vpop.eup %6309  ;;  %v3205_v57 = vmul.f32 0.6931472, %v6308_v3  ;;  %v8873_v28 = vadd.f32 %v8618_v11, %v2499_v27  ;;  %6313 = vlog2.f32 %v3212_v24  ;;  %v3215_v50 = vmul.f32 -0.5, %v8804_v43 }
 0x2e7   : > { %v5945_v60 = vadd.f32 -0.001, %v5136_v18  ;;  %v4486_v52 = vmul.f32 %v6310_v33, %v8824_v16  ;;  %6315 = vrcp.f32 %v8868_v12  ;;  %vm3210_vm12 = vcmp.lt.f32.partialorder %v3209_v41, 0.0004427343  ;;  %v8884_v58 = vpop.eup %6311 }
 0x2e8   : > { %vm8886_vm13 = vcmp.eq.f32.partialorder %v4494_v30, 8.507059e+37  ;;  %v4497_v53 = vor.u32 1.1754944e-38, %v4496_v56  ;;  %6317 = vpow2.f32 %v2801_v59  ;;  %v3211_v34 = vsel %vm3210_vm12, %v3208_v42, %v3205_v57  ;;  %v8941_v18 = vpop.f32.mrf.mxu0 }
 0x2e9   : > { %v5265_v2 = vsel %vm5243_vm4, %v8666_v49, %v5945_v60  ;;  %v4487_v44 = vsub.f32 1.0, %v4486_v52  ;;  %v3459_v61 = vsel %vm2627_vm10, %v8621_v46, %v3211_v34  ;;  %v2695_v19 = vmin.f32 %v8873_v28, 20.0  ;;  %v2404_v52 = vpop.f32.mrf.mxu2 }
 0x2ea   : > { %5330 = vst.msk [vmem:[%s7682_s9 + $0xa8] sm:$0xff] %vm5308_vm5, %v5265_v2  ;;  %5836 = vmatmul.msk.f32.gmra.mxu3 %vm3495_vm2, %v3459_v61  ;;  %6319 = vpow2.f32 %v5884_v14  ;;  %vm2628_vm14 = vcmp.gt.f32.partialorder %v8692_v5, 20.0  ;;  %v3216_v49 = vadd.f32 1.0, %v3215_v50  ;;  %v3218_v20 = vand.u32 2147483647, %v8804_v43  ;;  %5603 = vmatmul.msk.f32.gmra.mxu0 %vm1186_vm0, %v5539_v35 }
 0x2eb   : > { %v4488_v63 = vmul.f32 %v6310_v33, %v4487_v44  ;;  %vm4491_vm15 = vweird.f32 %v6310_v33  ;;  %v4509_v46 = vand.u32 2147483647, %v8868_v12  ;;  %v1933_v6 = vadd.f32 %v8819_v23, %v8817_v4  ;;  %5667 = vmatmul.msk.f32.gmra.mxu1 %vm1186_vm0, %v1116_v0 }
 0x2ec   : > { %v6314_v26 = vpop.eup %6313  ;;  %vm4505_vm1 = vweird.f32 %v8868_v12  ;;  %v4511_v29 = vand.u32 2147483648, %v8868_v12  ;;  %v2803_v47 = vmul.f32 1.442695, %v2695_v19  ;;  %v8913_v36 = vadd.f32 %v8663_v17, %v3780_v51  ;;  %vm4492_vm3 = vmor %vm4490_vm11, %vm4491_vm15 }
 0x2ed   : > { %v3221_v31 = vadd.f32 1.0, %v8884_v58  ;;  %v6316_v8 = vpop.eup %6315  ;;  %v4489_v22 = vadd.f32 %v6310_v33, %v4488_v63  ;;  %v3214_v21 = vmul.f32 0.6931472, %v6314_v26  ;;  %v3217_v41 = vmul.f32 %v8804_v43, %v3216_v49  ;;  %v3783_v30 = vpop.f32.mrf.mxu3 }
 0x2ee   : > { %v2500_v4 = vadd.f32 %v8834_v62, %v1933_v6  ;;  %v8919_v23 = vpop.eup %6317  ;;  %v4501_v25 = vmul.f32 %v6316_v8, %v8868_v12  ;;  %vm3219_vm6 = vcmp.lt.f32.partialorder %v3218_v20, 0.0004427343  ;;  %v5885_v9 = vmul.f32 -1.442695, %v8913_v36  ;;  %v1938_v42 = vpop.f32.mrf.mxu1 }
 0x2ef   : > { %6321 = vlog2.f32 %v3221_v31  ;;  %v4493_v56 = vsel %vm4492_vm3, %v6310_v33, %v4489_v22  ;;  %v3220_v39 = vsel %vm3219_vm6, %v3217_v41, %v3214_v21  ;;  %v3224_v43 = vmul.f32 -0.5, %v8884_v58 }
 0x2f0   : > { %v8927_v1 = vadd.f32 %v8618_v11, %v2500_v4  ;;  %v6320_v62 = vpop.eup %6319  ;;  %v4498_v37 = vsel %vm8886_vm13, %v4497_v53, %v4493_v56  ;;  %v4502_v16 = vsub.f32 1.0, %v4501_v25  ;;  %v3460_v59 = vsel %vm2628_vm14, %v8692_v5, %v3220_v39 }
 0x2f1   : > { %6323 = vpow2.f32 %v5885_v9  ;;  %v5137_v27 = vmul.f32 1.002, %v4498_v37  ;;  %vm8935_vm7 = vcmp.eq.f32.partialorder %v4509_v46, 8.507059e+37  ;;  %v8939_v51 = vadd.f32 1.0, %v6320_v62  ;;  %v8996_v9 = vpop.f32.mrf.mxu2 }
 0x2f2   : > { %v3225_v3 = vadd.f32 1.0, %v3224_v43  ;;  %v4503_v14 = vmul.f32 %v6316_v8, %v4502_v16  ;;  %vm4506_vm8 = vweird.f32 %v6316_v8  ;;  %5837 = vmatmul.msk.f32.gmra.mxu3 %vm3495_vm2, %v3460_v59  ;;  %v3227_v5 = vand.u32 2147483647, %v8884_v58 }
 0x2f3   : > { %v1936_v33 = vadd.f32 %v8880_v55, %v8878_v7  ;;  %v5946_v57 = vadd.f32 -0.001, %v5137_v27  ;;  %v4512_v50 = vor.u32 1.1754944e-38, %v4511_v29  ;;  %6325 = vrcp.f32 %v8939_v51  ;;  %vm4507_vm10 = vmor %vm4505_vm1, %vm4506_vm8 }
 0x2f4   : > { %v8949_v60 = vadd.f32 %v8663_v17, %v3783_v30  ;;  %v4504_v53 = vadd.f32 %v6316_v8, %v4503_v14  ;;  %6327 = vpow2.f32 %v2803_v47  ;;  %v2696_v34 = vmin.f32 %v8927_v1, 20.0 }
 0x2f5   : > { %v6322_v54 = vpop.eup %6321  ;;  %vm2629_vm9 = vcmp.gt.f32.partialorder %v8751_v48, 20.0  ;;  %v5266_v7 = vsel %vm5243_vm4, %v8746_v10, %v5946_v57  ;;  %v4524_v55 = vand.u32 2147483647, %v8939_v51  ;;  %v3226_v44 = vmul.f32 %v8884_v58, %v3225_v3 }
 0x2f6   : > { %v3223_v2 = vmul.f32 0.6931472, %v6322_v54  ;;  %5331 = vst.msk [vmem:[%s7682_s9 + $0xb0] sm:$0xff] %vm5308_vm5, %v5266_v7  ;;  %v4508_v19 = vsel %vm4507_vm10, %v6316_v8, %v4504_v53  ;;  %v4526_v49 = vand.u32 2147483648, %v8939_v51  ;;  %vm3228_vm0 = vcmp.lt.f32.partialorder %v3227_v5, 0.0004427343  ;;  %v8983_v31 = vpop.f32.mrf.mxu1 }
 0x2f7   : > { %v6324_v61 = vpop.eup %6323  ;;  %v2501_v20 = vadd.f32 %v8898_v13, %v1936_v33  ;;  %v4513_v10 = vsel %vm8935_vm7, %v4512_v50, %v4508_v19  ;;  %v5886_v46 = vmul.f32 -1.442695, %v8949_v60  ;;  %v2805_v32 = vmul.f32 1.442695, %v2696_v34  ;;  %v3786_v29 = vpop.f32.mrf.mxu3 }
 0x2f8   : > { %v8971_v63 = vadd.f32 1.0, %v6324_v61  ;;  %v3229_v12 = vsel %vm3228_vm0, %v3226_v44, %v3223_v2  ;;  %v5138_v6 = vmul.f32 1.002, %v4513_v10  ;;  %v8981_v13 = vpop.f32.mrf.mxu0  ;;  %vm4520_vm11 = vweird.f32 %v8939_v51 }
 0x2f9   : > { %v3461_v58 = vsel %vm2629_vm9, %v8751_v48, %v3229_v12  ;;  %v8978_v26 = vadd.f32 %v8618_v11, %v2501_v20  ;;  %v6326_v47 = vpop.eup %6325  ;;  %vm8989_vm12 = vcmp.eq.f32.partialorder %v4524_v55, 8.507059e+37  ;;  %v4527_v41 = vor.u32 1.1754944e-38, %v4526_v49 }
 0x2fa   : > { %6329 = vrcp.f32 %v8971_v63  ;;  %v8985_v8 = vpop.eup %6327  ;;  %v5947_v22 = vadd.f32 -0.001, %v5138_v6  ;;  %v4516_v21 = vmul.f32 %v6326_v47, %v8939_v51  ;;  %5838 = vmatmul.msk.f32.gmra.mxu3 %vm3495_vm2, %v3461_v58  ;;  %v3230_v25 = vadd.f32 1.0, %v8919_v23 }
 0x2fb   : > { %v2697_v4 = vmin.f32 %v8978_v26, 20.0  ;;  %6331 = vpow2.f32 %v5886_v46  ;;  %v4539_v39 = vand.u32 2147483647, %v8971_v63  ;;  %v3233_v43 = vmul.f32 -0.5, %v8919_v23 }
 0x2fc   : > { %v5267_v30 = vsel %vm5243_vm4, %v8801_v38, %v5947_v22  ;;  %v4517_v56 = vsub.f32 1.0, %v4516_v21  ;;  %6333 = vpow2.f32 %v2805_v32  ;;  %v1939_v62 = vadd.f32 %v1938_v42, %v8941_v18  ;;  %v9045_v32 = vpop.f32.mrf.mxu2 }
 0x2fd   : > { %5332 = vst.msk [vmem:[%s7682_s9 + $0xb8] sm:$0xff] %vm5308_vm5, %v5267_v30  ;;  %6335 = vlog2.f32 %v3230_v25  ;;  %v9007_v37 = vadd.f32 %v8663_v17, %v3786_v29  ;;  %vm4521_vm13 = vweird.f32 %v6326_v47  ;;  %vm4535_vm14 = vweird.f32 %v8971_v63 }
 0x2fe   : > { %v4518_v16 = vmul.f32 %v6326_v47, %v4517_v56  ;;  %v4541_v38 = vand.u32 2147483648, %v8971_v63  ;;  %v2807_v27 = vmul.f32 1.442695, %v2697_v4  ;;  %vm2630_vm15 = vcmp.gt.f32.partialorder %v8814_v45, 20.0  ;;  %vm4522_vm3 = vmor %vm4520_vm11, %vm4521_vm13  ;;  %v9035_v61 = vpop.f32.mrf.mxu1 }
 0x2ff   : > { %v2502_v24 = vadd.f32 %v2404_v52, %v1939_v62  ;;  %v5887_v3 = vmul.f32 -1.442695, %v9007_v37  ;;  %v3239_v14 = vadd.f32 1.0, %v8985_v8  ;;  %vm9015_vm1 = vcmp.eq.f32.partialorder %v4539_v39, 8.507059e+37  ;;  %v3789_v57 = vpop.f32.mrf.mxu3 }
 0x300   : > { %v6330_v59 = vpop.eup %6329  ;;  %v4519_v5 = vadd.f32 %v6326_v47, %v4518_v16  ;;  %v3236_v33 = vand.u32 2147483647, %v8919_v23  ;;  %v3234_v52 = vadd.f32 1.0, %v3233_v43  ;;  %v3242_v0 = vmul.f32 -0.5, %v8985_v8  ;;  %v9033_v44 = vpop.f32.mrf.mxu0 }
 0x301   : > { %v4531_v18 = vmul.f32 %v6330_v59, %v8971_v63  ;;  %v6332_v50 = vpop.eup %6331  ;;  %v9024_v35 = vadd.f32 %v8618_v11, %v2502_v24  ;;  %6337 = vpow2.f32 %v5887_v3  ;;  %vm4536_vm6 = vweird.f32 %v6330_v59 }
 0x302   : > { %v9027_v54 = vpop.eup %6333  ;;  %v4523_v53 = vsel %vm4522_vm3, %v6326_v47, %v4519_v5  ;;  %v9029_v7 = vadd.f32 1.0, %v6332_v50  ;;  %6339 = vlog2.f32 %v3239_v14  ;;  %v4542_v51 = vor.u32 1.1754944e-38, %v4541_v38  ;;  %vm4537_vm8 = vmor %vm4535_vm14, %vm4536_vm6 }
 0x303   : > { %v4532_v34 = vsub.f32 1.0, %v4531_v18  ;;  %v6336_v55 = vpop.eup %6335  ;;  %v4528_v2 = vsel %vm8989_vm12, %v4527_v41, %v4523_v53  ;;  %6341 = vpow2.f32 %v2807_v27  ;;  %v2698_v20 = vmin.f32 %v9024_v35, 20.0 }
 0x304   : > { %v5139_v19 = vmul.f32 1.002, %v4528_v2  ;;  %6343 = vrcp.f32 %v9029_v7  ;;  %v3232_v10 = vmul.f32 0.6931472, %v6336_v55  ;;  %v3235_v12 = vmul.f32 %v8919_v23, %v3234_v52  ;;  %v9101_v55 = vpop.f32.mrf.mxu2 }
 0x305   : > { %v4533_v49 = vmul.f32 %v6330_v59, %v4532_v34  ;;  %vm9040_vm7 = vcmp.lt.f32.partialorder %v3236_v33, 0.0004427343  ;;  %v3245_v6 = vand.u32 2147483647, %v8985_v8  ;;  %v3243_v47 = vadd.f32 1.0, %v3242_v0 }
 0x306   : > { %v5948_v58 = vadd.f32 -0.001, %v5139_v19  ;;  %v1942_v22 = vadd.f32 %v8983_v31, %v8981_v13  ;;  %v4554_v23 = vand.u32 2147483647, %v9029_v7  ;;  %v4556_v48 = vand.u32 2147483648, %v9029_v7  ;;  %v9091_v33 = vpop.f32.mrf.mxu1 }
 0x307   : > { %v4534_v29 = vadd.f32 %v6330_v59, %v4533_v49  ;;  %v6338_v21 = vpop.eup %6337  ;;  %v3238_v41 = vsel %vm9040_vm7, %v3235_v12, %v3232_v10  ;;  %v9057_v4 = vadd.f32 %v8663_v17, %v3789_v57  ;;  %v2809_v30 = vmul.f32 1.442695, %v2698_v20 }
 0x308   : > { %v6340_v25 = vpop.eup %6339  ;;  %v5268_v13 = vsel %vm5243_vm4, %v8859_v15, %v5948_v58  ;;  %v3462_v63 = vsel %vm2630_vm15, %v8814_v45, %v3238_v41  ;;  %v9072_v43 = vadd.f32 1.0, %v6338_v21  ;;  %v2503_v15 = vadd.f32 %v8996_v9, %v1942_v22  ;;  %v9082_v5 = vpop.f32.mrf.mxu0 }
 0x309   : > { %v4538_v31 = vsel %vm4537_vm8, %v6330_v59, %v4534_v29  ;;  %v9065_v56 = vpop.eup %6341  ;;  %5333 = vst.msk [vmem:[%s7682_s9 + $0xc0] sm:$0xff] %vm5308_vm5, %v5268_v13  ;;  %5839 = vmatmul.msk.f32.gmra.mxu3 %vm3495_vm2, %v3462_v63  ;;  %v3241_v62 = vmul.f32 0.6931472, %v6340_v25  ;;  %v3244_v59 = vmul.f32 %v8985_v8, %v3243_v47  ;;  %v5888_v45 = vmul.f32 -1.442695, %v9057_v4 }
 0x30a   : > { %v4543_v39 = vsel %vm9015_vm1, %v4542_v51, %v4538_v31  ;;  %v6344_v16 = vpop.eup %6343  ;;  %v3248_v27 = vadd.f32 1.0, %v9027_v54  ;;  %v3792_v24 = vpop.f32.mrf.mxu3  ;;  %6345 = vrcp.f32 %v9072_v43  ;;  %vm2631_vm9 = vcmp.gt.f32.partialorder %v8873_v28, 20.0 }
 0x30b   : > { %v5140_v38 = vmul.f32 1.002, %v4543_v39  ;;  %v4546_v3 = vmul.f32 %v6344_v16, %v9029_v7  ;;  %vm3246_vm10 = vcmp.lt.f32.partialorder %v3245_v6, 0.0004427343  ;;  %vm4550_vm0 = vweird.f32 %v9029_v7 }
 0x30c   : > { %6347 = vpow2.f32 %v2809_v30  ;;  %v3247_v9 = vsel %vm3246_vm10, %v3244_v59, %v3241_v62  ;;  %vm9084_vm11 = vcmp.eq.f32.partialorder %v4554_v23, 8.507059e+37  ;;  %v9089_v42 = vadd.f32 %v8618_v11, %v2503_v15 }
 0x30d   : > { %v5949_v14 = vadd.f32 -0.001, %v5140_v38  ;;  %v4547_v8 = vsub.f32 1.0, %v4546_v3  ;;  %6349 = vpow2.f32 %v5888_v45  ;;  %v4557_v50 = vor.u32 1.1754944e-38, %v4556_v48  ;;  %v2416_v3 = vpop.f32.mrf.mxu2 }
 0x30e   : > { %v3463_v52 = vsel %vm2631_vm9, %v8873_v28, %v3247_v9  ;;  %6351 = vlog2.f32 %v3248_v27  ;;  %vm4551_vm12 = vweird.f32 %v6344_v16  ;;  %v2699_v53 = vmin.f32 %v9089_v42, 20.0  ;;  %v1950_v15 = vpop.f32.mrf.mxu1 }
 0x30f   : > { %v5269_v57 = vsel %vm5243_vm4, %v8913_v36, %v5949_v14  ;;  %v4548_v0 = vmul.f32 %v6344_v16, %v4547_v8  ;;  %v3251_v34 = vmul.f32 -0.5, %v9027_v54  ;;  %vm4565_vm13 = vweird.f32 %v9072_v43  ;;  %vm4552_vm15 = vmor %vm4550_vm0, %vm4551_vm12 }
 0x310   : > { %5334 = vst.msk [vmem:[%s7682_s9 + $0xc8] sm:$0xff] %vm5308_vm5, %v5269_v57  ;;  %vm2632_vm14 = vcmp.gt.f32.partialorder %v8927_v1, 20.0  ;;  %v1945_v36 = vadd.f32 %v9035_v61, %v9033_v44  ;;  %v9108_v28 = vadd.f32 %v8663_v17, %v3792_v24  ;;  %v6346_v2 = vpop.eup %6345  ;;  %v4569_v19 = vand.u32 2147483647, %v9072_v43 }
 0x311   : > { %v4549_v51 = vadd.f32 %v6344_v16, %v4548_v0  ;;  %v4571_v49 = vand.u32 2147483648, %v9072_v43  ;;  %5840 = vmatmul.msk.f32.gmra.mxu3 %vm3495_vm2, %v3463_v52  ;;  %v3252_v20 = vadd.f32 1.0, %v3251_v34  ;;  %v4561_v44 = vmul.f32 %v6346_v2, %v9072_v43 }
 0x312   : > { %v9113_v10 = vpop.eup %6347  ;;  %v3254_v61 = vand.u32 2147483647, %v9027_v54  ;;  %v2504_v12 = vadd.f32 %v9045_v32, %v1945_v36  ;;  %v5889_v46 = vmul.f32 -1.442695, %v9108_v28  ;;  %v2811_v29 = vmul.f32 1.442695, %v2699_v53  ;;  %v3795_v21 = vpop.f32.mrf.mxu3 }
 0x313   : > { %v6350_v6 = vpop.eup %6349  ;;  %v4553_v58 = vsel %vm4552_vm15, %v6344_v16, %v4549_v51  ;;  %v3253_v47 = vmul.f32 %v9027_v54, %v3252_v20  ;;  %v3257_v22 = vadd.f32 1.0, %v9065_v56  ;;  %v4562_v48 = vsub.f32 1.0, %v4561_v44  ;;  %v9133_v54 = vpop.f32.mrf.mxu0 }
 0x314   : > { %v6352_v23 = vpop.eup %6351  ;;  %v4558_v7 = vsel %vm9084_vm11, %v4557_v50, %v4553_v58  ;;  %v9126_v41 = vadd.f32 1.0, %v6350_v6  ;;  %v9129_v25 = vadd.f32 %v8618_v11, %v2504_v12  ;;  %6353 = vpow2.f32 %v5889_v46 }
 0x315   : > { %v5141_v32 = vmul.f32 1.002, %v4558_v7  ;;  %v3250_v13 = vmul.f32 0.6931472, %v6352_v23  ;;  %v3260_v31 = vmul.f32 -0.5, %v9065_v56  ;;  %v4563_v63 = vmul.f32 %v6346_v2, %v4562_v48 }
 0x316   : > { %vm4566_vm1 = vweird.f32 %v6346_v2  ;;  %6355 = vrcp.f32 %v9126_v41  ;;  %vm3255_vm3 = vcmp.lt.f32.partialorder %v3254_v61, 0.0004427343  ;;  %vm9135_vm6 = vcmp.eq.f32.partialorder %v4569_v19, 8.507059e+37  ;;  %v9180_v61 = vld [vmem:[%s10023_s2] ss:$0 sm:$0xff] }
 0x317   : > { %v5950_v30 = vadd.f32 -0.001, %v5141_v32  ;;  %v3256_v11 = vsel %vm3255_vm3, %v3253_v47, %v3250_v13  ;;  %v2700_v62 = vmin.f32 %v9129_v25, 20.0  ;;  %v4564_v16 = vadd.f32 %v6346_v2, %v4563_v63  ;;  %vm4567_vm7 = vmor %vm4565_vm13, %vm4566_vm1  ;;  %v2419_v63 = vpop.f32.mrf.mxu2 }
 0x318   : > { %v4572_v38 = vor.u32 1.1754944e-38, %v4571_v49  ;;  %v3464_v59 = vsel %vm2632_vm14, %v8927_v1, %v3256_v11  ;;  %6357 = vlog2.f32 %v3257_v22  ;;  %v4584_v27 = vand.u32 2147483647, %v9126_v41  ;;  %v1953_v22 = vpop.f32.mrf.mxu1 }
 0x319   : > { %v5270_v45 = vsel %vm5243_vm4, %v8949_v60, %v5950_v30  ;;  %6359 = vpow2.f32 %v2811_v29  ;;  %5841 = vmatmul.msk.f32.gmra.mxu3 %vm3495_vm2, %v3464_v59  ;;  %vm2633_vm8 = vcmp.gt.f32.partialorder %v8978_v26, 20.0  ;;  %v3261_v24 = vadd.f32 1.0, %v3260_v31  ;;  %v9205_v31 = vld [vmem:[%s10025_s4] ss:$0 sm:$0xff] }
 0x31a   : > { %5335 = vst.msk [vmem:[%s7682_s9 + $0xd0] sm:$0xff] %vm5308_vm5, %v5270_v45  ;;  %v4568_v1 = vsel %vm4567_vm7, %v6346_v2, %v4564_v16  ;;  %v4586_v14 = vand.u32 2147483648, %v9126_v41  ;;  %v1948_v60 = vadd.f32 %v9091_v33, %v9082_v5  ;;  %v9157_v43 = vadd.f32 %v8663_v17, %v3795_v21  ;;  %v6354_v9 = vpop.eup %6353 }
 0x31b   : > { %v4573_v8 = vsel %vm9135_vm6, %v4572_v38, %v4568_v1  ;;  %vm4580_vm9 = vweird.f32 %v9126_v41  ;;  %v2813_v18 = vmul.f32 1.442695, %v2700_v62  ;;  %v3266_v57 = vadd.f32 1.0, %v9113_v10  ;;  %v9189_v6 = vpop.f32.mrf.mxu0 }
 0x31c   : > { %v6356_v50 = vpop.eup %6355  ;;  %v5142_v52 = vmul.f32 1.002, %v4573_v8  ;;  %v9163_v0 = vadd.f32 1.0, %v6354_v9  ;;  %v3263_v53 = vand.u32 2147483647, %v9065_v56  ;;  %v2505_v5 = vadd.f32 %v9101_v55, %v1948_v60  ;;  %v3798_v36 = vpop.f32.mrf.mxu3 }
 0x31d   : > { %v4576_v17 = vmul.f32 %v6356_v50, %v9126_v41  ;;  %vm9168_vm10 = vcmp.eq.f32.partialorder %v4584_v27, 8.507059e+37  ;;  %v5890_v34 = vmul.f32 -1.442695, %v9157_v43  ;;  %6361 = vlog2.f32 %v3266_v57 }
 0x31e   : > { %v6358_v2 = vpop.eup %6357  ;;  %v5951_v51 = vadd.f32 -0.001, %v5142_v52  ;;  %v4587_v19 = vor.u32 1.1754944e-38, %v4586_v14  ;;  %6363 = vrcp.f32 %v9163_v0  ;;  %v3262_v49 = vmul.f32 %v9065_v56, %v3261_v24 }
 0x31f   : > { %v9175_v20 = vpop.eup %6359  ;;  %v4577_v55 = vsub.f32 1.0, %v4576_v17  ;;  %6365 = vpow2.f32 %v2813_v18  ;;  %v3259_v44 = vmul.f32 0.6931472, %v6358_v2  ;;  %v9183_v12 = vadd.f32 %v9180_v61, %v2505_v5 }
 0x320   : > { %v5271_v46 = vsel %vm5243_vm4, %v9007_v37, %v5951_v51  ;;  %vm3264_vm0 = vcmp.lt.f32.partialorder %v3263_v53, 0.0004427343  ;;  %6367 = vpow2.f32 %v5890_v34  ;;  %v3269_v56 = vmul.f32 -0.5, %v9113_v10 }
 0x321   : > { %5336 = vst.msk [vmem:[%s7682_s9 + $0xd8] sm:$0xff] %vm5308_vm5, %v5271_v46  ;;  %v4578_v58 = vmul.f32 %v6356_v50, %v4577_v55  ;;  %vm4581_vm11 = vweird.f32 %v6356_v50  ;;  %v3265_v29 = vsel %vm3264_vm0, %v3262_v49, %v3259_v44  ;;  %v2701_v47 = vmin.f32 %v9183_v12, 20.0  ;;  %v2422_v44 = vpop.f32.mrf.mxu2 }
 0x322   : > { %v3465_v21 = vsel %vm2633_vm8, %v8978_v26, %v3265_v29  ;;  %v3270_v23 = vadd.f32 1.0, %v3269_v56  ;;  %v3272_v37 = vand.u32 2147483647, %v9113_v10  ;;  %v1951_v7 = vadd.f32 %v1950_v15, %v9133_v54  ;;  %vm4582_vm13 = vmor %vm4580_vm9, %vm4581_vm11 }
 0x323   : > { %v6362_v48 = vpop.eup %6361  ;;  %v4579_v32 = vadd.f32 %v6356_v50, %v4578_v58  ;;  %v4599_v13 = vand.u32 2147483647, %v9163_v0  ;;  %5842 = vmatmul.msk.f32.gmra.mxu3 %vm3495_vm2, %v3465_v21  ;;  %vm2634_vm12 = vcmp.gt.f32.partialorder %v9024_v35, 20.0  ;;  %v9208_v26 = vadd.f32 %v9205_v31, %v3798_v36  ;;  %v1555_v5 = vpop.f32.mrf.mxu0 }
 0x324   : > { %v6364_v30 = vpop.eup %6363  ;;  %v4601_v54 = vand.u32 2147483648, %v9163_v0  ;;  %v3268_v39 = vmul.f32 0.6931472, %v6362_v48  ;;  %v3271_v11 = vmul.f32 %v9113_v10, %v3270_v23  ;;  %v2506_v62 = vadd.f32 %v2416_v3, %v1951_v7  ;;  %v3801_v45 = vpop.f32.mrf.mxu3 }
 0x325   : > { %v9215_v15 = vpop.eup %6365  ;;  %v4583_v16 = vsel %vm4582_vm13, %v6356_v50, %v4579_v32  ;;  %v4591_v38 = vmul.f32 %v6364_v30, %v9163_v0  ;;  %v2815_v59 = vmul.f32 1.442695, %v2701_v47  ;;  %vm3273_vm14 = vcmp.lt.f32.partialorder %v3272_v37, 0.0004427343  ;;  %v1956_v36 = vpop.f32.mrf.mxu1 }
 0x326   : > { %v6368_v27 = vpop.eup %6367  ;;  %v4588_v24 = vsel %vm9168_vm10, %v4587_v19, %v4583_v16  ;;  %v3274_v41 = vsel %vm3273_vm14, %v3271_v11, %v3268_v39  ;;  %v9221_v1 = vadd.f32 %v9180_v61, %v2506_v62  ;;  %v5891_v14 = vmul.f32 -1.442695, %v9208_v26 }
 0x327   : > { %v5143_v10 = vmul.f32 1.002, %v4588_v24  ;;  %v4592_v3 = vsub.f32 1.0, %v4591_v38  ;;  %vm4596_vm15 = vweird.f32 %v6364_v30  ;;  %v9224_v60 = vadd.f32 1.0, %v6368_v27 }
 0x328   : > { %v3466_v9 = vsel %vm2634_vm12, %v9024_v35, %v3274_v41  ;;  %v2702_v8 = vmin.f32 %v9221_v1, 20.0  ;;  %6369 = vpow2.f32 %v5891_v14  ;;  %v3275_v18 = vadd.f32 1.0, %v9175_v20 }
 0x329   : > { %v5952_v57 = vadd.f32 -0.001, %v5143_v10  ;;  %v4593_v50 = vmul.f32 %v6364_v30, %v4592_v3  ;;  %6371 = vrcp.f32 %v9224_v60  ;;  %v3278_v52 = vmul.f32 -0.5, %v9175_v20 }
 0x32a   : > { %vm4595_vm1 = vweird.f32 %v9163_v0  ;;  %v2817_v53 = vmul.f32 1.442695, %v2702_v8  ;;  %6373 = vlog2.f32 %v3275_v18  ;;  %vm9237_vm3 = vcmp.eq.f32.partialorder %v4599_v13, 8.507059e+37 }
 0x32b   : > { %v5272_v35 = vsel %vm5243_vm4, %v9057_v4, %v5952_v57  ;;  %v4594_v17 = vadd.f32 %v6364_v30, %v4593_v50  ;;  %v4602_v34 = vor.u32 1.1754944e-38, %v4601_v54  ;;  %5843 = vmatmul.msk.f32.gmra.mxu3 %vm3495_vm2, %v3466_v9  ;;  %vm4597_vm6 = vmor %vm4595_vm1, %vm4596_vm15  ;;  %6375 = vpow2.f32 %v2815_v59 }
 0x32c   : > { %5337 = vst.msk [vmem:[%s7682_s9 + $0xe0] sm:$0xff] %vm5308_vm5, %v5272_v35  ;;  %v4614_v0 = vand.u32 2147483647, %v9224_v60  ;;  %v4616_v2 = vand.u32 2147483648, %v9224_v60  ;;  %v1954_v4 = vadd.f32 %v1953_v22, %v9189_v6  ;;  %v3279_v19 = vadd.f32 1.0, %v3278_v52  ;;  %v2425_v35 = vpop.f32.mrf.mxu2 }
 0x32d   : > { %v4598_v51 = vsel %vm4597_vm6, %v6364_v30, %v4594_v17  ;;  %v3281_v49 = vand.u32 2147483647, %v9175_v20  ;;  %v9250_v55 = vadd.f32 %v9205_v31, %v3801_v45  ;;  %6377 = vpow2.f32 %v2817_v53  ;;  %v3804_v37 = vpop.f32.mrf.mxu3  ;;  %v1959_v10 = vpop.f32.mrf.mxu1 }
 0x32e   : > { %v6370_v46 = vpop.eup %6369  ;;  %v4603_v56 = vsel %vm9237_vm3, %v4602_v34, %v4598_v51  ;;  %v2507_v58 = vadd.f32 %v2419_v63, %v1954_v4  ;;  %v3284_v29 = vadd.f32 1.0, %v9215_v15  ;;  %v3287_v22 = vmul.f32 -0.5, %v9215_v15 }
 0x32f   : > { %v6372_v47 = vpop.eup %6371  ;;  %v5144_v21 = vmul.f32 1.002, %v4603_v56  ;;  %v9255_v23 = vadd.f32 1.0, %v6370_v46  ;;  %v5892_v6 = vmul.f32 -1.442695, %v9250_v55  ;;  %vm4610_vm7 = vweird.f32 %v9224_v60 }
 0x330   : > { %v6374_v7 = vpop.eup %6373  ;;  %v4606_v48 = vmul.f32 %v6372_v47, %v9224_v60  ;;  %vm2635_vm8 = vcmp.gt.f32.partialorder %v9089_v42, 20.0  ;;  %6379 = vlog2.f32 %v3284_v29  ;;  %vm9262_vm9 = vcmp.eq.f32.partialorder %v4614_v0, 8.507059e+37 }
 0x331   : > { %v5953_v32 = vadd.f32 -0.001, %v5144_v21  ;;  %v4617_v63 = vor.u32 1.1754944e-38, %v4616_v2  ;;  %6381 = vrcp.f32 %v9255_v23  ;;  %v9267_v30 = vpop.eup %6375  ;;  %v3277_v39 = vmul.f32 0.6931472, %v6374_v7 }
 0x332   : > { %v4607_v54 = vsub.f32 1.0, %v4606_v48  ;;  %v3280_v11 = vmul.f32 %v9175_v20, %v3279_v19  ;;  %v9271_v62 = vadd.f32 %v9180_v61, %v2507_v58  ;;  %vm3282_vm10 = vcmp.lt.f32.partialorder %v3281_v49, 0.0004427343  ;;  %v1558_v20 = vpop.f32.mrf.mxu0 }
 0x333   : > { %v5273_v16 = vsel %vm5243_vm4, %v9108_v28, %v5953_v32  ;;  %6383 = vpow2.f32 %v5892_v6  ;;  %v3288_v38 = vadd.f32 1.0, %v3287_v22  ;;  %v9276_v59 = vpop.eup %6377  ;;  %vm4611_vm0 = vweird.f32 %v6372_v47 }
 0x334   : > { %5338 = vst.msk [vmem:[%s7682_s9 + $0xe8] sm:$0xff] %vm5308_vm5, %v5273_v16  ;;  %v4608_v45 = vmul.f32 %v6372_v47, %v4607_v54  ;;  %v3283_v27 = vsel %vm3282_vm10, %v3280_v11, %v3277_v39  ;;  %vm2636_vm11 = vcmp.gt.f32.partialorder %v9129_v25, 20.0  ;;  %v4629_v24 = vand.u32 2147483647, %v9255_v23  ;;  %vm4612_vm13 = vmor %vm4610_vm7, %vm4611_vm0 }
 0x335   : > { %v3467_v41 = vsel %vm2635_vm8, %v9089_v42, %v3283_v27  ;;  %v3290_v28 = vand.u32 2147483647, %v9215_v15  ;;  %v1957_v14 = vadd.f32 %v1956_v36, %v1555_v5  ;;  %vm4625_vm12 = vweird.f32 %v9255_v23 }
 0x336   : > { %v6380_v3 = vpop.eup %6379  ;;  %v4609_v9 = vadd.f32 %v6372_v47, %v4608_v45  ;;  %v4631_v8 = vand.u32 2147483648, %v9255_v23  ;;  %5844 = vmatmul.msk.f32.gmra.mxu3 %vm3495_vm2, %v3467_v41  ;;  %v2703_v18 = vmin.f32 %v9271_v62, 20.0  ;;  %v9291_v57 = vadd.f32 %v9205_v31, %v3804_v37 }
 0x337   : > { %v6382_v50 = vpop.eup %6381  ;;  %v3286_v42 = vmul.f32 0.6931472, %v6380_v3  ;;  %v3289_v52 = vmul.f32 %v9215_v15, %v3288_v38  ;;  %v2508_v53 = vadd.f32 %v2422_v44, %v1957_v14  ;;  %v3293_v5 = vadd.f32 1.0, %v9267_v30  ;;  %v3807_v15 = vpop.f32.mrf.mxu3 }
 0x338   : > { %v4613_v17 = vsel %vm4612_vm13, %v6372_v47, %v4609_v9  ;;  %v4621_v33 = vmul.f32 %v6382_v50, %v9255_v23  ;;  %vm3291_vm14 = vcmp.lt.f32.partialorder %v3290_v28, 0.0004427343  ;;  %v5893_v34 = vmul.f32 -1.442695, %v9291_v57 }
 0x339   : > { %v6384_v36 = vpop.eup %6383  ;;  %v4618_v0 = vsel %vm9262_vm9, %v4617_v63, %v4613_v17  ;;  %v3292_v2 = vsel %vm3291_vm14, %v3289_v52, %v3286_v42  ;;  %v9303_v60 = vadd.f32 %v9180_v61, %v2508_v53  ;;  %6385 = vlog2.f32 %v3293_v5 }
 0x33a   : > { %v5145_v4 = vmul.f32 1.002, %v4618_v0  ;;  %v4622_v51 = vsub.f32 1.0, %v4621_v33  ;;  %v2819_v19 = vmul.f32 1.442695, %v2703_v18  ;;  %v9305_v49 = vadd.f32 1.0, %v6384_v36  ;;  %v1561_v32 = vpop.f32.mrf.mxu0 }
 0x33b   : > { %v3468_v44 = vsel %vm2636_vm11, %v9129_v25, %v3292_v2  ;;  %v2704_v46 = vmin.f32 %v9303_v60, 20.0  ;;  %6387 = vpow2.f32 %v5893_v34  ;;  %v3296_v56 = vmul.f32 -0.5, %v9267_v30 }
 0x33c   : > { %v5954_v58 = vadd.f32 -0.001, %v5145_v4  ;;  %v4623_v29 = vmul.f32 %v6382_v50, %v4622_v51  ;;  %vm4626_vm15 = vweird.f32 %v6382_v50  ;;  %6389 = vrcp.f32 %v9305_v49 }
 0x33d   : > { %vm9313_vm1 = vcmp.eq.f32.partialorder %v4629_v24, 8.507059e+37  ;;  %v2821_v21 = vmul.f32 1.442695, %v2704_v46  ;;  %v3297_v6 = vadd.f32 1.0, %v3296_v56  ;;  %v3299_v22 = vand.u32 2147483647, %v9267_v30  ;;  %vm4627_vm3 = vmor %vm4625_vm12, %vm4626_vm15 }
 0x33e   : > { %v5274_v25 = vsel %vm5243_vm4, %v9157_v43, %v5954_v58  ;;  %v4624_v37 = vadd.f32 %v6382_v50, %v4623_v29  ;;  %v4632_v7 = vor.u32 1.1754944e-38, %v4631_v8  ;;  %5845 = vmatmul.msk.f32.gmra.mxu3 %vm3495_vm2, %v3468_v44  ;;  %v1960_v48 = vadd.f32 %v1959_v10, %v1558_v20  ;;  %v1962_v43 = vpop.f32.mrf.mxu1  ;;  %v2428_v20 = vpop.f32.mrf.mxu2 }
 0x33f   : > { %v6386_v13 = vpop.eup %6385  ;;  %5339 = vst.msk [vmem:[%s7682_s9 + $0xf0] sm:$0xff] %vm5308_vm5, %v5274_v25  ;;  %6391 = vpow2.f32 %v2819_v19  ;;  %v4644_v63 = vand.u32 2147483647, %v9305_v49  ;;  %vm2637_vm6 = vcmp.gt.f32.partialorder %v9183_v12, 20.0  ;;  %v3298_v54 = vmul.f32 %v9267_v30, %v3297_v6 }
 0x340   : > { %v4628_v39 = vsel %vm4627_vm3, %v6382_v50, %v4624_v37  ;;  %v3295_v11 = vmul.f32 0.6931472, %v6386_v13  ;;  %v2509_v16 = vadd.f32 %v2425_v35, %v1960_v48  ;;  %v9330_v38 = vadd.f32 %v9205_v31, %v3807_v15 }
 0x341   : > { %v6388_v45 = vpop.eup %6387  ;;  %v4633_v27 = vsel %vm9313_vm1, %v4632_v7, %v4628_v39  ;;  %v4646_v23 = vand.u32 2147483648, %v9305_v49  ;;  %6393 = vpow2.f32 %v2821_v21  ;;  %vm3300_vm7 = vcmp.lt.f32.partialorder %v3299_v22, 0.0004427343 }
 0x342   : > { %v6390_v24 = vpop.eup %6389  ;;  %v5146_v41 = vmul.f32 1.002, %v4633_v27  ;;  %v9335_v28 = vadd.f32 1.0, %v6388_v45  ;;  %v3301_v30 = vsel %vm3300_vm7, %v3298_v54, %v3295_v11  ;;  %v3302_v14 = vadd.f32 1.0, %v9276_v59  ;;  %v3810_v18 = vpop.f32.mrf.mxu3 }
 0x343   : > { %v4636_v10 = vmul.f32 %v6390_v24, %v9305_v49  ;;  %v3469_v3 = vsel %vm2637_vm6, %v9183_v12, %v3301_v30  ;;  %v9343_v9 = vadd.f32 %v9180_v61, %v2509_v16  ;;  %v5894_v8 = vmul.f32 -1.442695, %v9330_v38  ;;  %v1564_v15 = vpop.f32.mrf.mxu0 }
 0x344   : > { %v5955_v50 = vadd.f32 -0.001, %v5146_v41  ;;  %6395 = vrcp.f32 %v9335_v28  ;;  %v3305_v42 = vmul.f32 -0.5, %v9276_v59  ;;  %vm4640_vm8 = vweird.f32 %v9305_v49 }
 0x345   : > { %v9348_v52 = vpop.eup %6391  ;;  %v4637_v53 = vsub.f32 1.0, %v4636_v10  ;;  %6397 = vpow2.f32 %v5894_v8  ;;  %vm9354_vm9 = vcmp.eq.f32.partialorder %v4644_v63, 8.507059e+37  ;;  %v4647_v35 = vor.u32 1.1754944e-38, %v4646_v23 }
 0x346   : > { %v5275_v12 = vsel %vm5243_vm4, %v9208_v26, %v5955_v50  ;;  %5846 = vmatmul.msk.f32.gmra.mxu3 %vm3495_vm2, %v3469_v3  ;;  %6399 = vlog2.f32 %v3302_v14  ;;  %vm4641_vm10 = vweird.f32 %v6390_v24  ;;  %v4659_v34 = vand.u32 2147483647, %v9335_v28  ;;  %v1965_v44 = vpop.f32.mrf.mxu1  ;;  %v2431_v7 = vpop.f32.mrf.mxu2 }
 0x347   : > { %v9359_v17 = vpop.eup %6393  ;;  %5340 = vst.msk [vmem:[%s7682_s9 + $0xf8] sm:$0xff] %vm5308_vm5, %v5275_v12  ;;  %v4638_v33 = vmul.f32 %v6390_v24, %v4637_v53  ;;  %v2705_v36 = vmin.f32 %v9343_v9, 20.0  ;;  %vm2638_vm0 = vcmp.gt.f32.partialorder %v9221_v1, 20.0  ;;  %v3306_v26 = vadd.f32 1.0, %v3305_v42  ;;  %vm4642_vm12 = vmor %vm4640_vm8, %vm4641_vm10 }
 0x348   : > { %v1963_v0 = vadd.f32 %v1962_v43, %v1561_v32  ;;  %v9367_v2 = vadd.f32 %v9205_v31, %v3810_v18  ;;  %vm4655_vm11 = vweird.f32 %v9335_v28  ;;  %v4661_v51 = vand.u32 2147483648, %v9335_v28 }
 0x349   : > { %v4639_v4 = vadd.f32 %v6390_v24, %v4638_v33  ;;  %v3311_v19 = vadd.f32 1.0, %v9348_v52  ;;  %v3308_v56 = vand.u32 2147483647, %v9276_v59  ;;  %v3314_v47 = vmul.f32 -0.5, %v9348_v52 }
 0x34a   : > { %v6396_v46 = vpop.eup %6395  ;;  %v2510_v58 = vadd.f32 %v2428_v20, %v1963_v0  ;;  %v5895_v29 = vmul.f32 -1.442695, %v9367_v2  ;;  %vm9378_vm13 = vcmp.eq.f32.partialorder %v4659_v34, 8.507059e+37  ;;  %v2823_v37 = vmul.f32 1.442695, %v2705_v36  ;;  %v3813_v49 = vpop.f32.mrf.mxu3 }
 0x34b   : > { %v6398_v21 = vpop.eup %6397  ;;  %v4643_v6 = vsel %vm4642_vm12, %v6390_v24, %v4639_v4  ;;  %v4651_v22 = vmul.f32 %v6396_v46, %v9335_v28  ;;  %6401 = vlog2.f32 %v3311_v19  ;;  %v3307_v63 = vmul.f32 %v9276_v59, %v3306_v26 }
 0x34c   : > { %v6400_v48 = vpop.eup %6399  ;;  %v4648_v32 = vsel %vm9354_vm9, %v4647_v35, %v4643_v6  ;;  %v9384_v13 = vadd.f32 1.0, %v6398_v21  ;;  %6403 = vpow2.f32 %v5895_v29  ;;  %v9388_v11 = vadd.f32 %v9180_v61, %v2510_v58 }
 0x34d   : > { %v5147_v54 = vmul.f32 1.002, %v4648_v32  ;;  %v4652_v43 = vsub.f32 1.0, %v4651_v22  ;;  %v3304_v39 = vmul.f32 0.6931472, %v6400_v48  ;;  %v3315_v16 = vadd.f32 1.0, %v3314_v47 }
 0x34e   : > { %6405 = vrcp.f32 %v9384_v13  ;;  %vm3309_vm14 = vcmp.lt.f32.partialorder %v3308_v56, 0.0004427343  ;;  %v3317_v45 = vand.u32 2147483647, %v9348_v52  ;;  %vm4656_vm15 = vweird.f32 %v6396_v46  ;;  %v1968_v34 = vpop.f32.mrf.mxu1  ;;  %v2434_v19 = vpop.f32.mrf.mxu2 }
 0x34f   : > { %v5956_v27 = vadd.f32 -0.001, %v5147_v54  ;;  %v4653_v23 = vmul.f32 %v6396_v46, %v4652_v43  ;;  %v3310_v20 = vsel %vm3309_vm14, %v3307_v63, %v3304_v39  ;;  %v4662_v24 = vor.u32 1.1754944e-38, %v4661_v51  ;;  %vm4657_vm1 = vmor %vm4655_vm11, %vm4656_vm15 }
 0x350   : > { %6407 = vpow2.f32 %v2823_v37  ;;  %v4674_v59 = vand.u32 2147483647, %v9384_v13  ;;  %v3470_v41 = vsel %vm2638_vm0, %v9221_v1, %v3310_v20  ;;  %v4676_v3 = vand.u32 2147483648, %v9384_v13 }
 0x351   : > { %v6402_v30 = vpop.eup %6401  ;;  %v5276_v14 = vsel %vm5243_vm4, %v9250_v55, %v5956_v27  ;;  %v4654_v10 = vadd.f32 %v6396_v46, %v4653_v23  ;;  %5847 = vmatmul.msk.f32.gmra.mxu3 %vm3495_vm2, %v3470_v41  ;;  %v2706_v8 = vmin.f32 %v9388_v11, 20.0  ;;  %v3316_v1 = vmul.f32 %v9348_v52, %v3315_v16  ;;  %v1567_v55 = vpop.f32.mrf.mxu0 }
 0x352   : > { %v6404_v18 = vpop.eup %6403  ;;  %5341 = vst.msk [vmem:[%s7682_s9 + $0x100] sm:$0xff] %vm5308_vm5, %v5276_v14  ;;  %v3313_v50 = vmul.f32 0.6931472, %v6402_v30  ;;  %v1966_v42 = vadd.f32 %v1965_v44, %v1564_v15  ;;  %v9408_v53 = vadd.f32 %v9205_v31, %v3813_v49  ;;  %vm9412_vm3 = vcmp.lt.f32.partialorder %v3317_v45, 0.0004427343  ;;  %v3816_v28 = vpop.f32.mrf.mxu3 }
 0x353   : > { %v4658_v12 = vsel %vm4657_vm1, %v6396_v46, %v4654_v10  ;;  %v9410_v5 = vadd.f32 1.0, %v6404_v18  ;;  %v3320_v33 = vadd.f32 1.0, %v9359_v17  ;;  %vm2639_vm6 = vcmp.gt.f32.partialorder %v9271_v62, 20.0 }
 0x354   : > { %v6406_v36 = vpop.eup %6405  ;;  %v4663_v52 = vsel %vm9378_vm13, %v4662_v24, %v4658_v12  ;;  %v3319_v26 = vsel %vm9412_vm3, %v3316_v1, %v3313_v50  ;;  %v2511_v0 = vadd.f32 %v2431_v7, %v1966_v42  ;;  %v5896_v15 = vmul.f32 -1.442695, %v9408_v53 }
 0x355   : > { %v5148_v4 = vmul.f32 1.002, %v4663_v52  ;;  %v4666_v51 = vmul.f32 %v6406_v36, %v9384_v13  ;;  %6409 = vrcp.f32 %v9410_v5  ;;  %vm4670_vm7 = vweird.f32 %v9384_v13 }
 0x356   : > { %v9425_v44 = vpop.eup %6407  ;;  %v2825_v46 = vmul.f32 1.442695, %v2706_v8  ;;  %v3471_v56 = vsel %vm2639_vm6, %v9271_v62, %v3319_v26  ;;  %v9430_v47 = vadd.f32 %v9180_v61, %v2511_v0  ;;  %6411 = vpow2.f32 %v5896_v15  ;;  %v1971_v30 = vpop.f32.mrf.mxu1 }
 0x357   : > { %v5957_v58 = vadd.f32 -0.001, %v5148_v4  ;;  %v4667_v29 = vsub.f32 1.0, %v4666_v51  ;;  %vm9432_vm8 = vcmp.eq.f32.partialorder %v4674_v59, 8.507059e+37  ;;  %v4677_v6 = vor.u32 1.1754944e-38, %v4676_v3  ;;  %v2437_v42 = vpop.f32.mrf.mxu2 }
 0x358   : > { %6413 = vlog2.f32 %v3320_v33  ;;  %v3323_v22 = vmul.f32 -0.5, %v9359_v17  ;;  %vm4671_vm9 = vweird.f32 %v6406_v36  ;;  %v2707_v62 = vmin.f32 %v9430_v47, 20.0 }
 0x359   : > { %v5277_v25 = vsel %vm5243_vm4, %v9291_v57, %v5957_v58  ;;  %v4668_v37 = vmul.f32 %v6406_v36, %v4667_v29  ;;  %5848 = vmatmul.msk.f32.gmra.mxu3 %vm3495_vm2, %v3471_v56  ;;  %vm2640_vm10 = vcmp.gt.f32.partialorder %v9303_v60, 20.0  ;;  %6415 = vpow2.f32 %v2825_v46  ;;  %vm4672_vm11 = vmor %vm4670_vm7, %vm4671_vm9  ;;  %v1570_v27 = vpop.f32.mrf.mxu0 }
 0x35a   : > { %5342 = vst.msk [vmem:[%s7682_s9 + $0x108] sm:$0xff] %vm5308_vm5, %v5277_v25  ;;  %v3324_v7 = vadd.f32 1.0, %v3323_v22  ;;  %v1969_v49 = vadd.f32 %v1968_v34, %v1567_v55  ;;  %v9446_v48 = vadd.f32 %v9205_v31, %v3816_v28  ;;  %vm4685_vm0 = vweird.f32 %v9410_v5 }
 0x35b   : > { %v6410_v32 = vpop.eup %6409  ;;  %v4669_v63 = vadd.f32 %v6406_v36, %v4668_v37  ;;  %v4689_v57 = vand.u32 2147483647, %v9410_v5  ;;  %v4691_v54 = vand.u32 2147483648, %v9410_v5  ;;  %v2827_v39 = vmul.f32 1.442695, %v2707_v62 }
 0x35c   : > { %v4681_v43 = vmul.f32 %v6410_v32, %v9410_v5  ;;  %v3326_v16 = vand.u32 2147483647, %v9359_v17  ;;  %v2512_v45 = vadd.f32 %v2434_v19, %v1969_v49  ;;  %v6412_v23 = vpop.eup %6411  ;;  %v3325_v24 = vmul.f32 %v9359_v17, %v3324_v7 }
 0x35d   : > { %v4673_v20 = vsel %vm4672_vm11, %v6406_v36, %v4669_v63  ;;  %v5897_v59 = vmul.f32 -1.442695, %v9446_v48  ;;  %v3329_v41 = vadd.f32 1.0, %v9425_v44  ;;  %v3819_v14 = vpop.f32.mrf.mxu3  ;;  %v9460_v8 = vadd.f32 1.0, %v6412_v23 }
 0x35e   : > { %v6414_v10 = vpop.eup %6413  ;;  %v4678_v13 = vsel %vm9432_vm8, %v4677_v6, %v4673_v20  ;;  %v4682_v3 = vsub.f32 1.0, %v4681_v43  ;;  %v9463_v18 = vadd.f32 %v9180_v61, %v2512_v45  ;;  %v3332_v17 = vmul.f32 -0.5, %v9425_v44  ;;  %v1974_v63 = vpop.f32.mrf.mxu1 }
 0x35f   : > { %v5149_v50 = vmul.f32 1.002, %v4678_v13  ;;  %v3322_v1 = vmul.f32 0.6931472, %v6414_v10  ;;  %6417 = vpow2.f32 %v5897_v59  ;;  %v9466_v55 = vpop.eup %6415  ;;  %vm4686_vm12 = vweird.f32 %v6410_v32  ;;  %v2440_v20 = vpop.f32.mrf.mxu2 }
 0x360   : > { %v4683_v12 = vmul.f32 %v6410_v32, %v4682_v3  ;;  %6419 = vrcp.f32 %v9460_v8  ;;  %vm3327_vm13 = vcmp.lt.f32.partialorder %v3326_v16, 0.0004427343  ;;  %vm9469_vm14 = vcmp.eq.f32.partialorder %v4689_v57, 8.507059e+37  ;;  %vm4687_vm15 = vmor %vm4685_vm0, %vm4686_vm12 }
 0x361   : > { %v5958_v35 = vadd.f32 -0.001, %v5149_v50  ;;  %v3328_v34 = vsel %vm3327_vm13, %v3325_v24, %v3322_v1  ;;  %v2708_v28 = vmin.f32 %v9463_v18, 20.0  ;;  %v4692_v52 = vor.u32 1.1754944e-38, %v4691_v54 }
 0x362   : > { %v4684_v36 = vadd.f32 %v6410_v32, %v4683_v12  ;;  %v3472_v26 = vsel %vm2640_vm10, %v9303_v60, %v3328_v34  ;;  %6421 = vlog2.f32 %v3329_v41  ;;  %v4704_v15 = vand.u32 2147483647, %v9460_v8 }
 0x363   : > { %v5278_v0 = vsel %vm5243_vm4, %v9330_v38, %v5958_v35  ;;  %6423 = vpow2.f32 %v2827_v39  ;;  %5849 = vmatmul.msk.f32.gmra.mxu3 %vm3495_vm2, %v3472_v26  ;;  %vm2641_vm1 = vcmp.gt.f32.partialorder %v9343_v9, 20.0  ;;  %v3333_v4 = vadd.f32 1.0, %v3332_v17 }
 0x364   : > { %5343 = vst.msk [vmem:[%s7682_s9 + $0x110] sm:$0xff] %vm5308_vm5, %v5278_v0  ;;  %v4688_v51 = vsel %vm4687_vm15, %v6410_v32, %v4684_v36  ;;  %v4706_v60 = vand.u32 2147483648, %v9460_v8  ;;  %v1972_v19 = vadd.f32 %v1971_v30, %v1570_v27  ;;  %v9489_v46 = vadd.f32 %v9205_v31, %v3819_v14  ;;  %v1573_v32 = vpop.f32.mrf.mxu0 }
 0x365   : > { %v6418_v38 = vpop.eup %6417  ;;  %v4693_v5 = vsel %vm9469_vm14, %v4692_v52, %v4688_v51  ;;  %vm4700_vm3 = vweird.f32 %v9460_v8  ;;  %v2829_v56 = vmul.f32 1.442695, %v2708_v28  ;;  %v3338_v58 = vadd.f32 1.0, %v9466_v55  ;;  %v3822_v29 = vpop.f32.mrf.mxu3 }
 0x366   : > { %v6420_v21 = vpop.eup %6419  ;;  %v5150_v6 = vmul.f32 1.002, %v4693_v5  ;;  %v9495_v22 = vadd.f32 1.0, %v6418_v38  ;;  %v3335_v25 = vand.u32 2147483647, %v9425_v44  ;;  %v2513_v37 = vadd.f32 %v2437_v42, %v1972_v19  ;;  %v1977_v5 = vpop.f32.mrf.mxu1 }
 0x367   : > { %v4696_v62 = vmul.f32 %v6420_v21, %v9460_v8  ;;  %vm9499_vm6 = vcmp.eq.f32.partialorder %v4704_v15, 8.507059e+37  ;;  %v5898_v49 = vmul.f32 -1.442695, %v9489_v46  ;;  %6425 = vlog2.f32 %v3338_v58 }
 0x368   : > { %v6422_v57 = vpop.eup %6421  ;;  %v5959_v54 = vadd.f32 -0.001, %v5150_v6  ;;  %v4707_v43 = vor.u32 1.1754944e-38, %v4706_v60  ;;  %6427 = vrcp.f32 %v9495_v22  ;;  %v3334_v39 = vmul.f32 %v9425_v44, %v3333_v4 }
 0x369   : > { %v9506_v16 = vpop.eup %6423  ;;  %v4697_v45 = vsub.f32 1.0, %v4696_v62  ;;  %6429 = vpow2.f32 %v2829_v56  ;;  %v3331_v27 = vmul.f32 0.6931472, %v6422_v57  ;;  %v9509_v23 = vadd.f32 %v9180_v61, %v2513_v37  ;;  %v2443_v37 = vpop.f32.mrf.mxu2 }
 0x36a   : > { %v5279_v24 = vsel %vm5243_vm4, %v9367_v2, %v5959_v54  ;;  %vm3336_vm7 = vcmp.lt.f32.partialorder %v3335_v25, 0.0004427343  ;;  %6431 = vpow2.f32 %v5898_v49  ;;  %v3341_v59 = vmul.f32 -0.5, %v9466_v55 }
 0x36b   : > { %5344 = vst.msk [vmem:[%s7682_s9 + $0x118] sm:$0xff] %vm5308_vm5, %v5279_v24  ;;  %v4698_v44 = vmul.f32 %v6420_v21, %v4697_v45  ;;  %vm4701_vm8 = vweird.f32 %v6420_v21  ;;  %v3337_v41 = vsel %vm3336_vm7, %v3334_v39, %v3331_v27  ;;  %v2709_v30 = vmin.f32 %v9509_v23, 20.0 }
 0x36c   : > { %v3473_v14 = vsel %vm2641_vm1, %v9343_v9, %v3337_v41  ;;  %v3342_v10 = vadd.f32 1.0, %v3341_v59  ;;  %v3344_v13 = vand.u32 2147483647, %v9466_v55  ;;  %v1975_v3 = vadd.f32 %v1974_v63, %v1573_v32  ;;  %vm4702_vm10 = vmor %vm4700_vm3, %vm4701_vm8  ;;  %v1576_v38 = vpop.f32.mrf.mxu0 }
 0x36d   : > { %v6426_v2 = vpop.eup %6425  ;;  %v4699_v50 = vadd.f32 %v6420_v21, %v4698_v44  ;;  %v4719_v1 = vand.u32 2147483647, %v9495_v22  ;;  %5850 = vmatmul.msk.f32.gmra.mxu3 %vm3495_vm2, %v3473_v14  ;;  %vm2642_vm9 = vcmp.gt.f32.partialorder %v9388_v11, 20.0  ;;  %v9526_v17 = vadd.f32 %v9205_v31, %v3822_v29  ;;  %v3825_v34 = vpop.f32.mrf.mxu3 }
 0x36e   : > { %v6428_v42 = vpop.eup %6427  ;;  %v4721_v9 = vand.u32 2147483648, %v9495_v22  ;;  %v3340_v12 = vmul.f32 0.6931472, %v6426_v2  ;;  %v3343_v35 = vmul.f32 %v9466_v55, %v3342_v10  ;;  %v2514_v33 = vadd.f32 %v2440_v20, %v1975_v3 }
 0x36f   : > { %v9532_v28 = vpop.eup %6429  ;;  %v4703_v36 = vsel %vm4702_vm10, %v6420_v21, %v4699_v50  ;;  %v4711_v52 = vmul.f32 %v6428_v42, %v9495_v22  ;;  %v2831_v26 = vmul.f32 1.442695, %v2709_v30  ;;  %vm3345_vm0 = vcmp.lt.f32.partialorder %v3344_v13, 0.0004427343 }
 0x370   : > { %v6432_v0 = vpop.eup %6431  ;;  %v4708_v15 = vsel %vm9499_vm6, %v4707_v43, %v4703_v36  ;;  %v3346_v8 = vsel %vm3345_vm0, %v3343_v35, %v3340_v12  ;;  %v9538_v4 = vadd.f32 %v9180_v61, %v2514_v33  ;;  %v5899_v51 = vmul.f32 -1.442695, %v9526_v17 }
 0x371   : > { %v5151_v55 = vmul.f32 1.002, %v4708_v15  ;;  %v4712_v60 = vsub.f32 1.0, %v4711_v52  ;;  %vm4716_vm11 = vweird.f32 %v6428_v42  ;;  %v9541_v19 = vadd.f32 1.0, %v6432_v0 }
 0x372   : > { %v3474_v56 = vsel %vm2642_vm9, %v9388_v11, %v3346_v8  ;;  %v2710_v58 = vmin.f32 %v9538_v4, 20.0  ;;  %6433 = vpow2.f32 %v5899_v51  ;;  %v3347_v29 = vadd.f32 1.0, %v9506_v16 }
 0x373   : > { %v5960_v21 = vadd.f32 -0.001, %v5151_v55  ;;  %v4713_v6 = vmul.f32 %v6428_v42, %v4712_v60  ;;  %6435 = vrcp.f32 %v9541_v19  ;;  %v3350_v25 = vmul.f32 -0.5, %v9506_v16 }
 0x374   : > { %vm4715_vm12 = vweird.f32 %v9495_v22  ;;  %v2833_v62 = vmul.f32 1.442695, %v2710_v58  ;;  %6437 = vlog2.f32 %v3347_v29  ;;  %vm4720_vm13 = vcmp.eq.f32.partialorder %v4719_v1, 8.507059e+37  ;;  %v1579_v1 = vpop.f32.mrf.mxu0 }
 0x375   : > { %v5280_v11 = vsel %vm5243_vm4, %v9408_v53, %v5960_v21  ;;  %v4714_v7 = vadd.f32 %v6428_v42, %v4713_v6  ;;  %v4722_v49 = vor.u32 1.1754944e-38, %v4721_v9  ;;  %5851 = vmatmul.msk.f32.gmra.mxu3 %vm3495_vm2, %v3474_v56  ;;  %vm4717_vm14 = vmor %vm4715_vm12, %vm4716_vm11  ;;  %6439 = vpow2.f32 %v2831_v26  ;;  %v3828_v24 = vpop.f32.mrf.mxu3  ;;  %v2446_v26 = vpop.f32.mrf.mxu2 }
 0x376   : > { %5345 = vst.msk [vmem:[%s7682_s9 + $0x120] sm:$0xff] %vm5308_vm5, %v5280_v11  ;;  %v4734_v32 = vand.u32 2147483647, %v9541_v19  ;;  %v4736_v22 = vand.u32 2147483648, %v9541_v19  ;;  %v1978_v63 = vadd.f32 %v1977_v5, %v1576_v38  ;;  %v3351_v54 = vadd.f32 1.0, %v3350_v25 }
 0x377   : > { %v4718_v57 = vsel %vm4717_vm14, %v6428_v42, %v4714_v7  ;;  %v3353_v43 = vand.u32 2147483647, %v9506_v16  ;;  %v9562_v53 = vadd.f32 %v9205_v31, %v3825_v34  ;;  %6441 = vpow2.f32 %v2833_v62  ;;  %v1980_v42 = vpop.f32.mrf.mxu1 }
 0x378   : > { %v6434_v39 = vpop.eup %6433  ;;  %v4723_v45 = vsel %vm4720_vm13, %v4722_v49, %v4718_v57  ;;  %v2515_v27 = vadd.f32 %v2443_v37, %v1978_v63  ;;  %v3356_v20 = vadd.f32 1.0, %v9532_v28  ;;  %v3359_v14 = vmul.f32 -0.5, %v9532_v28 }
 0x379   : > { %v6436_v59 = vpop.eup %6435  ;;  %v5152_v44 = vmul.f32 1.002, %v4723_v45  ;;  %v9565_v41 = vadd.f32 1.0, %v6434_v39  ;;  %v5900_v30 = vmul.f32 -1.442695, %v9562_v53  ;;  %vm4730_vm15 = vweird.f32 %v9541_v19 }
 0x37a   : > { %v6438_v10 = vpop.eup %6437  ;;  %v4726_v13 = vmul.f32 %v6436_v59, %v9541_v19  ;;  %vm2643_vm1 = vcmp.gt.f32.partialorder %v9430_v47, 20.0  ;;  %6443 = vlog2.f32 %v3356_v20  ;;  %vm9572_vm3 = vcmp.eq.f32.partialorder %v4734_v32, 8.507059e+37  ;;  %v9615_v19 = vld [vmem:[%s10023_s2] ss:$0 sm:$0xff] }
 0x37b   : > { %v5961_v3 = vadd.f32 -0.001, %v5152_v44  ;;  %v4737_v50 = vor.u32 1.1754944e-38, %v4736_v22  ;;  %6445 = vrcp.f32 %v9565_v41  ;;  %v9577_v9 = vpop.eup %6439  ;;  %v3349_v35 = vmul.f32 0.6931472, %v6438_v10 }
 0x37c   : > { %v4727_v12 = vsub.f32 1.0, %v4726_v13  ;;  %v3352_v33 = vmul.f32 %v9506_v16, %v3351_v54  ;;  %v9581_v34 = vadd.f32 %v9180_v61, %v2515_v27  ;;  %vm3354_vm6 = vcmp.lt.f32.partialorder %v3353_v43, 0.0004427343  ;;  %v1582_v45 = vpop.f32.mrf.mxu0 }
 0x37d   : > { %v5281_v36 = vsel %vm5243_vm4, %v9446_v48, %v5961_v3  ;;  %6447 = vpow2.f32 %v5900_v30  ;;  %v3360_v52 = vadd.f32 1.0, %v3359_v14  ;;  %v9586_v0 = vpop.eup %6441  ;;  %vm4731_vm7 = vweird.f32 %v6436_v59  ;;  %v3831_v11 = vpop.f32.mrf.mxu3 }
 0x37e   : > { %5346 = vst.msk [vmem:[%s7682_s9 + $0x128] sm:$0xff] %vm5308_vm5, %v5281_v36  ;;  %v4728_v15 = vmul.f32 %v6436_v59, %v4727_v12  ;;  %v3355_v8 = vsel %vm3354_vm6, %v3352_v33, %v3349_v35  ;;  %vm2644_vm8 = vcmp.gt.f32.partialorder %v9463_v18, 20.0  ;;  %v4749_v61 = vand.u32 2147483647, %v9565_v41  ;;  %vm4732_vm10 = vmor %vm4730_vm15, %vm4731_vm7  ;;  %v2449_v10 = vpop.f32.mrf.mxu2  ;;  %v9648_v33 = vld [vmem:[%s10025_s4] ss:$0 sm:$0xff] }
 0x37f   : > { %v3475_v16 = vsel %vm2643_vm1, %v9430_v47, %v3355_v8  ;;  %v3362_v48 = vand.u32 2147483647, %v9532_v28  ;;  %v1981_v51 = vadd.f32 %v1980_v42, %v1579_v1  ;;  %vm4745_vm9 = vweird.f32 %v9565_v41  ;;  %v1983_v27 = vpop.f32.mrf.mxu1 }
 0x380   : > { %v6444_v55 = vpop.eup %6443  ;;  %v4729_v60 = vadd.f32 %v6436_v59, %v4728_v15  ;;  %v4751_v38 = vand.u32 2147483648, %v9565_v41  ;;  %5852 = vmatmul.msk.f32.gmra.mxu3 %vm3495_vm2, %v3475_v16  ;;  %v2711_v5 = vmin.f32 %v9581_v34, 20.0  ;;  %v9601_v56 = vadd.f32 %v9205_v31, %v3828_v24 }
 0x381   : > { %v6446_v58 = vpop.eup %6445  ;;  %v3358_v47 = vmul.f32 0.6931472, %v6444_v55  ;;  %v3361_v29 = vmul.f32 %v9532_v28, %v3360_v52  ;;  %v2516_v21 = vadd.f32 %v2446_v26, %v1981_v51  ;;  %v3365_v6 = vadd.f32 1.0, %v9577_v9 }
 0x382   : > { %v4733_v25 = vsel %vm4732_vm10, %v6436_v59, %v4729_v60  ;;  %v4741_v37 = vmul.f32 %v6446_v58, %v9565_v41  ;;  %vm3363_vm0 = vcmp.lt.f32.partialorder %v3362_v48, 0.0004427343  ;;  %v5901_v62 = vmul.f32 -1.442695, %v9601_v56 }
 0x383   : > { %v6448_v31 = vpop.eup %6447  ;;  %v4738_v7 = vsel %vm9572_vm3, %v4737_v50, %v4733_v25  ;;  %v3364_v49 = vsel %vm3363_vm0, %v3361_v29, %v3358_v47  ;;  %v9618_v28 = vadd.f32 %v9615_v19, %v2516_v21  ;;  %6449 = vlog2.f32 %v3365_v6 }
 0x384   : > { %v5153_v32 = vmul.f32 1.002, %v4738_v7  ;;  %v4742_v22 = vsub.f32 1.0, %v4741_v37  ;;  %v2835_v63 = vmul.f32 1.442695, %v2711_v5  ;;  %v9620_v57 = vadd.f32 1.0, %v6448_v31  ;;  %v1585_v6 = vpop.f32.mrf.mxu0 }
 0x385   : > { %vm9622_vm11 = vcmp.eq.f32.partialorder %v4749_v61, 8.507059e+37  ;;  %v3476_v43 = vsel %vm2644_vm8, %v9463_v18, %v3364_v49  ;;  %6451 = vpow2.f32 %v5901_v62  ;;  %v3368_v39 = vmul.f32 -0.5, %v9577_v9 }
 0x386   : > { %v5962_v20 = vadd.f32 -0.001, %v5153_v32  ;;  %v4743_v24 = vmul.f32 %v6446_v58, %v4742_v22  ;;  %vm4746_vm12 = vweird.f32 %v6446_v58  ;;  %6453 = vrcp.f32 %v9620_v57  ;;  %v2452_v7 = vpop.f32.mrf.mxu2 }
 0x387   : > { %v4752_v59 = vor.u32 1.1754944e-38, %v4751_v38  ;;  %v2712_v44 = vmin.f32 %v9618_v28, 20.0  ;;  %v3369_v30 = vadd.f32 1.0, %v3368_v39  ;;  %v3371_v14 = vand.u32 2147483647, %v9577_v9  ;;  %vm4747_vm13 = vmor %vm4745_vm9, %vm4746_vm12  ;;  %v1986_v25 = vpop.f32.mrf.mxu1 }
 0x388   : > { %v5282_v18 = vsel %vm5243_vm4, %v9489_v46, %v5962_v20  ;;  %v4744_v13 = vadd.f32 %v6446_v58, %v4743_v24  ;;  %6455 = vpow2.f32 %v2835_v63  ;;  %5853 = vmatmul.msk.f32.gmra.mxu3 %vm3495_vm2, %v3476_v43  ;;  %v1984_v3 = vadd.f32 %v1983_v27, %v1582_v45 }
 0x389   : > { %v6450_v2 = vpop.eup %6449  ;;  %5347 = vst.msk [vmem:[%s7682_s9 + $0x130] sm:$0xff] %vm5308_vm5, %v5282_v18  ;;  %v4764_v50 = vand.u32 2147483647, %v9620_v57  ;;  %v4766_v1 = vand.u32 2147483648, %v9620_v57  ;;  %vm2645_vm14 = vcmp.gt.f32.partialorder %v9509_v23, 20.0  ;;  %v3370_v42 = vmul.f32 %v9577_v9, %v3369_v30 }
 0x38a   : > { %v4748_v46 = vsel %vm4747_vm13, %v6446_v58, %v4744_v13  ;;  %v3367_v12 = vmul.f32 0.6931472, %v6450_v2  ;;  %v2517_v35 = vadd.f32 %v2449_v10, %v1984_v3  ;;  %v9651_v36 = vadd.f32 %v9648_v33, %v3831_v11 }
 0x38b   : > { %v6452_v41 = vpop.eup %6451  ;;  %v4753_v52 = vsel %vm9622_vm11, %v4752_v59, %v4748_v46  ;;  %v2837_v26 = vmul.f32 1.442695, %v2712_v44  ;;  %vm3372_vm15 = vcmp.lt.f32.partialorder %v3371_v14, 0.0004427343  ;;  %v3374_v15 = vadd.f32 1.0, %v9586_v0 }
 0x38c   : > { %v6454_v9 = vpop.eup %6453  ;;  %v5154_v8 = vmul.f32 1.002, %v4753_v52  ;;  %v9656_v61 = vadd.f32 1.0, %v6452_v41  ;;  %v3373_v16 = vsel %vm3372_vm15, %v3370_v42, %v3367_v12  ;;  %v9659_v48 = vadd.f32 %v9615_v19, %v2517_v35  ;;  %v3834_v51 = vpop.f32.mrf.mxu3 }
 0x38d   : > { %v4756_v55 = vmul.f32 %v6454_v9, %v9620_v57  ;;  %v3477_v60 = vsel %vm2645_vm14, %v9509_v23, %v3373_v16  ;;  %v5902_v38 = vmul.f32 -1.442695, %v9651_v36  ;;  %v3377_v5 = vmul.f32 -0.5, %v9586_v0 }
 0x38e   : > { %v9667_v58 = vpop.eup %6455  ;;  %v5963_v47 = vadd.f32 -0.001, %v5154_v8  ;;  %6457 = vrcp.f32 %v9656_v61  ;;  %vm4760_vm1 = vweird.f32 %v9620_v57  ;;  %v2713_v21 = vmin.f32 %v9659_v48, 20.0 }
 0x38f   : > { %v4757_v29 = vsub.f32 1.0, %v4756_v55  ;;  %6459 = vpow2.f32 %v5902_v38  ;;  %vm9675_vm3 = vcmp.eq.f32.partialorder %v4764_v50, 8.507059e+37  ;;  %v4767_v62 = vor.u32 1.1754944e-38, %v4766_v1 }
 0x390   : > { %v5283_v23 = vsel %vm5243_vm4, %v9526_v17, %v5963_v47  ;;  %5854 = vmatmul.msk.f32.gmra.mxu3 %vm3495_vm2, %v3477_v60  ;;  %6461 = vlog2.f32 %v3374_v15  ;;  %vm4761_vm6 = vweird.f32 %v6454_v9  ;;  %v3378_v31 = vadd.f32 1.0, %v3377_v5 }
 0x391   : > { %5348 = vst.msk [vmem:[%s7682_s9 + $0x138] sm:$0xff] %vm5308_vm5, %v5283_v23  ;;  %v4758_v11 = vmul.f32 %v6454_v9, %v4757_v29  ;;  %6463 = vpow2.f32 %v2837_v26  ;;  %v4779_v49 = vand.u32 2147483647, %v9656_v61  ;;  %vm2646_vm7 = vcmp.gt.f32.partialorder %v9538_v4, 20.0  ;;  %vm4762_vm9 = vmor %vm4760_vm1, %vm4761_vm6 }
 0x392   : > { %v1987_v17 = vadd.f32 %v1986_v25, %v1585_v6  ;;  %v9685_v32 = vadd.f32 %v9648_v33, %v3834_v51  ;;  %vm4775_vm8 = vweird.f32 %v9656_v61  ;;  %v4781_v63 = vand.u32 2147483648, %v9656_v61 }
 0x393   : > { %v4759_v22 = vadd.f32 %v6454_v9, %v4758_v11  ;;  %v2839_v54 = vmul.f32 1.442695, %v2713_v21  ;;  %v3383_v43 = vadd.f32 1.0, %v9667_v58  ;;  %v3380_v45 = vand.u32 2147483647, %v9586_v0 }
 0x394   : > { %v6458_v39 = vpop.eup %6457  ;;  %v2518_v27 = vadd.f32 %v2452_v7, %v1987_v17  ;;  %v5903_v20 = vmul.f32 -1.442695, %v9685_v32  ;;  %v3386_v24 = vmul.f32 -0.5, %v9667_v58  ;;  %v3837_v59 = vpop.f32.mrf.mxu3  ;;  %v3379_v10 = vmul.f32 %v9586_v0, %v3378_v31 }
 0x395   : > { %v6460_v44 = vpop.eup %6459  ;;  %v4763_v30 = vsel %vm4762_vm9, %v6454_v9, %v4759_v22  ;;  %v4771_v14 = vmul.f32 %v6458_v39, %v9656_v61  ;;  %6465 = vlog2.f32 %v3383_v43  ;;  %vm4776_vm10 = vweird.f32 %v6458_v39 }
 0x396   : > { %v6462_v18 = vpop.eup %6461  ;;  %v4768_v57 = vsel %vm9675_vm3, %v4767_v62, %v4763_v30  ;;  %v9699_v13 = vadd.f32 1.0, %v6460_v44  ;;  %v9702_v3 = vadd.f32 %v9615_v19, %v2518_v27  ;;  %6467 = vpow2.f32 %v5903_v20  ;;  %vm4777_vm13 = vmor %vm4775_vm8, %vm4776_vm10 }
 0x397   : > { %v9704_v2 = vpop.eup %6463  ;;  %v5155_v50 = vmul.f32 1.002, %v4768_v57  ;;  %v4772_v1 = vsub.f32 1.0, %v4771_v14  ;;  %v3376_v42 = vmul.f32 0.6931472, %v6462_v18  ;;  %v3387_v46 = vadd.f32 1.0, %v3386_v24 }
 0x398   : > { %6469 = vrcp.f32 %v9699_v13  ;;  %vm3381_vm0 = vcmp.lt.f32.partialorder %v3380_v45, 0.0004427343  ;;  %v3389_v0 = vand.u32 2147483647, %v9667_v58  ;;  %v2714_v19 = vmin.f32 %v9702_v3, 20.0 }
 0x399   : > { %v5964_v12 = vadd.f32 -0.001, %v5155_v50  ;;  %v4773_v35 = vmul.f32 %v6458_v39, %v4772_v1  ;;  %v3382_v41 = vsel %vm3381_vm0, %v3379_v10, %v3376_v42  ;;  %vm9709_vm11 = vcmp.eq.f32.partialorder %v4779_v49, 8.507059e+37 }
 0x39a   : > { %v4782_v26 = vor.u32 1.1754944e-38, %v4781_v63  ;;  %v3478_v15 = vsel %vm2646_vm7, %v9538_v4, %v3382_v41  ;;  %vm2647_vm12 = vcmp.gt.f32.partialorder %v9581_v34, 20.0  ;;  %6471 = vpow2.f32 %v2839_v54 }
 0x39b   : > { %v6466_v9 = vpop.eup %6465  ;;  %v5284_v8 = vsel %vm5243_vm4, %v9562_v53, %v5964_v12  ;;  %v4774_v16 = vadd.f32 %v6458_v39, %v4773_v35  ;;  %5855 = vmatmul.msk.f32.gmra.mxu3 %vm3495_vm2, %v3478_v15  ;;  %v3388_v51 = vmul.f32 %v9667_v58, %v3387_v46  ;;  %v2841_v4 = vmul.f32 1.442695, %v2714_v19 }
 0x39c   : > { %v6468_v55 = vpop.eup %6467  ;;  %5349 = vst.msk [vmem:[%s7682_s9 + $0x140] sm:$0xff] %vm5308_vm5, %v5284_v8  ;;  %v3385_v60 = vmul.f32 0.6931472, %v6466_v9  ;;  %v9728_v38 = vadd.f32 %v9648_v33, %v3837_v59  ;;  %v3392_v53 = vadd.f32 1.0, %v9704_v2  ;;  %v3840_v5 = vpop.f32.mrf.mxu3  ;;  %vm3390_vm14 = vcmp.lt.f32.partialorder %v3389_v0, 0.0004427343 }
 0x39d   : > { %v4778_v47 = vsel %vm4777_vm13, %v6458_v39, %v4774_v16  ;;  %v9731_v29 = vadd.f32 1.0, %v6468_v55  ;;  %v3395_v58 = vmul.f32 -0.5, %v9704_v2  ;;  %v4794_v62 = vand.u32 2147483647, %v9699_v13 }
 0x39e   : > { %v6470_v21 = vpop.eup %6469  ;;  %v4783_v6 = vsel %vm9709_vm11, %v4782_v26, %v4778_v47  ;;  %v3391_v61 = vsel %vm3390_vm14, %v3388_v51, %v3385_v60  ;;  %v5904_v25 = vmul.f32 -1.442695, %v9728_v38  ;;  %6473 = vlog2.f32 %v3392_v53 }
 0x39f   : > { %v5156_v23 = vmul.f32 1.002, %v4783_v6  ;;  %v4786_v37 = vmul.f32 %v6470_v21, %v9699_v13  ;;  %6475 = vrcp.f32 %v9731_v29  ;;  %v4796_v11 = vand.u32 2147483648, %v9699_v13 }
 0x3a0   : > { %v3479_v31 = vsel %vm2647_vm12, %v9581_v34, %v3391_v61  ;;  %v9744_v7 = vpop.eup %6471  ;;  %6477 = vpow2.f32 %v5904_v25  ;;  %v3396_v22 = vadd.f32 1.0, %v3395_v58  ;;  %vm4790_vm15 = vweird.f32 %v9699_v13 }
 0x3a1   : > { %v5965_v49 = vadd.f32 -0.001, %v5156_v23  ;;  %v4787_v17 = vsub.f32 1.0, %v4786_v37  ;;  %6479 = vpow2.f32 %v2841_v4  ;;  %v3398_v63 = vand.u32 2147483647, %v9704_v2 }
 0x3a2   : > { %v9749_v54 = vadd.f32 %v9648_v33, %v3840_v5  ;;  %vm4791_vm1 = vweird.f32 %v6470_v21  ;;  %vm9754_vm3 = vcmp.eq.f32.partialorder %v4794_v62, 8.507059e+37  ;;  %v4797_v27 = vor.u32 1.1754944e-38, %v4796_v11 }
 0x3a3   : > { %v5285_v43 = vsel %vm5243_vm4, %v9601_v56, %v5965_v49  ;;  %v4788_v34 = vmul.f32 %v6470_v21, %v4787_v17  ;;  %5856 = vmatmul.msk.f32.gmra.mxu3 %vm3495_vm2, %v3479_v31  ;;  %vm2648_vm6 = vcmp.gt.f32.partialorder %v9618_v28, 20.0  ;;  %v3401_v24 = vadd.f32 1.0, %v9744_v7  ;;  %vm4792_vm7 = vmor %vm4790_vm15, %vm4791_vm1 }
 0x3a4   : > { %v6474_v45 = vpop.eup %6473  ;;  %5350 = vst.msk [vmem:[%s7682_s9 + $0x148] sm:$0xff] %vm5308_vm5, %v5285_v43  ;;  %v5905_v20 = vmul.f32 -1.442695, %v9749_v54  ;;  %v4809_v44 = vand.u32 2147483647, %v9731_v29  ;;  %v3397_v14 = vmul.f32 %v9704_v2, %v3396_v22  ;;  %v3404_v18 = vmul.f32 -0.5, %v9744_v7 }
 0x3a5   : > { %v6476_v59 = vpop.eup %6475  ;;  %v4789_v56 = vadd.f32 %v6470_v21, %v4788_v34  ;;  %v3394_v30 = vmul.f32 0.6931472, %v6474_v45  ;;  %vm3399_vm8 = vcmp.lt.f32.partialorder %v3398_v63, 0.0004427343  ;;  %v4811_v42 = vand.u32 2147483648, %v9731_v29 }
 0x3a6   : > { %v4801_v10 = vmul.f32 %v6476_v59, %v9731_v29  ;;  %6481 = vpow2.f32 %v5905_v20  ;;  %v3843_v57 = vpop.f32.mrf.mxu3  ;;  %v6478_v50 = vpop.eup %6477  ;;  %v3407_v19 = vand.u32 2147483647, %v9744_v7  ;;  %vm4806_vm9 = vweird.f32 %v6476_v59 }
 0x3a7   : > { %v4793_v1 = vsel %vm4792_vm7, %v6470_v21, %v4789_v56  ;;  %v3400_v46 = vsel %vm3399_vm8, %v3397_v14, %v3394_v30  ;;  %6483 = vlog2.f32 %v3401_v24  ;;  %v9771_v0 = vpop.eup %6479  ;;  %v9775_v12 = vadd.f32 1.0, %v6478_v50 }
 0x3a8   : > { %v4798_v2 = vsel %vm9754_vm3, %v4797_v27, %v4793_v1  ;;  %v4802_v13 = vsub.f32 1.0, %v4801_v10  ;;  %v3480_v35 = vsel %vm2648_vm6, %v9618_v28, %v3400_v46  ;;  %v9782_v52 = vadd.f32 %v9648_v33, %v3843_v57 }
 0x3a9   : > { %v5157_v41 = vmul.f32 1.002, %v4798_v2  ;;  %6485 = vrcp.f32 %v9775_v12  ;;  %v3405_v15 = vadd.f32 1.0, %v3404_v18  ;;  %v3410_v16 = vadd.f32 1.0, %v9771_v0 }
 0x3aa   : > { %v4803_v26 = vmul.f32 %v6476_v59, %v4802_v13  ;;  %v5906_v8 = vmul.f32 -1.442695, %v9782_v52  ;;  %vm4805_vm10 = vweird.f32 %v9731_v29  ;;  %vm4810_vm0 = vcmp.eq.f32.partialorder %v4809_v44, 8.507059e+37 }
 0x3ab   : > { %v5966_v9 = vadd.f32 -0.001, %v5157_v41  ;;  %5857 = vmatmul.msk.f32.gmra.mxu3 %vm3495_vm2, %v3480_v35  ;;  %v4812_v55 = vor.u32 1.1754944e-38, %v4811_v42  ;;  %vm4807_vm11 = vmor %vm4805_vm10, %vm4806_vm9  ;;  %v3413_v5 = vmul.f32 -0.5, %v9771_v0  ;;  %v3406_v21 = vmul.f32 %v9744_v7, %v3405_v15 }
 0x3ac   : > { %v6482_v28 = vpop.eup %6481  ;;  %v4804_v51 = vadd.f32 %v6476_v59, %v4803_v26  ;;  %6487 = vpow2.f32 %v5906_v8  ;;  %vm3408_vm12 = vcmp.lt.f32.partialorder %v3407_v19, 0.0004427343  ;;  %vm2649_vm13 = vcmp.gt.f32.partialorder %v9659_v48, 20.0 }
 0x3ad   : > { %v6484_v4 = vpop.eup %6483  ;;  %v5286_v60 = vsel %vm5243_vm4, %v9651_v36, %v5966_v9  ;;  %v9792_v53 = vadd.f32 1.0, %v6482_v28  ;;  %6489 = vlog2.f32 %v3410_v16  ;;  %v3414_v62 = vadd.f32 1.0, %v3413_v5 }
 0x3ae   : > { %5351 = vst.msk [vmem:[%s7682_s9 + $0x150] sm:$0xff] %vm5308_vm5, %v5286_v60  ;;  %v4808_v47 = vsel %vm4807_vm11, %v6476_v59, %v4804_v51  ;;  %v3403_v58 = vmul.f32 0.6931472, %v6484_v4  ;;  %v3846_v6 = vpop.f32.mrf.mxu3  ;;  %v3416_v31 = vand.u32 2147483647, %v9771_v0  ;;  %vm4820_vm1 = vweird.f32 %v9775_v12 }
 0x3af   : > { %v4813_v29 = vsel %vm4810_vm0, %v4812_v55, %v4808_v47  ;;  %6491 = vrcp.f32 %v9792_v53  ;;  %v6486_v61 = vpop.eup %6485  ;;  %v9804_v7 = vadd.f32 %v9648_v33, %v3846_v6  ;;  %v4824_v22 = vand.u32 2147483647, %v9775_v12 }
 0x3b0   : > { %v5158_v36 = vmul.f32 1.002, %v4813_v29  ;;  %v3409_v25 = vsel %vm3408_vm12, %v3406_v21, %v3403_v58  ;;  %v4816_v23 = vmul.f32 %v6486_v61, %v9775_v12  ;;  %vm4821_vm14 = vweird.f32 %v6486_v61 }
 0x3b1   : > { %v3481_v37 = vsel %vm2649_vm13, %v9659_v48, %v3409_v25  ;;  %v4826_v48 = vand.u32 2147483648, %v9775_v12  ;;  %v5907_v39 = vmul.f32 -1.442695, %v9804_v7  ;;  %v3415_v24 = vmul.f32 %v9771_v0, %v3414_v62  ;;  %vm4822_vm6 = vmor %vm4820_vm1, %vm4821_vm14 }
 0x3b2   : > { %v5967_v11 = vadd.f32 -0.001, %v5158_v36  ;;  %v6488_v49 = vpop.eup %6487  ;;  %v4817_v17 = vsub.f32 1.0, %v4816_v23  ;;  %vm3417_vm15 = vcmp.lt.f32.partialorder %v3416_v31, 0.0004427343  ;;  %vm2650_vm3 = vcmp.gt.f32.partialorder %v9702_v3, 20.0 }
 0x3b3   : > { %5858 = vmatmul.msk.f32.gmra.mxu3 %vm3495_vm2, %v3481_v37  ;;  %v6490_v63 = vpop.eup %6489  ;;  %v9812_v34 = vadd.f32 1.0, %v6488_v49  ;;  %v4827_v44 = vor.u32 1.1754944e-38, %v4826_v48  ;;  %vm4825_vm7 = vcmp.eq.f32.partialorder %v4824_v22, 8.507059e+37  ;;  %v4839_v18 = vand.u32 2147483647, %v9792_v53 }
 0x3b4   : > { %v5287_v43 = vsel %vm5243_vm4, %v9685_v32, %v5967_v11  ;;  %v4818_v27 = vmul.f32 %v6486_v61, %v4817_v17  ;;  %v3412_v20 = vmul.f32 0.6931472, %v6490_v63  ;;  %v4841_v57 = vand.u32 2147483648, %v9792_v53 }
 0x3b5   : > { %v6492_v45 = vpop.eup %6491  ;;  %5352 = vst.msk [vmem:[%s7682_s9 + $0x158] sm:$0xff] %vm5308_vm5, %v5287_v43  ;;  %6493 = vrcp.f32 %v9812_v34  ;;  %vm4835_vm9 = vweird.f32 %v9792_v53  ;;  %vm4840_vm0 = vcmp.eq.f32.partialorder %v4839_v18, 8.507059e+37  ;;  %v4856_v51 = vand.u32 2147483648, %v9812_v34 }
 0x3b6   : > { %v4831_v59 = vmul.f32 %v6492_v45, %v9792_v53  ;;  %v4819_v32 = vadd.f32 %v6486_v61, %v4818_v27  ;;  %v3418_v56 = vsel %vm3417_vm15, %v3415_v24, %v3412_v20  ;;  %6495 = vpow2.f32 %v5907_v39 }
 0x3b7   : > { %v3482_v14 = vsel %vm2650_vm3, %v9702_v3, %v3418_v56  ;;  %vm4836_vm8 = vweird.f32 %v6492_v45  ;;  %v4842_v35 = vor.u32 1.1754944e-38, %v4841_v57  ;;  %v4854_v4 = vand.u32 2147483647, %v9812_v34 }
 0x3b8   : > { %v4832_v30 = vsub.f32 1.0, %v4831_v59  ;;  %v4823_v10 = vsel %vm4822_vm6, %v6486_v61, %v4819_v32  ;;  %vm4837_vm10 = vmor %vm4835_vm9, %vm4836_vm8  ;;  %vm4850_vm11 = vweird.f32 %v9812_v34  ;;  %v4857_v21 = vor.u32 1.1754944e-38, %v4856_v51 }
 0x3b9   : > { %v3849_v50 = vpop.f32.mrf.mxu3  ;;  %v4828_v1 = vsel %vm4825_vm7, %v4827_v44, %v4823_v10  ;;  %vm4855_vm13 = vcmp.eq.f32.partialorder %v4854_v4, 8.507059e+37 }
 0x3ba   : > { %v4833_v42 = vmul.f32 %v6492_v45, %v4832_v30  ;;  %v9826_v46 = vadd.f32 %v9648_v33, %v3849_v50  ;;  %v5159_v0 = vmul.f32 1.002, %v4828_v1 }
 0x3bb   : > { %5859 = vmatmul.msk.f32.gmra.mxu3 %vm3495_vm2, %v3482_v14  ;;  %v6494_v2 = vpop.eup %6493 }
 0x3bc   : > { %v4834_v3 = vadd.f32 %v6492_v45, %v4833_v42  ;;  %v5908_v13 = vmul.f32 -1.442695, %v9826_v46  ;;  %v5968_v12 = vadd.f32 -0.001, %v5159_v0  ;;  %v4846_v41 = vmul.f32 %v6494_v2, %v9812_v34  ;;  %v6496_v19 = vpop.eup %6495 }
 0x3bd   : > { %v4138_v16 = vadd.f32 1.0, %v6496_v19  ;;  %vm4851_vm2 = vweird.f32 %v6494_v2 }
 0x3be   : > { %v4838_v26 = vsel %vm4837_vm10, %v6492_v45, %v4834_v3  ;;  %6497 = vpow2.f32 %v5908_v13  ;;  %v5288_v15 = vsel %vm5243_vm4, %v9728_v38, %v5968_v12  ;;  %v4847_v8 = vsub.f32 1.0, %v4846_v41  ;;  %vm4852_vm12 = vmor %vm4850_vm11, %vm4851_vm2 }
 0x3bf   : > { %v4843_v9 = vsel %vm4840_vm0, %v4842_v35, %v4838_v26  ;;  %5353 = vst.msk [vmem:[%s7682_s9 + $0x160] sm:$0xff] %vm5308_vm5, %v5288_v15  ;;  %6499 = vrcp.f32 %v4138_v16  ;;  %v4871_v17 = vand.u32 2147483648, %v4138_v16  ;;  %v4869_v43 = vand.u32 2147483647, %v4138_v16 }
 0x3c0   : > { %v5160_v28 = vmul.f32 1.002, %v4843_v9  ;;  %v4848_v55 = vmul.f32 %v6494_v2, %v4847_v8  ;;  %vm4865_vm15 = vweird.f32 %v4138_v16 }
 0x3c1   : > { %v3852_v60 = vpop.f32.mrf.mxu3  ;;  %v4872_v20 = vor.u32 1.1754944e-38, %v4871_v17  ;;  %vm4870_vm3 = vcmp.eq.f32.partialorder %v4869_v43, 8.507059e+37 }
 0x3c2   : > { %v5969_v53 = vadd.f32 -0.001, %v5160_v28  ;;  %v9840_v5 = vadd.f32 %v9648_v33, %v3852_v60  ;;  %v4849_v38 = vadd.f32 %v6494_v2, %v4848_v55 }
 0x3c4   : > { %v6498_v47 = vpop.eup %6497  ;;  %v5289_v58 = vsel %vm5243_vm4, %v9749_v54, %v5969_v53  ;;  %v5909_v29 = vmul.f32 -1.442695, %v9840_v5  ;;  %v4853_v6 = vsel %vm4852_vm12, %v6494_v2, %v4849_v38 }
 0x3c5   : > { %5354 = vst.msk [vmem:[%s7682_s9 + $0x168] sm:$0xff] %vm5308_vm5, %v5289_v58  ;;  %v4139_v61 = vadd.f32 1.0, %v6498_v47  ;;  %v4858_v36 = vsel %vm4855_vm13, %v4857_v21, %v4853_v6  ;;  %v6500_v25 = vpop.eup %6499 }
 0x3c6   : > { %6501 = vpow2.f32 %v5909_v29  ;;  %v5161_v23 = vmul.f32 1.002, %v4858_v36  ;;  %v4861_v37 = vmul.f32 %v6500_v25, %v4138_v16  ;;  %vm4866_vm14 = vweird.f32 %v6500_v25 }
 0x3c7   : > { %6503 = vrcp.f32 %v4139_v61  ;;  %vm4867_vm1 = vmor %vm4865_vm15, %vm4866_vm14  ;;  %v4886_v32 = vand.u32 2147483648, %v4139_v61  ;;  %v4884_v30 = vand.u32 2147483647, %v4139_v61  ;;  %vm4880_vm7 = vweird.f32 %v4139_v61 }
 0x3c8   : > { %v5970_v62 = vadd.f32 -0.001, %v5161_v23  ;;  %v4862_v31 = vsub.f32 1.0, %v4861_v37 }
 0x3c9   : > { %v3855_v11 = vpop.f32.mrf.mxu3  ;;  %v4887_v1 = vor.u32 1.1754944e-38, %v4886_v32  ;;  %vm4885_vm9 = vcmp.eq.f32.partialorder %v4884_v30, 8.507059e+37 }
 0x3ca   : > { %v9850_v54 = vadd.f32 %v9648_v33, %v3855_v11  ;;  %v5290_v49 = vsel %vm5243_vm4, %v9782_v52, %v5970_v62  ;;  %v4863_v63 = vmul.f32 %v6500_v25, %v4862_v31 }
 0x3cb   : > { %5355 = vst.msk [vmem:[%s7682_s9 + $0x170] sm:$0xff] %vm5308_vm5, %v5290_v49 }
 0x3cc   : > { %v6502_v22 = vpop.eup %6501  ;;  %v5910_v48 = vmul.f32 -1.442695, %v9850_v54  ;;  %v4864_v45 = vadd.f32 %v6500_v25, %v4863_v63 }
 0x3cd   : > { %v6504_v34 = vpop.eup %6503  ;;  %v4140_v39 = vadd.f32 1.0, %v6502_v22 }
 0x3ce   : > { %v4876_v27 = vmul.f32 %v6504_v34, %v4139_v61  ;;  %6505 = vpow2.f32 %v5910_v48  ;;  %v4868_v24 = vsel %vm4867_vm1, %v6500_v25, %v4864_v45  ;;  %vm4881_vm6 = vweird.f32 %v6504_v34 }
 0x3cf   : > { %6507 = vrcp.f32 %v4140_v39  ;;  %v4873_v59 = vsel %vm4870_vm3, %v4872_v20, %v4868_v24  ;;  %vm4882_vm8 = vmor %vm4880_vm7, %vm4881_vm6  ;;  %v4899_v26 = vand.u32 2147483647, %v4140_v39  ;;  %v4901_v15 = vand.u32 2147483648, %v4140_v39 }
 0x3d0   : > { %v4877_v52 = vsub.f32 1.0, %v4876_v27  ;;  %v5162_v56 = vmul.f32 1.002, %v4873_v59  ;;  %vm4895_vm0 = vweird.f32 %v4140_v39 }
 0x3d1   : > { %v4902_v55 = vor.u32 1.1754944e-38, %v4901_v15  ;;  %vm4900_vm11 = vcmp.eq.f32.partialorder %v4899_v26, 8.507059e+37 }
 0x3d2   : > { %v4878_v44 = vmul.f32 %v6504_v34, %v4877_v52  ;;  %v5971_v10 = vadd.f32 -0.001, %v5162_v56 }
 0x3d4   : > { %v6506_v14 = vpop.eup %6505  ;;  %v4879_v18 = vadd.f32 %v6504_v34, %v4878_v44  ;;  %v3858_v57 = vpop.f32.mrf.mxu3  ;;  %v5291_v2 = vsel %vm5243_vm4, %v9804_v7, %v5971_v10 }
 0x3d5   : > { %v6508_v50 = vpop.eup %6507  ;;  %v4141_v42 = vadd.f32 1.0, %v6506_v14  ;;  %v9859_v0 = vadd.f32 %v9648_v33, %v3858_v57  ;;  %5356 = vst.msk [vmem:[%s7682_s9 + $0x178] sm:$0xff] %vm5308_vm5, %v5291_v2 }
 0x3d6   : > { %v4883_v3 = vsel %vm4882_vm8, %v6504_v34, %v4879_v18  ;;  %v4891_v13 = vmul.f32 %v6508_v50, %v4140_v39  ;;  %vm4896_vm10 = vweird.f32 %v6508_v50 }
 0x3d7   : > { %v4888_v12 = vsel %vm4885_vm9, %v4887_v1, %v4883_v3  ;;  %6509 = vrcp.f32 %v4141_v42  ;;  %v5911_v19 = vmul.f32 -1.442695, %v9859_v0  ;;  %vm4897_vm2 = vmor %vm4895_vm0, %vm4896_vm10  ;;  %v4916_v29 = vand.u32 2147483648, %v4141_v42 }
 0x3d8   : > { %v5163_v35 = vmul.f32 1.002, %v4888_v12  ;;  %v4892_v41 = vsub.f32 1.0, %v4891_v13  ;;  %v4914_v25 = vand.u32 2147483647, %v4141_v42  ;;  %vm4910_vm13 = vweird.f32 %v4141_v42 }
 0x3d9   : > { %6511 = vpow2.f32 %v5911_v19  ;;  %v4917_v62 = vor.u32 1.1754944e-38, %v4916_v29 }
 0x3da   : > { %v5972_v9 = vadd.f32 -0.001, %v5163_v35  ;;  %v4893_v8 = vmul.f32 %v6508_v50, %v4892_v41  ;;  %vm4915_vm15 = vcmp.eq.f32.partialorder %v4914_v25, 8.507059e+37 }
 0x3dc   : > { %v5292_v7 = vsel %vm5243_vm4, %v9826_v46, %v5972_v9  ;;  %v4894_v16 = vadd.f32 %v6508_v50, %v4893_v8  ;;  %v3861_v28 = vpop.f32.mrf.mxu3 }
 0x3dd   : > { %v6510_v51 = vpop.eup %6509  ;;  %5357 = vst.msk [vmem:[%s7682_s9 + $0x180] sm:$0xff] %vm5308_vm5, %v5292_v7  ;;  %v9873_v4 = vadd.f32 %v9648_v33, %v3861_v28 }
 0x3de   : > { %v4898_v60 = vsel %vm4897_vm2, %v6508_v50, %v4894_v16  ;;  %v4906_v53 = vmul.f32 %v6510_v51, %v4141_v42  ;;  %vm4911_vm12 = vweird.f32 %v6510_v51 }
 0x3df   : > { %v4903_v38 = vsel %vm4900_vm11, %v4902_v55, %v4898_v60  ;;  %v5912_v47 = vmul.f32 -1.442695, %v9873_v4  ;;  %v6512_v58 = vpop.eup %6511  ;;  %vm4912_vm14 = vmor %vm4910_vm13, %vm4911_vm12 }
 0x3e0   : > { %v5164_v46 = vmul.f32 1.002, %v4903_v38  ;;  %v4907_v21 = vsub.f32 1.0, %v4906_v53  ;;  %v4142_v6 = vadd.f32 1.0, %v6512_v58 }
 0x3e1   : > { %6513 = vpow2.f32 %v5912_v47 }
 0x3e2   : > { %v5973_v61 = vadd.f32 -0.001, %v5164_v46  ;;  %v4908_v36 = vmul.f32 %v6510_v51, %v4907_v21  ;;  %6515 = vrcp.f32 %v4142_v6  ;;  %v4931_v20 = vand.u32 2147483648, %v4142_v6 }
 0x3e3   : > { %v4929_v52 = vand.u32 2147483647, %v4142_v6  ;;  %vm4925_vm3 = vweird.f32 %v4142_v6 }
 0x3e4   : > { %v5293_v23 = vsel %vm5243_vm4, %v9840_v5, %v5973_v61  ;;  %v4909_v37 = vadd.f32 %v6510_v51, %v4908_v36  ;;  %v4932_v30 = vor.u32 1.1754944e-38, %v4931_v20 }
 0x3e5   : > { %5358 = vst.msk [vmem:[%s7682_s9 + $0x188] sm:$0xff] %vm5308_vm5, %v5293_v23  ;;  %vm4930_vm7 = vcmp.eq.f32.partialorder %v4929_v52, 8.507059e+37 }
 0x3e6   : > { %v4913_v11 = vsel %vm4912_vm14, %v6510_v51, %v4909_v37  ;;  %v3864_v31 = vpop.f32.mrf.mxu3 }
 0x3e7   : > { %v6514_v49 = vpop.eup %6513  ;;  %v4918_v17 = vsel %vm4915_vm15, %v4917_v62, %v4913_v11  ;;  %v9882_v22 = vadd.f32 %v9648_v33, %v3864_v31 }
 0x3e8   : > { %v5165_v63 = vmul.f32 1.002, %v4918_v17  ;;  %v4143_v43 = vadd.f32 1.0, %v6514_v49  ;;  %v6516_v48 = vpop.eup %6515 }
 0x3e9   : > { %v5913_v5 = vmul.f32 -1.442695, %v9882_v22  ;;  %v4921_v39 = vmul.f32 %v6516_v48, %v4142_v6  ;;  %vm4926_vm1 = vweird.f32 %v6516_v48 }
 0x3ea   : > { %v5974_v34 = vadd.f32 -0.001, %v5165_v63  ;;  %6517 = vrcp.f32 %v4143_v43  ;;  %vm4927_vm6 = vmor %vm4925_vm3, %vm4926_vm1  ;;  %v4946_v2 = vand.u32 2147483648, %v4143_v43  ;;  %v4944_v13 = vand.u32 2147483647, %v4143_v43 }
 0x3eb   : > { %6519 = vpow2.f32 %v5913_v5  ;;  %v4922_v27 = vsub.f32 1.0, %v4921_v39  ;;  %vm4940_vm9 = vweird.f32 %v4143_v43 }
 0x3ec   : > { %v5294_v45 = vsel %vm5243_vm4, %v9850_v54, %v5974_v34  ;;  %v4947_v19 = vor.u32 1.1754944e-38, %v4946_v2  ;;  %vm4945_vm0 = vcmp.eq.f32.partialorder %v4944_v13, 8.507059e+37 }
 0x3ed   : > { %5359 = vst.msk [vmem:[%s7682_s9 + $0x190] sm:$0xff] %vm5308_vm5, %v5294_v45  ;;  %v4923_v24 = vmul.f32 %v6516_v48, %v4922_v27 }
 0x3ef   : > { %v4924_v32 = vadd.f32 %v6516_v48, %v4923_v24 }
 0x3f0   : > { %v6518_v59 = vpop.eup %6517  ;;  %v3867_v56 = vpop.f32.mrf.mxu3 }
 0x3f1   : > { %v6520_v44 = vpop.eup %6519  ;;  %v4936_v14 = vmul.f32 %v6518_v59, %v4143_v43  ;;  %v9891_v10 = vadd.f32 %v9648_v33, %v3867_v56  ;;  %v4928_v18 = vsel %vm4927_vm6, %v6516_v48, %v4924_v32  ;;  %vm4941_vm8 = vweird.f32 %v6518_v59 }
 0x3f2   : > { %v4144_v54 = vadd.f32 1.0, %v6520_v44  ;;  %v4933_v57 = vsel %vm4930_vm7, %v4932_v30, %v4928_v18  ;;  %vm4942_vm10 = vmor %vm4940_vm9, %vm4941_vm8 }
 0x3f3   : > { %v4937_v50 = vsub.f32 1.0, %v4936_v14  ;;  %v5914_v1 = vmul.f32 -1.442695, %v9891_v10  ;;  %v5166_v42 = vmul.f32 1.002, %v4933_v57 }
 0x3f4   : > { %6521 = vrcp.f32 %v4144_v54  ;;  %v4961_v38 = vand.u32 2147483648, %v4144_v54  ;;  %v4959_v46 = vand.u32 2147483647, %v4144_v54  ;;  %vm4955_vm11 = vweird.f32 %v4144_v54 }
 0x3f5   : > { %v4938_v3 = vmul.f32 %v6518_v59, %v4937_v50  ;;  %6523 = vpow2.f32 %v5914_v1  ;;  %v5975_v12 = vadd.f32 -0.001, %v5166_v42 }
 0x3f6   : > { %v4962_v29 = vor.u32 1.1754944e-38, %v4961_v38  ;;  %vm4960_vm13 = vcmp.eq.f32.partialorder %v4959_v46, 8.507059e+37 }
 0x3f7   : > { %v4939_v35 = vadd.f32 %v6518_v59, %v4938_v3  ;;  %v5295_v41 = vsel %vm5243_vm4, %v9859_v0, %v5975_v12 }
 0x3f8   : > { %v3870_v26 = vpop.f32.mrf.mxu3  ;;  %5360 = vst.msk [vmem:[%s7682_s9 + $0x198] sm:$0xff] %vm5308_vm5, %v5295_v41 }
 0x3f9   : > { %v4943_v15 = vsel %vm4942_vm10, %v6518_v59, %v4939_v35  ;;  %v9900_v9 = vadd.f32 %v9648_v33, %v3870_v26 }
 0x3fa   : > { %v6522_v8 = vpop.eup %6521  ;;  %v4948_v7 = vsel %vm4945_vm0, %v4947_v19, %v4943_v15 }
 0x3fb   : > { %v6524_v16 = vpop.eup %6523  ;;  %v5167_v28 = vmul.f32 1.002, %v4948_v7  ;;  %v4951_v51 = vmul.f32 %v6522_v8, %v4144_v54  ;;  %v5915_v55 = vmul.f32 -1.442695, %v9900_v9  ;;  %vm4956_vm2 = vweird.f32 %v6522_v8 }
 0x3fc   : > { %v4145_v60 = vadd.f32 1.0, %v6524_v16  ;;  %vm4957_vm12 = vmor %vm4955_vm11, %vm4956_vm2 }
 0x3fd   : > { %v5976_v0 = vadd.f32 -0.001, %v5167_v28  ;;  %v4952_v53 = vsub.f32 1.0, %v4951_v51  ;;  %6525 = vpow2.f32 %v5915_v55 }
 0x3fe   : > { %6527 = vrcp.f32 %v4145_v60  ;;  %v4974_v63 = vand.u32 2147483647, %v4145_v60  ;;  %v4976_v43 = vand.u32 2147483648, %v4145_v60  ;;  %vm4970_vm15 = vweird.f32 %v4145_v60 }
 0x3ff   : > { %v5296_v47 = vsel %vm5243_vm4, %v9873_v4, %v5976_v0  ;;  %v4953_v58 = vmul.f32 %v6522_v8, %v4952_v53 }
 0x400   : > { %5361 = vst.msk [vmem:[%s7682_s9 + $0x1a0] sm:$0xff] %vm5308_vm5, %v5296_v47  ;;  %v4977_v27 = vor.u32 1.1754944e-38, %v4976_v43  ;;  %vm4975_vm3 = vcmp.eq.f32.partialorder %v4974_v63, 8.507059e+37  ;;  %v9945_v63 = vld [vmem:[%s10025_s4] ss:$0 sm:$0xff] }
 0x401   : > { %v4954_v21 = vadd.f32 %v6522_v8, %v4953_v58 }
 0x403   : > { %v6526_v6 = vpop.eup %6525  ;;  %v4958_v61 = vsel %vm4957_vm12, %v6522_v8, %v4954_v21  ;;  %v3873_v36 = vpop.f32.mrf.mxu3 }
 0x404   : > { %v6528_v25 = vpop.eup %6527  ;;  %v4963_v23 = vsel %vm4960_vm13, %v4962_v29, %v4958_v61  ;;  %v4146_v37 = vadd.f32 1.0, %v6526_v6  ;;  %v9909_v62 = vadd.f32 %v9648_v33, %v3873_v36 }
 0x405   : > { %v5168_v4 = vmul.f32 1.002, %v4963_v23  ;;  %v4966_v11 = vmul.f32 %v6528_v25, %v4145_v60  ;;  %vm4971_vm14 = vweird.f32 %v6528_v25 }
 0x406   : > { %6529 = vrcp.f32 %v4146_v37  ;;  %v5916_v17 = vmul.f32 -1.442695, %v9909_v62  ;;  %vm4972_vm1 = vmor %vm4970_vm15, %vm4971_vm14  ;;  %v4991_v30 = vand.u32 2147483648, %v4146_v37  ;;  %v4989_v57 = vand.u32 2147483647, %v4146_v37 }
 0x407   : > { %v5977_v31 = vadd.f32 -0.001, %v5168_v4  ;;  %v4967_v49 = vsub.f32 1.0, %v4966_v11  ;;  %vm4985_vm7 = vweird.f32 %v4146_v37 }
 0x408   : > { %6531 = vpow2.f32 %v5916_v17  ;;  %v4992_v2 = vor.u32 1.1754944e-38, %v4991_v30  ;;  %vm4990_vm9 = vcmp.eq.f32.partialorder %v4989_v57, 8.507059e+37 }
 0x409   : > { %v5297_v48 = vsel %vm5243_vm4, %v9882_v22, %v5977_v31  ;;  %v4968_v5 = vmul.f32 %v6528_v25, %v4967_v49 }
 0x40a   : > { %5362 = vst.msk [vmem:[%s7682_s9 + $0x1a8] sm:$0xff] %vm5308_vm5, %v5297_v48 }
 0x40b   : > { %v4969_v34 = vadd.f32 %v6528_v25, %v4968_v5  ;;  %v3876_v39 = vpop.f32.mrf.mxu3 }
 0x40c   : > { %v6530_v45 = vpop.eup %6529  ;;  %v9918_v20 = vadd.f32 %v9648_v33, %v3876_v39 }
 0x40d   : > { %v4973_v24 = vsel %vm4972_vm1, %v6528_v25, %v4969_v34  ;;  %v4981_v52 = vmul.f32 %v6530_v45, %v4146_v37  ;;  %vm4986_vm6 = vweird.f32 %v6530_v45 }
 0x40e   : > { %v4978_v59 = vsel %vm4975_vm3, %v4977_v27, %v4973_v24  ;;  %v5917_v22 = vmul.f32 -1.442695, %v9918_v20  ;;  %v6532_v32 = vpop.eup %6531  ;;  %vm4987_vm8 = vmor %vm4985_vm7, %vm4986_vm6 }
 0x40f   : > { %v5169_v56 = vmul.f32 1.002, %v4978_v59  ;;  %v4982_v44 = vsub.f32 1.0, %v4981_v52  ;;  %v4147_v14 = vadd.f32 1.0, %v6532_v32 }
 0x410   : > { %6533 = vpow2.f32 %v5917_v22 }
 0x411   : > { %v5978_v18 = vadd.f32 -0.001, %v5169_v56  ;;  %v4983_v54 = vmul.f32 %v6530_v45, %v4982_v44  ;;  %6535 = vrcp.f32 %v4147_v14  ;;  %v5006_v28 = vand.u32 2147483648, %v4147_v14 }
 0x412   : > { %v5004_v55 = vand.u32 2147483647, %v4147_v14  ;;  %vm5000_vm0 = vweird.f32 %v4147_v14 }
 0x413   : > { %v5298_v50 = vsel %vm5243_vm4, %v9891_v10, %v5978_v18  ;;  %v4984_v1 = vadd.f32 %v6530_v45, %v4983_v54  ;;  %v3879_v42 = vpop.f32.mrf.mxu3  ;;  %v5007_v46 = vor.u32 1.1754944e-38, %v5006_v28 }
 0x414   : > { %5363 = vst.msk [vmem:[%s7682_s9 + $0x1b0] sm:$0xff] %vm5308_vm5, %v5298_v50  ;;  %v9927_v3 = vadd.f32 %v9648_v33, %v3879_v42  ;;  %vm5005_vm11 = vcmp.eq.f32.partialorder %v5004_v55, 8.507059e+37 }
 0x415   : > { %v4988_v13 = vsel %vm4987_vm8, %v6530_v45, %v4984_v1 }
 0x416   : > { %v6534_v12 = vpop.eup %6533  ;;  %v4993_v35 = vsel %vm4990_vm9, %v4992_v2, %v4988_v13  ;;  %v5918_v41 = vmul.f32 -1.442695, %v9927_v3 }
 0x417   : > { %v5170_v19 = vmul.f32 1.002, %v4993_v35  ;;  %v4148_v26 = vadd.f32 1.0, %v6534_v12  ;;  %v6536_v10 = vpop.eup %6535 }
 0x418   : > { %6537 = vpow2.f32 %v5918_v41  ;;  %v4996_v8 = vmul.f32 %v6536_v10, %v4147_v14  ;;  %vm5001_vm10 = vweird.f32 %v6536_v10 }
 0x419   : > { %v5979_v15 = vadd.f32 -0.001, %v5170_v19  ;;  %6539 = vrcp.f32 %v4148_v26  ;;  %vm5002_vm2 = vmor %vm5000_vm0, %vm5001_vm10  ;;  %v5021_v25 = vand.u32 2147483648, %v4148_v26  ;;  %v5019_v37 = vand.u32 2147483647, %v4148_v26 }
 0x41a   : > { %v4997_v16 = vsub.f32 1.0, %v4996_v8  ;;  %vm5015_vm13 = vweird.f32 %v4148_v26 }
 0x41b   : > { %v5299_v7 = vsel %vm5243_vm4, %v9900_v9, %v5979_v15  ;;  %v5022_v17 = vor.u32 1.1754944e-38, %v5021_v25  ;;  %vm5020_vm15 = vcmp.eq.f32.partialorder %v5019_v37, 8.507059e+37 }
 0x41c   : > { %5364 = vst.msk [vmem:[%s7682_s9 + $0x1b8] sm:$0xff] %vm5308_vm5, %v5299_v7  ;;  %v4998_v51 = vmul.f32 %v6536_v10, %v4997_v16 }
 0x41e   : > { %v6538_v60 = vpop.eup %6537  ;;  %v3882_v0 = vpop.f32.mrf.mxu3  ;;  %v4999_v38 = vadd.f32 %v6536_v10, %v4998_v51 }
 0x41f   : > { %v6540_v53 = vpop.eup %6539  ;;  %v4149_v47 = vadd.f32 1.0, %v6538_v60  ;;  %v9936_v58 = vadd.f32 %v9648_v33, %v3882_v0 }
 0x420   : > { %v5011_v21 = vmul.f32 %v6540_v53, %v4148_v26  ;;  %v5003_v9 = vsel %vm5002_vm2, %v6536_v10, %v4999_v38  ;;  %vm5016_vm12 = vweird.f32 %v6540_v53 }
 0x421   : > { %6541 = vrcp.f32 %v4149_v47  ;;  %v5008_v29 = vsel %vm5005_vm11, %v5007_v46, %v5003_v9  ;;  %v5919_v61 = vmul.f32 -1.442695, %v9936_v58  ;;  %vm5017_vm14 = vmor %vm5015_vm13, %vm5016_vm12  ;;  %v5036_v24 = vand.u32 2147483648, %v4149_v47 }
 0x422   : > { %v5012_v6 = vsub.f32 1.0, %v5011_v21  ;;  %v5171_v36 = vmul.f32 1.002, %v5008_v29  ;;  %v5034_v32 = vand.u32 2147483647, %v4149_v47  ;;  %vm5030_vm3 = vweird.f32 %v4149_v47 }
 0x423   : > { %6543 = vpow2.f32 %v5919_v61  ;;  %v5037_v14 = vor.u32 1.1754944e-38, %v5036_v24 }
 0x424   : > { %v5013_v23 = vmul.f32 %v6540_v53, %v5012_v6  ;;  %v5980_v4 = vadd.f32 -0.001, %v5171_v36  ;;  %vm5035_vm7 = vcmp.eq.f32.partialorder %v5034_v32, 8.507059e+37 }
 0x426   : > { %v5014_v33 = vadd.f32 %v6540_v53, %v5013_v23  ;;  %v3885_v11 = vpop.f32.mrf.mxu3  ;;  %v5300_v49 = vsel %vm5243_vm4, %v9909_v62, %v5980_v4 }
 0x427   : > { %v6542_v31 = vpop.eup %6541  ;;  %v9948_v43 = vadd.f32 %v9945_v63, %v3885_v11  ;;  %5365 = vst.msk [vmem:[%s7682_s9 + $0x1c0] sm:$0xff] %vm5308_vm5, %v5300_v49 }
 0x428   : > { %v5018_v48 = vsel %vm5017_vm14, %v6540_v53, %v5014_v33  ;;  %v5026_v5 = vmul.f32 %v6542_v31, %v4149_v47  ;;  %vm5031_vm1 = vweird.f32 %v6542_v31 }
 0x429   : > { %v5023_v34 = vsel %vm5020_vm15, %v5022_v17, %v5018_v48  ;;  %v5920_v39 = vmul.f32 -1.442695, %v9948_v43  ;;  %v6544_v62 = vpop.eup %6543  ;;  %vm5032_vm6 = vmor %vm5030_vm3, %vm5031_vm1 }
 0x42a   : > { %v5172_v45 = vmul.f32 1.002, %v5023_v34  ;;  %v5027_v27 = vsub.f32 1.0, %v5026_v5  ;;  %v4150_v52 = vadd.f32 1.0, %v6544_v62 }
 0x42b   : > { %6545 = vpow2.f32 %v5920_v39 }
 0x42c   : > { %v5981_v59 = vadd.f32 -0.001, %v5172_v45  ;;  %v5028_v22 = vmul.f32 %v6542_v31, %v5027_v27  ;;  %6547 = vrcp.f32 %v4150_v52  ;;  %v5051_v26 = vand.u32 2147483648, %v4150_v52 }
 0x42d   : > { %v5049_v8 = vand.u32 2147483647, %v4150_v52  ;;  %vm5045_vm9 = vweird.f32 %v4150_v52 }
 0x42e   : > { %v5301_v56 = vsel %vm5243_vm4, %v9918_v20, %v5981_v59  ;;  %v5029_v44 = vadd.f32 %v6542_v31, %v5028_v22  ;;  %v3888_v30 = vpop.f32.mrf.mxu3 }
 0x42f   : > { %5366 = vst.msk [vmem:[%s7682_s9 + $0x1c8] sm:$0xff] %vm5308_vm5, %v5301_v56  ;;  %v9959_v18 = vadd.f32 %v9945_v63, %v3888_v30  ;;  %vm5050_vm0 = vcmp.eq.f32.partialorder %v5049_v8, 8.507059e+37 }
 0x430   : > { %v5033_v54 = vsel %vm5032_vm6, %v6542_v31, %v5029_v44 }
 0x431   : > { %v6546_v57 = vpop.eup %6545  ;;  %v5038_v50 = vsel %vm5035_vm7, %v5037_v14, %v5033_v54  ;;  %v5921_v1 = vmul.f32 -1.442695, %v9959_v18 }
 0x432   : > { %v5173_v42 = vmul.f32 1.002, %v5038_v50  ;;  %v4151_v2 = vadd.f32 1.0, %v6546_v57  ;;  %v6548_v20 = vpop.eup %6547 }
 0x433   : > { %6549 = vpow2.f32 %v5921_v1  ;;  %v5041_v12 = vmul.f32 %v6548_v20, %v4150_v52  ;;  %vm5046_vm8 = vweird.f32 %v6548_v20 }
 0x434   : > { %v5982_v13 = vadd.f32 -0.001, %v5173_v42  ;;  %6551 = vrcp.f32 %v4151_v2  ;;  %vm5047_vm10 = vmor %vm5045_vm9, %vm5046_vm8  ;;  %v5066_v46 = vand.u32 2147483648, %v4151_v2  ;;  %v5064_v29 = vand.u32 2147483647, %v4151_v2 }
 0x435   : > { %v5042_v41 = vsub.f32 1.0, %v5041_v12  ;;  %vm5060_vm11 = vweird.f32 %v4151_v2 }
 0x436   : > { %v5302_v35 = vsel %vm5243_vm4, %v9927_v3, %v5982_v13  ;;  %v3891_v19 = vpop.f32.mrf.mxu3  ;;  %v5052_v3 = vor.u32 1.1754944e-38, %v5051_v26  ;;  %v5067_v33 = vor.u32 1.1754944e-38, %v5066_v46  ;;  %vm5065_vm13 = vcmp.eq.f32.partialorder %v5064_v29, 8.507059e+37 }
 0x437   : > { %5367 = vst.msk [vmem:[%s7682_s9 + $0x1d0] sm:$0xff] %vm5308_vm5, %v5302_v35  ;;  %v9968_v10 = vadd.f32 %v9945_v63, %v3891_v19  ;;  %v5043_v15 = vmul.f32 %v6548_v20, %v5042_v41 }
 0x439   : > { %v6550_v7 = vpop.eup %6549  ;;  %v5922_v16 = vmul.f32 -1.442695, %v9968_v10  ;;  %v5044_v51 = vadd.f32 %v6548_v20, %v5043_v15 }
 0x43a   : > { %v6552_v28 = vpop.eup %6551  ;;  %v4152_v55 = vadd.f32 1.0, %v6550_v7 }
 0x43b   : > { %v5056_v60 = vmul.f32 %v6552_v28, %v4151_v2  ;;  %6553 = vpow2.f32 %v5922_v16  ;;  %v5048_v0 = vsel %vm5047_vm10, %v6548_v20, %v5044_v51  ;;  %vm5061_vm2 = vweird.f32 %v6552_v28 }
 0x43c   : > { %6555 = vrcp.f32 %v4152_v55  ;;  %v5053_v53 = vsel %vm5050_vm0, %v5052_v3, %v5048_v0  ;;  %vm5062_vm12 = vmor %vm5060_vm11, %vm5061_vm2  ;;  %v5081_v5 = vand.u32 2147483648, %v4152_v55  ;;  %v5079_v62 = vand.u32 2147483647, %v4152_v55 }
 0x43d   : > { %v5057_v38 = vsub.f32 1.0, %v5056_v60  ;;  %v5174_v47 = vmul.f32 1.002, %v5053_v53  ;;  %vm5075_vm15 = vweird.f32 %v4152_v55 }
 0x43e   : > { %v3894_v21 = vpop.f32.mrf.mxu3  ;;  %v5082_v52 = vor.u32 1.1754944e-38, %v5081_v5  ;;  %vm5080_vm3 = vcmp.eq.f32.partialorder %v5079_v62, 8.507059e+37 }
 0x43f   : > { %v5058_v9 = vmul.f32 %v6552_v28, %v5057_v38  ;;  %v9972_v6 = vadd.f32 %v9945_v63, %v3894_v21  ;;  %v5983_v61 = vadd.f32 -0.001, %v5174_v47 }
 0x441   : > { %v6554_v36 = vpop.eup %6553  ;;  %v5059_v25 = vadd.f32 %v6552_v28, %v5058_v9  ;;  %v5923_v23 = vmul.f32 -1.442695, %v9972_v6  ;;  %v5303_v4 = vsel %vm5243_vm4, %v9936_v58, %v5983_v61 }
 0x442   : > { %v6556_v37 = vpop.eup %6555  ;;  %v4153_v11 = vadd.f32 1.0, %v6554_v36  ;;  %5368 = vst.msk [vmem:[%s7682_s9 + $0x1d8] sm:$0xff] %vm5308_vm5, %v5303_v4 }
 0x443   : > { %v5063_v31 = vsel %vm5062_vm12, %v6552_v28, %v5059_v25  ;;  %v5071_v49 = vmul.f32 %v6556_v37, %v4152_v55  ;;  %6557 = vpow2.f32 %v5923_v23  ;;  %vm5076_vm14 = vweird.f32 %v6556_v37 }
 0x444   : > { %v5068_v17 = vsel %vm5065_vm13, %v5067_v33, %v5063_v31  ;;  %6559 = vrcp.f32 %v4153_v11  ;;  %vm5077_vm1 = vmor %vm5075_vm15, %vm5076_vm14  ;;  %v5096_v14 = vand.u32 2147483648, %v4153_v11  ;;  %vm5090_vm7 = vweird.f32 %v4153_v11 }
 0x445   : > { %v5175_v63 = vmul.f32 1.002, %v5068_v17  ;;  %v5072_v48 = vsub.f32 1.0, %v5071_v49 }
 0x446   : > { %v5097_v2 = vor.u32 1.1754944e-38, %v5096_v14 }
 0x447   : > { %v5984_v34 = vadd.f32 -0.001, %v5175_v63  ;;  %v5073_v39 = vmul.f32 %v6556_v37, %v5072_v48 }
 0x449   : > { %v6558_v58 = vpop.eup %6557  ;;  %v5304_v45 = vsel %vm5243_vm4, %v9948_v43, %v5984_v34  ;;  %v5074_v27 = vadd.f32 %v6556_v37, %v5073_v39  ;;  %v5094_v43 = vand.u32 2147483647, %v4153_v11 }
 0x44a   : > { %v6560_v24 = vpop.eup %6559  ;;  %5369 = vst.msk [vmem:[%s7682_s9 + $0x1e0] sm:$0xff] %vm5308_vm5, %v5304_v45  ;;  %v4154_v59 = vadd.f32 1.0, %v6558_v58 }
 0x44b   : > { %v5078_v22 = vsel %vm5077_vm1, %v6556_v37, %v5074_v27  ;;  %v5086_v32 = vmul.f32 %v6560_v24, %v4153_v11  ;;  %vm5091_vm6 = vweird.f32 %v6560_v24  ;;  %vm5095_vm9 = vcmp.eq.f32.partialorder %v5094_v43, 8.507059e+37 }
 0x44c   : > { %v5083_v56 = vsel %vm5080_vm3, %v5082_v52, %v5078_v22  ;;  %6561 = vrcp.f32 %v4154_v59  ;;  %vm5092_vm8 = vmor %vm5090_vm7, %vm5091_vm6  ;;  %v5111_v19 = vand.u32 2147483648, %v4154_v59  ;;  %vm5105_vm0 = vweird.f32 %v4154_v59 }
 0x44d   : > { %v5176_v44 = vmul.f32 1.002, %v5083_v56  ;;  %v5087_v30 = vsub.f32 1.0, %v5086_v32 }
 0x44e   : > { %v5112_v16 = vor.u32 1.1754944e-38, %v5111_v19 }
 0x44f   : > { %v5985_v54 = vadd.f32 -0.001, %v5176_v44  ;;  %v5088_v57 = vmul.f32 %v6560_v24, %v5087_v30 }
 0x451   : > { %v5305_v50 = vsel %vm5243_vm4, %v9959_v18, %v5985_v54  ;;  %v5089_v1 = vadd.f32 %v6560_v24, %v5088_v57  ;;  %v5109_v18 = vand.u32 2147483647, %v4154_v59 }
 0x452   : > { %v6562_v42 = vpop.eup %6561  ;;  %5370 = vst.msk [vmem:[%s7682_s9 + $0x1e8] sm:$0xff] %vm5308_vm5, %v5305_v50 }
 0x453   : > { %v5093_v20 = vsel %vm5092_vm8, %v6560_v24, %v5089_v1  ;;  %v5101_v13 = vmul.f32 %v6562_v42, %v4154_v59  ;;  %vm5106_vm10 = vweird.f32 %v6562_v42  ;;  %vm5110_vm11 = vcmp.eq.f32.partialorder %v5109_v18, 8.507059e+37 }
 0x454   : > { %v5098_v12 = vsel %vm5095_vm9, %v5097_v2, %v5093_v20  ;;  %vm5107_vm2 = vmor %vm5105_vm0, %vm5106_vm10 }
 0x455   : > { %v5177_v35 = vmul.f32 1.002, %v5098_v12  ;;  %v5102_v41 = vsub.f32 1.0, %v5101_v13 }
 0x457   : > { %v5986_v26 = vadd.f32 -0.001, %v5177_v35  ;;  %v5103_v15 = vmul.f32 %v6562_v42, %v5102_v41 }
 0x459   : > { %v5306_v8 = vsel %vm5243_vm4, %v9968_v10, %v5986_v26  ;;  %v5104_v7 = vadd.f32 %v6562_v42, %v5103_v15 }
 0x45a   : > { %5371 = vst.msk [vmem:[%s7682_s9 + $0x1f0] sm:$0xff] %vm5308_vm5, %v5306_v8 }
 0x45b   : > { %v5108_v28 = vsel %vm5107_vm2, %v6562_v42, %v5104_v7 }
 0x45c   : > { %v5113_v51 = vsel %vm5110_vm11, %v5112_v16, %v5108_v28 }
 0x45d   : > { %v5178_v55 = vmul.f32 1.002, %v5113_v51 }
 0x45f   : > { %v5987_v3 = vadd.f32 -0.001, %v5178_v55 }
 0x461   : > { %v5307_v60 = vsel %vm5243_vm4, %v9972_v6, %v5987_v3 }
 0x462   : > { %5372 = vst.msk [vmem:[%s7682_s9 + $0x1f8] sm:$0xff] %vm5308_vm5, %v5307_v60 }
 0x463 PF: > { %s15_s24 = sadd.s32 1, %s6627_s24   ;;  %s10136_s18 = smov %s6607_s19 }
 0x464   : > { %p12_p12 = scmp.ge.s32.totalorder %s15_s24, 6   ;;  %s10137_s19 = smov %s6710_s6 }
 0x465   : > { %s10138_s20 = smov %s6619_s22  ;;  %s10139_s21 = smov %s6623_s23 }
 0x466   : > { %s10140_s22 = smov %s10143_s25  ;;  %s10141_s23 = smov %s10147_s26 }
 0x467   :  { %14 = sbr.rel (!%p12_p12) target bundleno = 4 (0x4), region = 115 }

</bundles_post_ra>
